<compile_context>
chip_gen: v7x
topology: tpu7x:2x2x1
jax: 0.10.0
libtpu: 0.0.40
codegen_flags: <defaults>
</compile_context>

<pallas_src>
import functools
import math

import jax
import jax.numpy as jnp
from jax import lax
from jax.experimental import pallas as pl
from jax.experimental.pallas import tpu as pltpu


def _round_up(x, m):
    return (x + m - 1) // m * m


# ---------------------------------------------------------------------------
# In-kernel direct convolution of one output row-tile (no im2col).
# ---------------------------------------------------------------------------
def _conv_tile(x_blk, w_ref, *, kh, kw, stride, toh, ow, cin, cout):
    """x_blk: (TIH, WP, Cin) bf16 value (zero-padded input strip).
    w_ref: (KH*KW, Cin, Cout) bf16 ref.  Returns (TOH*OW, Cout) f32."""
    tm = toh * ow
    acc = jnp.zeros((tm, cout), jnp.float32)
    for idx in range(kh * kw):
        i, j = idx // kw, idx % kw
        if stride == 1:
            sub = x_blk[i:i + toh, j:j + ow, :]
        else:
            sub = x_blk[i:i + (toh - 1) * stride + 1:stride,
                        j:j + (ow - 1) * stride + 1:stride, :]
        sub = sub.reshape(tm, cin)
        acc = acc + jnp.dot(sub, w_ref[idx], preferred_element_type=jnp.float32)
    return acc


# ---------------------------------------------------------------------------
# Pass 1: conv tile + per-image (8, Cout) sum / sum-of-squares accumulation.
# ---------------------------------------------------------------------------
def _make_stats_kernel(kh, kw, stride, toh, ow, cin, cout):
    tm = toh * ow

    def kernel(x_ref, w_ref, sum_ref, sumsq_ref):
        # sum_ref / sumsq_ref: (8, Cout) f32, VMEM-resident across the row-tile axis.
        @pl.when(pl.program_id(1) == 0)
        def _():
            sum_ref[...] = jnp.zeros_like(sum_ref)
            sumsq_ref[...] = jnp.zeros_like(sumsq_ref)

        y = _conv_tile(x_ref[...], w_ref, kh=kh, kw=kw, stride=stride,
                       toh=toh, ow=ow, cin=cin, cout=cout)
        # (TM, Cout) -> (TM//8, 8, Cout) is a free vreg view; reducing axis 0 is
        # pure VPU adds (no cross-sublane XLU reduction in the hot loop).
        y8 = y.reshape(tm // 8, 8, cout)
        sum_ref[...] += jnp.sum(y8, axis=0)
        sumsq_ref[...] += jnp.sum(y8 * y8, axis=0)

    return kernel


# ---------------------------------------------------------------------------
# Pass 2: conv tile + folded-BN affine + ReLU, true-width bf16 stores.
# ---------------------------------------------------------------------------
def _make_affine_relu_kernel(kh, kw, stride, toh, ow, cin, cout):
    def kernel(x_ref, w_ref, scale_ref, shift_ref, out_ref):
        y = _conv_tile(x_ref[...], w_ref, kh=kh, kw=kw, stride=stride,
                       toh=toh, ow=ow, cin=cin, cout=cout)
        y = y * scale_ref[...] + shift_ref[...]
        out_ref[...] = jnp.maximum(y, 0.0).astype(out_ref.dtype)

    return kernel


def basic_conv_forward(x, weight, gamma, beta, *, stride=1, padding=0,
                       eps=1e-5, target_tile_rows=512):
    """x: (N, Cin, H, W) NCHW; weight: (Cout, Cin, KH, KW); gamma/beta: (Cout,)."""
    n, cin, h, w_in = x.shape
    cout, cin_w, kh, kw = weight.shape
    assert cin == cin_w

    oh = (h + 2 * padding - kh) // stride + 1
    ow = (w_in + 2 * padding - kw) // stride + 1
    wp = w_in + 2 * padding

    # --- choose row tile: TOH*OW % 8 == 0, ~target_tile_rows pixels per step ---
    r = 8 // math.gcd(ow, 8)
    toh = _round_up(max(1, target_tile_rows // max(ow, 1)), r)
    toh = min(toh, _round_up(oh, r))
    # Keep the double-buffered input strip modest (v7x has only 64 MiB VMEM / TC).
    while toh > r and 2 * (((toh - 1) * stride + kh) * wp * cin * 2) > (8 << 20):
        toh -= r
    oh_pad = _round_up(oh, toh)
    num_th = oh_pad // toh
    tm = toh * ow
    tih = (toh - 1) * stride + kh

    compute_dtype = jnp.bfloat16

    # NCHW -> NHWC + spatial zero pad; single cheap XLA pass over the input
    # (extra bottom rows are zero, so padded output rows contribute 0 to BN sums).
    xp = jnp.transpose(x, (0, 2, 3, 1)).astype(compute_dtype)
    hp_needed = (oh_pad - 1) * stride + kh
    pad_bottom = max(0, hp_needed - (h + 2 * padding))
    xp = jnp.pad(xp, ((0, 0), (padding, padding + pad_bottom),
                      (padding, padding), (0, 0)))

    # Overlapping row strips (halo = KH - stride rows) so the grid uses plain
    # Blocked indexing; expansion ~TIH/(TOH*stride), i.e. ~1.1x (vs 9x im2col).
    if num_th == 1:
        xs = xp[:, None, :tih]
    else:
        xs = jnp.stack([xp[:, t * toh * stride: t * toh * stride + tih]
                        for t in range(num_th)], axis=1)
    # xs: (N, num_th, TIH, WP, Cin)

    # Weight -> (KH*KW, Cin, Cout) bf16, fully VMEM-resident across the grid.
    w2 = jnp.transpose(weight, (2, 3, 1, 0)).reshape(kh * kw, cin, cout)
    w2 = w2.astype(compute_dtype)

    grid = (n, num_th)
    x_spec = pl.BlockSpec((None, None, tih, wp, cin),
                          lambda b, t: (b, t, 0, 0, 0))
    w_spec = pl.BlockSpec((kh * kw, cin, cout), lambda b, t: (0, 0, 0))

    # VMEM budget: double-buffered strip + output tile + weights + compute slack,
    # capped at 48 MiB so it stays safe on v7x (64 MiB physical per TC).
    footprint = (2 * (tih * wp * cin * 2 + tm * cout * 2)
                 + kh * kw * cin * cout * 2 + 8 * tm * cout * 4)
    vmem_limit = int(min(48 << 20, max(32 << 20, 2 * footprint)))

    # ---- pass 1: per-image (8, Cout) partial sum / sumsq of the conv output ----
    stats_sum, stats_sq = pl.pallas_call(
        _make_stats_kernel(kh, kw, stride, toh, ow, cin, cout),
        out_shape=(jax.ShapeDtypeStruct((n, 8, cout), jnp.float32),
                   jax.ShapeDtypeStruct((n, 8, cout), jnp.float32)),
        grid=grid,
        in_specs=[x_spec, w_spec],
        out_specs=(pl.BlockSpec((None, 8, cout), lambda b, t: (b, 0, 0)),
                   pl.BlockSpec((None, 8, cout), lambda b, t: (b, 0, 0))),
        compiler_params=pltpu.CompilerParams(
            dimension_semantics=("parallel", "arbitrary"),
            vmem_limit_bytes=vmem_limit),
    )(xs, w2)

    # Fold training-mode BN (biased variance, eps) into per-channel scale/shift.
    m_true = float(n * oh * ow)                       # padded rows excluded
    total_sum = jnp.sum(stats_sum, axis=(0, 1))       # (Cout,)
    total_sq = jnp.sum(stats_sq, axis=(0, 1))
    mean = total_sum / m_true
    var = jnp.maximum(total_sq / m_true - mean * mean, 0.0)   # clamp (cancellation)
    inv_std = lax.rsqrt(var + eps)
    g32 = gamma.astype(jnp.float32)
    scale = (g32 * inv_std).reshape(1, cout)
    shift = (beta.astype(jnp.float32) - mean * g32 * inv_std).reshape(1, cout)

    # ---- pass 2: conv tile + y*scale + shift + ReLU, true-width bf16 stores ----
    out = pl.pallas_call(
        _make_affine_relu_kernel(kh, kw, stride, toh, ow, cin, cout),
        out_shape=jax.ShapeDtypeStruct((n, oh_pad * ow, cout), compute_dtype),
        grid=grid,
        in_specs=[x_spec, w_spec,
                  pl.BlockSpec((1, cout), lambda b, t: (0, 0)),
                  pl.BlockSpec((1, cout), lambda b, t: (0, 0))],
        out_specs=pl.BlockSpec((None, tm, cout), lambda b, t: (b, t, 0)),
        compiler_params=pltpu.CompilerParams(
            dimension_semantics=("parallel", "parallel"),
            vmem_limit_bytes=vmem_limit),
    )(xs, w2, scale, shift)

    # (N, OHp*OW, Cout) bf16 -> strip row padding -> (N, Cout, OH, OW) f32
    out = out.reshape(n, oh_pad, ow, cout)[:, :oh]
    return jnp.transpose(out, (0, 3, 1, 2)).astype(jnp.float32)


def _reference_forward(x, weight, gamma, beta, *, stride, padding, eps=1e-5):
    """Plain-JAX f32 reference: conv (no bias) + train-mode BN + ReLU."""
    y = lax.conv_general_dilated(
        x.astype(jnp.float32), weight.astype(jnp.float32),
        window_strides=(stride, stride),
        padding=[(padding, padding), (padding, padding)],
        dimension_numbers=("NCHW", "OIHW", "NCHW"),
    )
    mean = jnp.mean(y, axis=(0, 2, 3), keepdims=True)
    var = jnp.mean((y - mean) ** 2, axis=(0, 2, 3), keepdims=True)
    y = (y - mean) * lax.rsqrt(var + eps)
    y = y * gamma.reshape(1, -1, 1, 1) + beta.reshape(1, -1, 1, 1)
    return jnp.maximum(y, 0.0)


if __name__ == "__main__":
    # BasicConv(in_planes=4, out_planes=8, kernel_size=3, stride=1, padding=1,
    #           relu=True, bn=True, bias=False)
    N, CIN, H, W = 2, 4, 16, 16
    COUT, KH, KW = 8, 3, 3
    STRIDE, PAD = 1, 1

    key = jax.random.PRNGKey(0)
    kx, kw_ = jax.random.split(key)
    x = jax.random.normal(kx, (N, CIN, H, W), dtype=jnp.float32)
    weight = jax.random.normal(kw_, (COUT, CIN, KH, KW), dtype=jnp.float32) * 0.1
    gamma = jnp.ones((COUT,), jnp.float32)   # BatchNorm2d default affine init
    beta = jnp.zeros((COUT,), jnp.float32)

    fwd = jax.jit(functools.partial(basic_conv_forward, stride=STRIDE, padding=PAD))
    out = jax.block_until_ready(fwd(x, weight, gamma, beta))

    ref = _reference_forward(x, weight, gamma, beta, stride=STRIDE, padding=PAD)
    assert out.shape == (N, COUT, H, W)
    # bf16 MXU inputs + bf16 output stores (f32 accumulation / BN math) ->
    # loosened tolerance vs the f32 reference.
    assert jnp.allclose(out, ref, atol=3e-2, rtol=3e-2), float(
        jnp.max(jnp.abs(out - ref)))

    print("KERNEL_OK")
</pallas_src>

<mosaic_0001>
module attributes {stable_mosaic.version = 11 : i64} {
  func.func @kernel(%arg0: i32, %arg1: i32, %arg2: memref<1x1x18x18x4xbf16, #tpu.memory_space<vmem>>, %arg3: memref<9x4x8xbf16, #tpu.memory_space<vmem>>, %arg4: memref<1x8x8xf32, #tpu.memory_space<vmem>>, %arg5: memref<1x8x8xf32, #tpu.memory_space<vmem>>) attributes {dimension_semantics = [#tpu.dimension_semantics<parallel>, #tpu.dimension_semantics<arbitrary>], iteration_bounds = array<i64: 2, 1>, scalar_prefetch = 0 : i64, scratch_operands = 0 : i64, tpu.core_type = #tpu.core_type<tc>, window_params = [{transform_indices = @transform_0, window_bounds = array<i64: 1, 1, 18, 18, 4>}, {pipeline_mode = #tpu.pipeline_mode<synchronous>, transform_indices = @transform_1, window_bounds = array<i64: 9, 4, 8>}, {transform_indices = @transform_2, window_bounds = array<i64: 1, 8, 8>}, {transform_indices = @transform_3, window_bounds = array<i64: 1, 8, 8>}]} {
    %c0_i32 = arith.constant 0 : i32
    %0 = arith.cmpi eq, %arg1, %c0_i32 : i32
    %1 = arith.extui %0 : i1 to i32
    %c0_i32_0 = arith.constant 0 : i32
    %2 = arith.cmpi ne, %1, %c0_i32_0 : i32
    scf.if %2 {
      %cst_47 = arith.constant 0.000000e+00 : f32
      %76 = vector.broadcast %cst_47 : f32 to vector<8x8xf32>
      %c0_48 = arith.constant 0 : index
      %c0_49 = arith.constant 0 : index
      %c0_50 = arith.constant 0 : index
      %77 = vector.load %arg4[%c0_48, %c0_49, %c0_50] : memref<1x8x8xf32, #tpu.memory_space<vmem>>, vector<1x8x8xf32>
      %78 = vector.shape_cast %77 : vector<1x8x8xf32> to vector<8x8xf32>
      %79 = vector.shape_cast %76 : vector<8x8xf32> to vector<1x8x8xf32>
      tpu.vector_store %arg4[%c0_48, %c0_49, %c0_50], %79 {strides = array<i32>} : memref<1x8x8xf32, #tpu.memory_space<vmem>>, vector<1x8x8xf32>,
      %cst_51 = arith.constant 0.000000e+00 : f32
      %80 = vector.broadcast %cst_51 : f32 to vector<8x8xf32>
      %c0_52 = arith.constant 0 : index
      %c0_53 = arith.constant 0 : index
      %c0_54 = arith.constant 0 : index
      %81 = vector.load %arg5[%c0_52, %c0_53, %c0_54] : memref<1x8x8xf32, #tpu.memory_space<vmem>>, vector<1x8x8xf32>
      %82 = vector.shape_cast %81 : vector<1x8x8xf32> to vector<8x8xf32>
      %83 = vector.shape_cast %80 : vector<8x8xf32> to vector<1x8x8xf32>
      tpu.vector_store %arg5[%c0_52, %c0_53, %c0_54], %83 {strides = array<i32>} : memref<1x8x8xf32, #tpu.memory_space<vmem>>, vector<1x8x8xf32>,
    } else {
    }
    %c0 = arith.constant 0 : index
    %c0_1 = arith.constant 0 : index
    %c0_2 = arith.constant 0 : index
    %c0_3 = arith.constant 0 : index
    %c0_4 = arith.constant 0 : index
    %3 = vector.load %arg2[%c0, %c0_1, %c0_2, %c0_3, %c0_4] : memref<1x1x18x18x4xbf16, #tpu.memory_space<vmem>>, vector<1x1x18x18x4xbf16>
    %4 = vector.shape_cast %3 : vector<1x1x18x18x4xbf16> to vector<18x18x4xbf16>
    %cst = arith.constant 0.000000e+00 : f32
    %5 = vector.broadcast %cst : f32 to vector<256x8xf32>
    %6 = vector.extract_strided_slice %4 {offsets = [0, 0, 0], sizes = [16, 16, 4], strides = [1, 1, 1]} : vector<18x18x4xbf16> to vector<16x16x4xbf16>
    %7 = vector.shape_cast %6 : vector<16x16x4xbf16> to vector<256x4xbf16>
    %c0_5 = arith.constant 0 : index
    %c0_6 = arith.constant 0 : index
    %c0_7 = arith.constant 0 : index
    %8 = vector.load %arg3[%c0_5, %c0_6, %c0_7] : memref<9x4x8xbf16, #tpu.memory_space<vmem>>, vector<1x4x8xbf16>
    %9 = vector.shape_cast %8 : vector<1x4x8xbf16> to vector<4x8xbf16>
    %cst_8 = arith.constant dense<0.000000e+00> : vector<256x8xf32>
    %10 = tpu.matmul %7, %9, %cst_8 {dimension_numbers = #tpu.dot_dimension_numbers<[1], [0], [0], [1], [0, 0, 1, 1], [], []>} : vector<256x4xbf16>, vector<4x8xbf16>, vector<256x8xf32> -> vector<256x8xf32>
    %11 = arith.addf %5, %10 : vector<256x8xf32>
    %12 = vector.extract_strided_slice %4 {offsets = [0, 1, 0], sizes = [16, 16, 4], strides = [1, 1, 1]} : vector<18x18x4xbf16> to vector<16x16x4xbf16>
    %13 = vector.shape_cast %12 : vector<16x16x4xbf16> to vector<256x4xbf16>
    %c1 = arith.constant 1 : index
    %c0_9 = arith.constant 0 : index
    %c0_10 = arith.constant 0 : index
    %14 = vector.load %arg3[%c1, %c0_9, %c0_10] : memref<9x4x8xbf16, #tpu.memory_space<vmem>>, vector<1x4x8xbf16>
    %15 = vector.shape_cast %14 : vector<1x4x8xbf16> to vector<4x8xbf16>
    %cst_11 = arith.constant dense<0.000000e+00> : vector<256x8xf32>
    %16 = tpu.matmul %13, %15, %cst_11 {dimension_numbers = #tpu.dot_dimension_numbers<[1], [0], [0], [1], [0, 0, 1, 1], [], []>} : vector<256x4xbf16>, vector<4x8xbf16>, vector<256x8xf32> -> vector<256x8xf32>
    %17 = arith.addf %11, %16 : vector<256x8xf32>
    %18 = vector.extract_strided_slice %4 {offsets = [0, 2, 0], sizes = [16, 16, 4], strides = [1, 1, 1]} : vector<18x18x4xbf16> to vector<16x16x4xbf16>
    %19 = vector.shape_cast %18 : vector<16x16x4xbf16> to vector<256x4xbf16>
    %c2 = arith.constant 2 : index
    %c0_12 = arith.constant 0 : index
    %c0_13 = arith.constant 0 : index
    %20 = vector.load %arg3[%c2, %c0_12, %c0_13] : memref<9x4x8xbf16, #tpu.memory_space<vmem>>, vector<1x4x8xbf16>
    %21 = vector.shape_cast %20 : vector<1x4x8xbf16> to vector<4x8xbf16>
    %cst_14 = arith.constant dense<0.000000e+00> : vector<256x8xf32>
    %22 = tpu.matmul %19, %21, %cst_14 {dimension_numbers = #tpu.dot_dimension_numbers<[1], [0], [0], [1], [0, 0, 1, 1], [], []>} : vector<256x4xbf16>, vector<4x8xbf16>, vector<256x8xf32> -> vector<256x8xf32>
    %23 = arith.addf %17, %22 : vector<256x8xf32>
    %24 = vector.extract_strided_slice %4 {offsets = [1, 0, 0], sizes = [16, 16, 4], strides = [1, 1, 1]} : vector<18x18x4xbf16> to vector<16x16x4xbf16>
    %25 = vector.shape_cast %24 : vector<16x16x4xbf16> to vector<256x4xbf16>
    %c3 = arith.constant 3 : index
    %c0_15 = arith.constant 0 : index
    %c0_16 = arith.constant 0 : index
    %26 = vector.load %arg3[%c3, %c0_15, %c0_16] : memref<9x4x8xbf16, #tpu.memory_space<vmem>>, vector<1x4x8xbf16>
    %27 = vector.shape_cast %26 : vector<1x4x8xbf16> to vector<4x8xbf16>
    %cst_17 = arith.constant dense<0.000000e+00> : vector<256x8xf32>
    %28 = tpu.matmul %25, %27, %cst_17 {dimension_numbers = #tpu.dot_dimension_numbers<[1], [0], [0], [1], [0, 0, 1, 1], [], []>} : vector<256x4xbf16>, vector<4x8xbf16>, vector<256x8xf32> -> vector<256x8xf32>
    %29 = arith.addf %23, %28 : vector<256x8xf32>
    %30 = vector.extract_strided_slice %4 {offsets = [1, 1, 0], sizes = [16, 16, 4], strides = [1, 1, 1]} : vector<18x18x4xbf16> to vector<16x16x4xbf16>
    %31 = vector.shape_cast %30 : vector<16x16x4xbf16> to vector<256x4xbf16>
    %c4 = arith.constant 4 : index
    %c0_18 = arith.constant 0 : index
    %c0_19 = arith.constant 0 : index
    %32 = vector.load %arg3[%c4, %c0_18, %c0_19] : memref<9x4x8xbf16, #tpu.memory_space<vmem>>, vector<1x4x8xbf16>
    %33 = vector.shape_cast %32 : vector<1x4x8xbf16> to vector<4x8xbf16>
    %cst_20 = arith.constant dense<0.000000e+00> : vector<256x8xf32>
    %34 = tpu.matmul %31, %33, %cst_20 {dimension_numbers = #tpu.dot_dimension_numbers<[1], [0], [0], [1], [0, 0, 1, 1], [], []>} : vector<256x4xbf16>, vector<4x8xbf16>, vector<256x8xf32> -> vector<256x8xf32>
    %35 = arith.addf %29, %34 : vector<256x8xf32>
    %36 = vector.extract_strided_slice %4 {offsets = [1, 2, 0], sizes = [16, 16, 4], strides = [1, 1, 1]} : vector<18x18x4xbf16> to vector<16x16x4xbf16>
    %37 = vector.shape_cast %36 : vector<16x16x4xbf16> to vector<256x4xbf16>
    %c5 = arith.constant 5 : index
    %c0_21 = arith.constant 0 : index
    %c0_22 = arith.constant 0 : index
    %38 = vector.load %arg3[%c5, %c0_21, %c0_22] : memref<9x4x8xbf16, #tpu.memory_space<vmem>>, vector<1x4x8xbf16>
    %39 = vector.shape_cast %38 : vector<1x4x8xbf16> to vector<4x8xbf16>
    %cst_23 = arith.constant dense<0.000000e+00> : vector<256x8xf32>
    %40 = tpu.matmul %37, %39, %cst_23 {dimension_numbers = #tpu.dot_dimension_numbers<[1], [0], [0], [1], [0, 0, 1, 1], [], []>} : vector<256x4xbf16>, vector<4x8xbf16>, vector<256x8xf32> -> vector<256x8xf32>
    %41 = arith.addf %35, %40 : vector<256x8xf32>
    %42 = vector.extract_strided_slice %4 {offsets = [2, 0, 0], sizes = [16, 16, 4], strides = [1, 1, 1]} : vector<18x18x4xbf16> to vector<16x16x4xbf16>
    %43 = vector.shape_cast %42 : vector<16x16x4xbf16> to vector<256x4xbf16>
    %c6 = arith.constant 6 : index
    %c0_24 = arith.constant 0 : index
    %c0_25 = arith.constant 0 : index
    %44 = vector.load %arg3[%c6, %c0_24, %c0_25] : memref<9x4x8xbf16, #tpu.memory_space<vmem>>, vector<1x4x8xbf16>
    %45 = vector.shape_cast %44 : vector<1x4x8xbf16> to vector<4x8xbf16>
    %cst_26 = arith.constant dense<0.000000e+00> : vector<256x8xf32>
    %46 = tpu.matmul %43, %45, %cst_26 {dimension_numbers = #tpu.dot_dimension_numbers<[1], [0], [0], [1], [0, 0, 1, 1], [], []>} : vector<256x4xbf16>, vector<4x8xbf16>, vector<256x8xf32> -> vector<256x8xf32>
    %47 = arith.addf %41, %46 : vector<256x8xf32>
    %48 = vector.extract_strided_slice %4 {offsets = [2, 1, 0], sizes = [16, 16, 4], strides = [1, 1, 1]} : vector<18x18x4xbf16> to vector<16x16x4xbf16>
    %49 = vector.shape_cast %48 : vector<16x16x4xbf16> to vector<256x4xbf16>
    %c7 = arith.constant 7 : index
    %c0_27 = arith.constant 0 : index
    %c0_28 = arith.constant 0 : index
    %50 = vector.load %arg3[%c7, %c0_27, %c0_28] : memref<9x4x8xbf16, #tpu.memory_space<vmem>>, vector<1x4x8xbf16>
    %51 = vector.shape_cast %50 : vector<1x4x8xbf16> to vector<4x8xbf16>
    %cst_29 = arith.constant dense<0.000000e+00> : vector<256x8xf32>
    %52 = tpu.matmul %49, %51, %cst_29 {dimension_numbers = #tpu.dot_dimension_numbers<[1], [0], [0], [1], [0, 0, 1, 1], [], []>} : vector<256x4xbf16>, vector<4x8xbf16>, vector<256x8xf32> -> vector<256x8xf32>
    %53 = arith.addf %47, %52 : vector<256x8xf32>
    %54 = vector.extract_strided_slice %4 {offsets = [2, 2, 0], sizes = [16, 16, 4], strides = [1, 1, 1]} : vector<18x18x4xbf16> to vector<16x16x4xbf16>
    %55 = vector.shape_cast %54 : vector<16x16x4xbf16> to vector<256x4xbf16>
    %c8 = arith.constant 8 : index
    %c0_30 = arith.constant 0 : index
    %c0_31 = arith.constant 0 : index
    %56 = vector.load %arg3[%c8, %c0_30, %c0_31] : memref<9x4x8xbf16, #tpu.memory_space<vmem>>, vector<1x4x8xbf16>
    %57 = vector.shape_cast %56 : vector<1x4x8xbf16> to vector<4x8xbf16>
    %cst_32 = arith.constant dense<0.000000e+00> : vector<256x8xf32>
    %58 = tpu.matmul %55, %57, %cst_32 {dimension_numbers = #tpu.dot_dimension_numbers<[1], [0], [0], [1], [0, 0, 1, 1], [], []>} : vector<256x4xbf16>, vector<4x8xbf16>, vector<256x8xf32> -> vector<256x8xf32>
    %59 = arith.addf %53, %58 : vector<256x8xf32>
    %60 = vector.shape_cast %59 : vector<256x8xf32> to vector<32x8x8xf32>
    %c0_33 = arith.constant 0 : index
    %c0_34 = arith.constant 0 : index
    %c0_35 = arith.constant 0 : index
    %61 = vector.load %arg4[%c0_33, %c0_34, %c0_35] : memref<1x8x8xf32, #tpu.memory_space<vmem>>, vector<1x8x8xf32>
    %62 = vector.shape_cast %61 : vector<1x8x8xf32> to vector<8x8xf32>
    %cst_36 = arith.constant dense<0.000000e+00> : vector<8x8xf32>
    %63 = vector.multi_reduction <add>, %60, %cst_36 [0] : vector<32x8x8xf32> to vector<8x8xf32>
    %64 = arith.addf %62, %63 : vector<8x8xf32>
    %c0_37 = arith.constant 0 : index
    %c0_38 = arith.constant 0 : index
    %c0_39 = arith.constant 0 : index
    %65 = vector.load %arg4[%c0_37, %c0_38, %c0_39] : memref<1x8x8xf32, #tpu.memory_space<vmem>>, vector<1x8x8xf32>
    %66 = vector.shape_cast %65 : vector<1x8x8xf32> to vector<8x8xf32>
    %67 = vector.shape_cast %64 : vector<8x8xf32> to vector<1x8x8xf32>
    tpu.vector_store %arg4[%c0_37, %c0_38, %c0_39], %67 {strides = array<i32>} : memref<1x8x8xf32, #tpu.memory_space<vmem>>, vector<1x8x8xf32>,
    %c0_40 = arith.constant 0 : index
    %c0_41 = arith.constant 0 : index
    %c0_42 = arith.constant 0 : index
    %68 = vector.load %arg5[%c0_40, %c0_41, %c0_42] : memref<1x8x8xf32, #tpu.memory_space<vmem>>, vector<1x8x8xf32>
    %69 = vector.shape_cast %68 : vector<1x8x8xf32> to vector<8x8xf32>
    %70 = arith.mulf %60, %60 : vector<32x8x8xf32>
    %cst_43 = arith.constant dense<0.000000e+00> : vector<8x8xf32>
    %71 = vector.multi_reduction <add>, %70, %cst_43 [0] : vector<32x8x8xf32> to vector<8x8xf32>
    %72 = arith.addf %69, %71 : vector<8x8xf32>
    %c0_44 = arith.constant 0 : index
    %c0_45 = arith.constant 0 : index
    %c0_46 = arith.constant 0 : index
    %73 = vector.load %arg5[%c0_44, %c0_45, %c0_46] : memref<1x8x8xf32, #tpu.memory_space<vmem>>, vector<1x8x8xf32>
    %74 = vector.shape_cast %73 : vector<1x8x8xf32> to vector<8x8xf32>
    %75 = vector.shape_cast %72 : vector<8x8xf32> to vector<1x8x8xf32>
    tpu.vector_store %arg5[%c0_44, %c0_45, %c0_46], %75 {strides = array<i32>} : memref<1x8x8xf32, #tpu.memory_space<vmem>>, vector<1x8x8xf32>,
    return
  }
  func.func @transform_0(%arg0: i32, %arg1: i32) -> (i32, i32, i32, i32, i32) {
    %c0_i32 = arith.constant 0 : i32
    %c0_i32_0 = arith.constant 0 : i32
    %c0_i32_1 = arith.constant 0 : i32
    %c0_i32_2 = arith.constant 0 : i32
    return %arg0, %arg1, %c0_i32, %c0_i32_0, %c0_i32_1 : i32, i32, i32, i32, i32
  }
  func.func @transform_1(%arg0: i32, %arg1: i32) -> (i32, i32, i32) {
    %c0_i32 = arith.constant 0 : i32
    %c0_i32_0 = arith.constant 0 : i32
    %c0_i32_1 = arith.constant 0 : i32
    %c0_i32_2 = arith.constant 0 : i32
    return %c0_i32, %c0_i32_0, %c0_i32_1 : i32, i32, i32
  }
  func.func @transform_2(%arg0: i32, %arg1: i32) -> (i32, i32, i32) {
    %c0_i32 = arith.constant 0 : i32
    %c0_i32_0 = arith.constant 0 : i32
    %c0_i32_1 = arith.constant 0 : i32
    return %arg0, %c0_i32, %c0_i32_0 : i32, i32, i32
  }
  func.func @transform_3(%arg0: i32, %arg1: i32) -> (i32, i32, i32) {
    %c0_i32 = arith.constant 0 : i32
    %c0_i32_0 = arith.constant 0 : i32
    %c0_i32_1 = arith.constant 0 : i32
    return %arg0, %c0_i32, %c0_i32_0 : i32, i32, i32
  }
}

module attributes {stable_mosaic.version = 11 : i64} {
  func.func @kernel(%arg0: i32, %arg1: i32, %arg2: memref<1x1x18x18x4xbf16, #tpu.memory_space<vmem>>, %arg3: memref<9x4x8xbf16, #tpu.memory_space<vmem>>, %arg4: memref<1x8xf32, #tpu.memory_space<vmem>>, %arg5: memref<1x8xf32, #tpu.memory_space<vmem>>, %arg6: memref<1x256x8xbf16, #tpu.memory_space<vmem>>) attributes {dimension_semantics = [#tpu.dimension_semantics<parallel>, #tpu.dimension_semantics<parallel>], iteration_bounds = array<i64: 2, 1>, scalar_prefetch = 0 : i64, scratch_operands = 0 : i64, tpu.core_type = #tpu.core_type<tc>, window_params = [{transform_indices = @transform_0, window_bounds = array<i64: 1, 1, 18, 18, 4>}, {pipeline_mode = #tpu.pipeline_mode<synchronous>, transform_indices = @transform_1, window_bounds = array<i64: 9, 4, 8>}, {pipeline_mode = #tpu.pipeline_mode<synchronous>, transform_indices = @transform_2, window_bounds = array<i64: 1, 8>}, {pipeline_mode = #tpu.pipeline_mode<synchronous>, transform_indices = @transform_3, window_bounds = array<i64: 1, 8>}, {transform_indices = @transform_4, window_bounds = array<i64: 1, 256, 8>}]} {
    %c0 = arith.constant 0 : index
    %c0_0 = arith.constant 0 : index
    %c0_1 = arith.constant 0 : index
    %c0_2 = arith.constant 0 : index
    %c0_3 = arith.constant 0 : index
    %0 = vector.load %arg2[%c0, %c0_0, %c0_1, %c0_2, %c0_3] : memref<1x1x18x18x4xbf16, #tpu.memory_space<vmem>>, vector<1x1x18x18x4xbf16>
    %1 = vector.shape_cast %0 : vector<1x1x18x18x4xbf16> to vector<18x18x4xbf16>
    %cst = arith.constant 0.000000e+00 : f32
    %2 = vector.broadcast %cst : f32 to vector<256x8xf32>
    %3 = vector.extract_strided_slice %1 {offsets = [0, 0, 0], sizes = [16, 16, 4], strides = [1, 1, 1]} : vector<18x18x4xbf16> to vector<16x16x4xbf16>
    %4 = vector.shape_cast %3 : vector<16x16x4xbf16> to vector<256x4xbf16>
    %c0_4 = arith.constant 0 : index
    %c0_5 = arith.constant 0 : index
    %c0_6 = arith.constant 0 : index
    %5 = vector.load %arg3[%c0_4, %c0_5, %c0_6] : memref<9x4x8xbf16, #tpu.memory_space<vmem>>, vector<1x4x8xbf16>
    %6 = vector.shape_cast %5 : vector<1x4x8xbf16> to vector<4x8xbf16>
    %cst_7 = arith.constant dense<0.000000e+00> : vector<256x8xf32>
    %7 = tpu.matmul %4, %6, %cst_7 {dimension_numbers = #tpu.dot_dimension_numbers<[1], [0], [0], [1], [0, 0, 1, 1], [], []>} : vector<256x4xbf16>, vector<4x8xbf16>, vector<256x8xf32> -> vector<256x8xf32>
    %8 = arith.addf %2, %7 : vector<256x8xf32>
    %9 = vector.extract_strided_slice %1 {offsets = [0, 1, 0], sizes = [16, 16, 4], strides = [1, 1, 1]} : vector<18x18x4xbf16> to vector<16x16x4xbf16>
    %10 = vector.shape_cast %9 : vector<16x16x4xbf16> to vector<256x4xbf16>
    %c1 = arith.constant 1 : index
    %c0_8 = arith.constant 0 : index
    %c0_9 = arith.constant 0 : index
    %11 = vector.load %arg3[%c1, %c0_8, %c0_9] : memref<9x4x8xbf16, #tpu.memory_space<vmem>>, vector<1x4x8xbf16>
    %12 = vector.shape_cast %11 : vector<1x4x8xbf16> to vector<4x8xbf16>
    %cst_10 = arith.constant dense<0.000000e+00> : vector<256x8xf32>
    %13 = tpu.matmul %10, %12, %cst_10 {dimension_numbers = #tpu.dot_dimension_numbers<[1], [0], [0], [1], [0, 0, 1, 1], [], []>} : vector<256x4xbf16>, vector<4x8xbf16>, vector<256x8xf32> -> vector<256x8xf32>
    %14 = arith.addf %8, %13 : vector<256x8xf32>
    %15 = vector.extract_strided_slice %1 {offsets = [0, 2, 0], sizes = [16, 16, 4], strides = [1, 1, 1]} : vector<18x18x4xbf16> to vector<16x16x4xbf16>
    %16 = vector.shape_cast %15 : vector<16x16x4xbf16> to vector<256x4xbf16>
    %c2 = arith.constant 2 : index
    %c0_11 = arith.constant 0 : index
    %c0_12 = arith.constant 0 : index
    %17 = vector.load %arg3[%c2, %c0_11, %c0_12] : memref<9x4x8xbf16, #tpu.memory_space<vmem>>, vector<1x4x8xbf16>
    %18 = vector.shape_cast %17 : vector<1x4x8xbf16> to vector<4x8xbf16>
    %cst_13 = arith.constant dense<0.000000e+00> : vector<256x8xf32>
    %19 = tpu.matmul %16, %18, %cst_13 {dimension_numbers = #tpu.dot_dimension_numbers<[1], [0], [0], [1], [0, 0, 1, 1], [], []>} : vector<256x4xbf16>, vector<4x8xbf16>, vector<256x8xf32> -> vector<256x8xf32>
    %20 = arith.addf %14, %19 : vector<256x8xf32>
    %21 = vector.extract_strided_slice %1 {offsets = [1, 0, 0], sizes = [16, 16, 4], strides = [1, 1, 1]} : vector<18x18x4xbf16> to vector<16x16x4xbf16>
    %22 = vector.shape_cast %21 : vector<16x16x4xbf16> to vector<256x4xbf16>
    %c3 = arith.constant 3 : index
    %c0_14 = arith.constant 0 : index
    %c0_15 = arith.constant 0 : index
    %23 = vector.load %arg3[%c3, %c0_14, %c0_15] : memref<9x4x8xbf16, #tpu.memory_space<vmem>>, vector<1x4x8xbf16>
    %24 = vector.shape_cast %23 : vector<1x4x8xbf16> to vector<4x8xbf16>
    %cst_16 = arith.constant dense<0.000000e+00> : vector<256x8xf32>
    %25 = tpu.matmul %22, %24, %cst_16 {dimension_numbers = #tpu.dot_dimension_numbers<[1], [0], [0], [1], [0, 0, 1, 1], [], []>} : vector<256x4xbf16>, vector<4x8xbf16>, vector<256x8xf32> -> vector<256x8xf32>
    %26 = arith.addf %20, %25 : vector<256x8xf32>
    %27 = vector.extract_strided_slice %1 {offsets = [1, 1, 0], sizes = [16, 16, 4], strides = [1, 1, 1]} : vector<18x18x4xbf16> to vector<16x16x4xbf16>
    %28 = vector.shape_cast %27 : vector<16x16x4xbf16> to vector<256x4xbf16>
    %c4 = arith.constant 4 : index
    %c0_17 = arith.constant 0 : index
    %c0_18 = arith.constant 0 : index
    %29 = vector.load %arg3[%c4, %c0_17, %c0_18] : memref<9x4x8xbf16, #tpu.memory_space<vmem>>, vector<1x4x8xbf16>
    %30 = vector.shape_cast %29 : vector<1x4x8xbf16> to vector<4x8xbf16>
    %cst_19 = arith.constant dense<0.000000e+00> : vector<256x8xf32>
    %31 = tpu.matmul %28, %30, %cst_19 {dimension_numbers = #tpu.dot_dimension_numbers<[1], [0], [0], [1], [0, 0, 1, 1], [], []>} : vector<256x4xbf16>, vector<4x8xbf16>, vector<256x8xf32> -> vector<256x8xf32>
    %32 = arith.addf %26, %31 : vector<256x8xf32>
    %33 = vector.extract_strided_slice %1 {offsets = [1, 2, 0], sizes = [16, 16, 4], strides = [1, 1, 1]} : vector<18x18x4xbf16> to vector<16x16x4xbf16>
    %34 = vector.shape_cast %33 : vector<16x16x4xbf16> to vector<256x4xbf16>
    %c5 = arith.constant 5 : index
    %c0_20 = arith.constant 0 : index
    %c0_21 = arith.constant 0 : index
    %35 = vector.load %arg3[%c5, %c0_20, %c0_21] : memref<9x4x8xbf16, #tpu.memory_space<vmem>>, vector<1x4x8xbf16>
    %36 = vector.shape_cast %35 : vector<1x4x8xbf16> to vector<4x8xbf16>
    %cst_22 = arith.constant dense<0.000000e+00> : vector<256x8xf32>
    %37 = tpu.matmul %34, %36, %cst_22 {dimension_numbers = #tpu.dot_dimension_numbers<[1], [0], [0], [1], [0, 0, 1, 1], [], []>} : vector<256x4xbf16>, vector<4x8xbf16>, vector<256x8xf32> -> vector<256x8xf32>
    %38 = arith.addf %32, %37 : vector<256x8xf32>
    %39 = vector.extract_strided_slice %1 {offsets = [2, 0, 0], sizes = [16, 16, 4], strides = [1, 1, 1]} : vector<18x18x4xbf16> to vector<16x16x4xbf16>
    %40 = vector.shape_cast %39 : vector<16x16x4xbf16> to vector<256x4xbf16>
    %c6 = arith.constant 6 : index
    %c0_23 = arith.constant 0 : index
    %c0_24 = arith.constant 0 : index
    %41 = vector.load %arg3[%c6, %c0_23, %c0_24] : memref<9x4x8xbf16, #tpu.memory_space<vmem>>, vector<1x4x8xbf16>
    %42 = vector.shape_cast %41 : vector<1x4x8xbf16> to vector<4x8xbf16>
    %cst_25 = arith.constant dense<0.000000e+00> : vector<256x8xf32>
    %43 = tpu.matmul %40, %42, %cst_25 {dimension_numbers = #tpu.dot_dimension_numbers<[1], [0], [0], [1], [0, 0, 1, 1], [], []>} : vector<256x4xbf16>, vector<4x8xbf16>, vector<256x8xf32> -> vector<256x8xf32>
    %44 = arith.addf %38, %43 : vector<256x8xf32>
    %45 = vector.extract_strided_slice %1 {offsets = [2, 1, 0], sizes = [16, 16, 4], strides = [1, 1, 1]} : vector<18x18x4xbf16> to vector<16x16x4xbf16>
    %46 = vector.shape_cast %45 : vector<16x16x4xbf16> to vector<256x4xbf16>
    %c7 = arith.constant 7 : index
    %c0_26 = arith.constant 0 : index
    %c0_27 = arith.constant 0 : index
    %47 = vector.load %arg3[%c7, %c0_26, %c0_27] : memref<9x4x8xbf16, #tpu.memory_space<vmem>>, vector<1x4x8xbf16>
    %48 = vector.shape_cast %47 : vector<1x4x8xbf16> to vector<4x8xbf16>
    %cst_28 = arith.constant dense<0.000000e+00> : vector<256x8xf32>
    %49 = tpu.matmul %46, %48, %cst_28 {dimension_numbers = #tpu.dot_dimension_numbers<[1], [0], [0], [1], [0, 0, 1, 1], [], []>} : vector<256x4xbf16>, vector<4x8xbf16>, vector<256x8xf32> -> vector<256x8xf32>
    %50 = arith.addf %44, %49 : vector<256x8xf32>
    %51 = vector.extract_strided_slice %1 {offsets = [2, 2, 0], sizes = [16, 16, 4], strides = [1, 1, 1]} : vector<18x18x4xbf16> to vector<16x16x4xbf16>
    %52 = vector.shape_cast %51 : vector<16x16x4xbf16> to vector<256x4xbf16>
    %c8 = arith.constant 8 : index
    %c0_29 = arith.constant 0 : index
    %c0_30 = arith.constant 0 : index
    %53 = vector.load %arg3[%c8, %c0_29, %c0_30] : memref<9x4x8xbf16, #tpu.memory_space<vmem>>, vector<1x4x8xbf16>
    %54 = vector.shape_cast %53 : vector<1x4x8xbf16> to vector<4x8xbf16>
    %cst_31 = arith.constant dense<0.000000e+00> : vector<256x8xf32>
    %55 = tpu.matmul %52, %54, %cst_31 {dimension_numbers = #tpu.dot_dimension_numbers<[1], [0], [0], [1], [0, 0, 1, 1], [], []>} : vector<256x4xbf16>, vector<4x8xbf16>, vector<256x8xf32> -> vector<256x8xf32>
    %56 = arith.addf %50, %55 : vector<256x8xf32>
    %c0_32 = arith.constant 0 : index
    %c0_33 = arith.constant 0 : index
    %57 = vector.load %arg4[%c0_32, %c0_33] : memref<1x8xf32, #tpu.memory_space<vmem>>, vector<1x8xf32>
    %58 = vector.broadcast %57 : vector<1x8xf32> to vector<256x8xf32>
    %59 = arith.mulf %56, %58 : vector<256x8xf32>
    %c0_34 = arith.constant 0 : index
    %c0_35 = arith.constant 0 : index
    %60 = vector.load %arg5[%c0_34, %c0_35] : memref<1x8xf32, #tpu.memory_space<vmem>>, vector<1x8xf32>
    %61 = vector.broadcast %60 : vector<1x8xf32> to vector<256x8xf32>
    %62 = arith.addf %59, %61 : vector<256x8xf32>
    %cst_36 = arith.constant 0.000000e+00 : f32
    %63 = vector.broadcast %cst_36 : f32 to vector<256x8xf32>
    %64 = arith.maximumf %62, %63 : vector<256x8xf32>
    %65 = arith.truncf %64 : vector<256x8xf32> to vector<256x8xbf16>
    %c0_37 = arith.constant 0 : index
    %c0_38 = arith.constant 0 : index
    %c0_39 = arith.constant 0 : index
    %66 = vector.load %arg6[%c0_37, %c0_38, %c0_39] : memref<1x256x8xbf16, #tpu.memory_space<vmem>>, vector<1x256x8xbf16>
    %67 = vector.shape_cast %66 : vector<1x256x8xbf16> to vector<256x8xbf16>
    %68 = vector.shape_cast %65 : vector<256x8xbf16> to vector<1x256x8xbf16>
    tpu.vector_store %arg6[%c0_37, %c0_38, %c0_39], %68 {strides = array<i32>} : memref<1x256x8xbf16, #tpu.memory_space<vmem>>, vector<1x256x8xbf16>,
    return
  }
  func.func @transform_0(%arg0: i32, %arg1: i32) -> (i32, i32, i32, i32, i32) {
    %c0_i32 = arith.constant 0 : i32
    %c0_i32_0 = arith.constant 0 : i32
    %c0_i32_1 = arith.constant 0 : i32
    %c0_i32_2 = arith.constant 0 : i32
    return %arg0, %arg1, %c0_i32, %c0_i32_0, %c0_i32_1 : i32, i32, i32, i32, i32
  }
  func.func @transform_1(%arg0: i32, %arg1: i32) -> (i32, i32, i32) {
    %c0_i32 = arith.constant 0 : i32
    %c0_i32_0 = arith.constant 0 : i32
    %c0_i32_1 = arith.constant 0 : i32
    %c0_i32_2 = arith.constant 0 : i32
    return %c0_i32, %c0_i32_0, %c0_i32_1 : i32, i32, i32
  }
  func.func @transform_2(%arg0: i32, %arg1: i32) -> (i32, i32) {
    %c0_i32 = arith.constant 0 : i32
    %c0_i32_0 = arith.constant 0 : i32
    %c0_i32_1 = arith.constant 0 : i32
    return %c0_i32, %c0_i32_0 : i32, i32
  }
  func.func @transform_3(%arg0: i32, %arg1: i32) -> (i32, i32) {
    %c0_i32 = arith.constant 0 : i32
    %c0_i32_0 = arith.constant 0 : i32
    %c0_i32_1 = arith.constant 0 : i32
    return %c0_i32, %c0_i32_0 : i32, i32
  }
  func.func @transform_4(%arg0: i32, %arg1: i32) -> (i32, i32, i32) {
    %c0_i32 = arith.constant 0 : i32
    %c0_i32_0 = arith.constant 0 : i32
    return %arg0, %arg1, %c0_i32 : i32, i32, i32
  }
}

</mosaic_0001>

<bundles_post_ra>
// kernel: basic_conv_forward.2
= control target key start
LH: loop header
LB: loop body
LE: loop exit
PB: predicated region body
PF: predicated region fallthrough
CT: control target
= control target key end

     0   :  { %s4249_s12 = smov 0   ;;  %s4251_s13 = smov 0   ;;  %s5331_s0 = inlined_call_operand.vmem [shape: bf16[2,1,18,18,4], index: 0, kind: input, shape index: {}]   ;;  %s5332_s1 = inlined_call_operand.vmem [shape: bf16[9,4,8], index: 1, kind: input, shape index: {}]   ;;  %s5333_s2 = inlined_call_operand.vmem [shape: f32[2,8,8], index: 2, kind: output, shape index: {0}]   ;;  %s5334_s3 = inlined_call_operand.vmem [shape: f32[2,8,8], index: 3, kind: output, shape index: {1}]  }
   0x1   :  { %s4253_s14 = smov 0  }
   0x2 LB: > { %s26_s15 = sadd.s32 1, %s4222_s13  ;;  %p3199_p0 = scmp.ge.s32.totalorder %s4226_s14, 1  ;;  %s4226_s14 = sphi %s4253_s14, %s14_s14   ;;  %s4222_s13 = sphi %s4251_s13, %s5413_s13   ;;  %s4218_s12 = sphi %s4249_s12, %s5412_s12  }
   0x3   : > { %p28_p1 = scmp.ge.s32.totalorder %s26_s15, 2  ;;  %p158_p2 = scmp.lt.s32.totalorder %s4226_s14, 3 }
   0x5   : > { %s5415_s15 = smov (%p28_p1, %s26_s15), 0  ;;  %p159_p3 = pnand %p3199_p0, %p158_p2 }
   0x7   : > { %162 = sbr.rel (%p159_p3) target bundleno = 561 (0x231), region = 28 }
   0xe   : > { %v3203_v0 = vld [vmem:[%s5332_s1 + $0x2] sm:$0x3]  ;;  %vm755_vm0 = vcmask 1041408   ;;  %v3335_v1 = vld [vmem:[%s5332_s1 + $0x8] sm:$0x3]  ;;  %p189_p4 = scmp.lt.s32.totalorder %s4218_s12, 1 }
   0xf   : > { %4146 = vmatprep.subr.msk.bf16.mxu1 %vm755_vm0, %v3203_v0  ;;  %4150 = vmatprep.subr.msk.bf16.mxu0 %vm755_vm0, %v3335_v1  ;;  %v757_v2 = vsel %vm755_vm0, %v3203_v0, 0  ;;  %v4277_v3 = vsel %vm755_vm0, %v3335_v1, 0  ;;  %v268_v4 = vld [vmem:[%s5332_s1] sm:$0x3]  ;;  %v3354_v5 = vld [vmem:[%s5332_s1 + $0xa] sm:$0x3] }
  0x10   : > { %5366 = vst [vmem:[#allocation2_spill] sm:$0xff] %v4277_v3  ;;  %3583 = vmatpush3.bf16.msra.mxu1 %v757_v2  ;;  %3719 = vmatpush3.bf16.msra.mxu0 %v4277_v3  ;;  %s5417_s12 = smov (!%p189_p4, %s4218_s12), 1  ;;  %vm269_vm1 = vsmask.f32 3328  ;;  %vm270_vm2 = vsmask.f32 7440 }
  0x11   : > { %4147 = vmatprep.subr.msk.bf16.mxu1 %vm755_vm0, %v268_v4  ;;  %4152 = vmatprep.subr.msk.bf16.mxu0 %vm755_vm0, %v3354_v5  ;;  %s4156_s24 = smul.u32 216, %s5417_s12  ;;  %v4297_v6 = vsel %vm755_vm0, %v268_v4, 0  ;;  %v4300_v7 = vsel %vm755_vm0, %v3354_v5, 0  ;;  %v4305_v8 = vld [vmem:[%s5332_s1 + $0xc] sm:$0x3]  ;;  %vm706_vm3 = vcmask 31744   ;;  %vm4341_vm4 = vmor %vm269_vm1, %vm270_vm2 }
  0x12   : > { %v4329_v20 = vsel %vm755_vm0, %v4305_v8, 0  ;;  %vm1228_vm5 = vcmask 1042432   ;;  %vm1229_vm6 = vcmask 1046532   ;;  %s3201_s17 = sshll.u32 %s5417_s12, 3  ;;  %vm211_vm8 = vcmask 64512  }
  0x13   : > { %s4294_s27 = scalar_lea.vmem %s5331_s0, %s4156_s24  ;;  %vm4522_vm7 = vmor %vm1228_vm5, %vm1229_vm6  ;;  %s5226_s20 = scalar_lea.vmem %s5333_s2, %s3201_s17 }
  0x14   : > { %v4308_v9 = vld [vmem:[%s4294_s27] sm:$0xf]  ;;  %v4311_v10 = vld [vmem:[%s4294_s27 + $0x4] sm:$0xf]  ;;  %v216_v11 = vld [vmem:[%s4294_s27 + $0x8] sm:$0x1]  ;;  %s5233_s23 = scalar_lea.vmem %s5334_s3, %s3201_s17 }
  0x15   : > { %v273_v12 = vshrl.u32 %v4308_v9, 16  ;;  %v276_v13 = vshll.u32 %v4308_v9, 16  ;;  %v282_v14 = vshll.u32 %v4311_v10, 16  ;;  %v286_v15 = vshrl.u32 %v4311_v10, 16  ;;  %v4319_v16 = vld [vmem:[%s4294_s27 + $0xc] sm:$0xf] }
  0x16   : > { %v292_v17 = vshll.u32 %v216_v11, 16  ;;  %v4322_v18 = vld [vmem:[%s4294_s27 + $0x10] sm:$0xf]  ;;  %v4325_v19 = vld [vmem:[%s4294_s27 + $0x14] sm:$0x1]  ;;  %v297_v26 = vshrl.u32 %v4319_v16, 16 }
  0x17   : > { %v275_v21 = vrot.slane %v273_v12, 4  ;;  %v278_v22 = vrot.slane %v276_v13, 5  ;;  %v284_v23 = vrot.slane %v282_v14, 5  ;;  %v288_v24 = vrot.slane %v286_v15, 4  ;;  %v4337_v33 = vld [vmem:[%s4294_s27 + $0x18] sm:$0xf] }
  0x18   : > { %v294_v25 = vrot.slane %v292_v17, 5  ;;  %v300_v27 = vshll.u32 %v4319_v16, 16  ;;  %v306_v28 = vshll.u32 %v4322_v18, 16  ;;  %v310_v31 = vshrl.u32 %v4322_v18, 16  ;;  %v4350_v39 = vld [vmem:[%s4294_s27 + $0x1c] sm:$0xf] }
  0x19   : > { %v279_v29 = vor.u32 %v278_v22, %v275_v21  ;;  %v289_v30 = vor.u32 %v288_v24, %v284_v23  ;;  %v316_v32 = vshll.u32 %v4325_v19, 16  ;;  %v299_v35 = vrot.slane %v297_v26, 4  ;;  %v4354_v46 = vld [vmem:[%s4294_s27 + $0x20] sm:$0x1]  ;;  %v4364_v57 = vld [vmem:[%s4294_s27 + $0x24] sm:$0xf] }
  0x1a   : > { %v302_v36 = vrot.slane %v300_v27, 5  ;;  %v308_v37 = vrot.slane %v306_v28, 5  ;;  %v4347_v38 = vcombine.low %v4319_v16, %v4322_v18  ;;  %v312_v42 = vrot.slane %v310_v31, 4  ;;  %v4369_v62 = vld [vmem:[%s4294_s27 + $0x28] sm:$0xf] }
  0x1b   : > { %v280_v40 = vrot.slane %v279_v29, 4  ;;  %v290_v41 = vrot.slane %v289_v30, 4  ;;  %v318_v43 = vrot.slane %v316_v32, 5  ;;  %v1243_v45 = vrot.slane %v4325_v19, 5  ;;  %v4377_v4 = vld [vmem:[%s4294_s27 + $0x2c] sm:$0x1] }
  0x1c   : > { %v303_v44 = vor.u32 %v302_v36, %v299_v35  ;;  %v321_v47 = vshrl.u32 %v4337_v33, 16  ;;  %v324_v48 = vshll.u32 %v4337_v33, 16  ;;  %v313_v51 = vor.u32 %v312_v42, %v308_v37  ;;  %v4383_v14 = vld [vmem:[%s4294_s27 + $0x30] sm:$0xf]  ;;  %v4395_v28 = vld [vmem:[%s4294_s27 + $0x34] sm:$0xf] }
  0x1d   : > { %v285_v49 = vsel %vm4341_vm4, %v280_v40, %v284_v23  ;;  %v295_v50 = vsel %vm4341_vm4, %v290_v41, %v294_v25  ;;  %v330_v52 = vshll.u32 %v4350_v39, 16  ;;  %v334_v60 = vshrl.u32 %v4350_v39, 16  ;;  %v4390_v23 = vld [vmem:[%s5332_s1 + $0x4] sm:$0x3]  ;;  %v4402_v32 = vld [vmem:[%s4294_s27 + $0x38] sm:$0x1] }
  0x1e   : > { %v3204_v53 = vcombine.low %v285_v49, %v295_v50  ;;  %v304_v54 = vrot.slane %v303_v44, 4  ;;  %v323_v55 = vrot.slane %v321_v47, 4  ;;  %v326_v56 = vrot.slane %v324_v48, 5  ;;  %v4410_v48 = vld [vmem:[%s4294_s27 + $0x3c] sm:$0xf] }
  0x1f   : > { %v314_v58 = vrot.slane %v313_v51, 4  ;;  %v332_v59 = vrot.slane %v330_v52, 5  ;;  %v340_v61 = vshll.u32 %v4354_v46, 16  ;;  %v1247_v1 = vrot.slane %v4350_v39, 5  ;;  %v4418_v52 = vld [vmem:[%s4294_s27 + $0x40] sm:$0xf] }
  0x20   : > { %3584 = vmatprep.mubr.msk.bf16.mxu1 %vm706_vm3, %v3204_v53  ;;  %v309_v63 = vsel %vm4341_vm4, %v304_v54, %v308_v37  ;;  %v327_v0 = vor.u32 %v326_v56, %v323_v55  ;;  %v1250_v2 = vrot.slane %v4354_v46, 5  ;;  %v336_v11 = vrot.slane %v334_v60, 4 }
  0x21   : > { %v319_v5 = vsel %vm4341_vm4, %v314_v58, %v318_v43  ;;  %v342_v12 = vrot.slane %v340_v61, 5  ;;  %v345_v13 = vshrl.u32 %v4364_v57, 16  ;;  %v348_v21 = vshll.u32 %v4364_v57, 16 }
  0x22   : > { %v3205_v15 = vcombine.low %v309_v63, %v319_v5  ;;  %v328_v17 = vrot.slane %v327_v0, 4  ;;  %v354_v22 = vshll.u32 %v4369_v62, 16  ;;  %v337_v24 = vor.u32 %v336_v11, %v332_v59  ;;  %v4430_v5 = vld [vmem:[%s4294_s27 + $0x44] sm:$0x1] }
  0x23   : > { %v347_v25 = vrot.slane %v345_v13, 4  ;;  %v358_v26 = vshrl.u32 %v4369_v62, 16  ;;  %v364_v27 = vshll.u32 %v4377_v4, 16  ;;  %v350_v30 = vrot.slane %v348_v21, 5  ;;  %v4435_v13 = vld [vmem:[%s4294_s27 + $0x48] sm:$0xf] }
  0x24   : > { %3720 = vmatprep.mubr.msk.bf16.mxu0 %vm706_vm3, %v3205_v15  ;;  %3585 = vmatmul.mubr.msk.bf16.vlgmr.msra.gmra.mrb[0].mxu1 %vm706_vm3, %v3205_v15  ;;  %v333_v29 = vsel %vm4341_vm4, %v328_v17, %v332_v59  ;;  %v356_v31 = vrot.slane %v354_v22, 5  ;;  %v369_v35 = vshrl.u32 %v4383_v14, 16  ;;  %v338_v36 = vrot.slane %v337_v24, 4  ;;  %v4442_v24 = vld [vmem:[%s4294_s27 + $0x4c] sm:$0xf] }
  0x25   : > { %3617 = vmatpush3.bf16.msra.mxu1 %v4297_v6  ;;  %v360_v37 = vrot.slane %v358_v26, 4  ;;  %v366_v40 = vrot.slane %v364_v27, 5  ;;  %v372_v41 = vshll.u32 %v4383_v14, 16  ;;  %v351_v42 = vor.u32 %v350_v30, %v347_v25 }
  0x26   : > { %v371_v43 = vrot.slane %v369_v35, 4  ;;  %v378_v44 = vshll.u32 %v4395_v28, 16  ;;  %v382_v47 = vshrl.u32 %v4395_v28, 16  ;;  %4148 = vmatprep.subr.msk.bf16.mxu1 %vm755_vm0, %v4390_v23  ;;  %v343_v49 = vsel %vm4341_vm4, %v338_v36, %v342_v12 }
  0x27   : > { %v361_v6 = vor.u32 %v360_v37, %v356_v31  ;;  %v374_v50 = vrot.slane %v372_v41, 5  ;;  %v388_v51 = vshll.u32 %v4402_v32, 16  ;;  %v4420_v53 = vcombine.low %v333_v29, %v343_v49 }
  0x28   : > { %v352_v54 = vrot.slane %v351_v42, 4  ;;  %v380_v55 = vrot.slane %v378_v44, 5  ;;  %v384_v56 = vrot.slane %v382_v47, 4  ;;  %v393_v61 = vshrl.u32 %v4410_v48, 16  ;;  %v4464_v42 = vld [vmem:[%s4294_s27 + $0x54] sm:$0xf] }
  0x29   : > { %5369 = vst [vmem:[#allocation3_spill] sm:$0xff] %v4420_v53  ;;  %v362_v58 = vrot.slane %v361_v6, 4  ;;  %v375_v59 = vor.u32 %v374_v50, %v371_v43  ;;  %v390_v60 = vrot.slane %v388_v51, 5  ;;  %3721 = vmatmul.mubr.msk.bf16.vlgmr.msra.gmra.mrb[0].mxu0 %vm706_vm3, %v4420_v53  ;;  %3588 = vmatprep.mubr.msk.bf16.mxu1 %vm706_vm3, %v4420_v53  ;;  %v396_v11 = vshll.u32 %v4410_v48, 16  ;;  %5371 = vst [vmem:[#allocation5_spill] sm:$0xff] %v4464_v42 }
  0x2a   : > { %v357_v63 = vsel %vm4341_vm4, %v352_v54, %v356_v31  ;;  %v385_v0 = vor.u32 %v384_v56, %v380_v55  ;;  %v402_v12 = vshll.u32 %v4418_v52, 16  ;;  %3753 = vmatpush3.bf16.msra.mxu0 %v4300_v7  ;;  %v395_v21 = vrot.slane %v393_v61, 4  ;;  %v4469_v6 = vld [vmem:[%s4294_s27 + $0x58] sm:$0xf] }
  0x2b   : > { %v367_v15 = vsel %vm4341_vm4, %v362_v58, %v366_v40  ;;  %v376_v17 = vrot.slane %v375_v59, 4  ;;  %v406_v22 = vshrl.u32 %v4418_v52, 16  ;;  %v398_v27 = vrot.slane %v396_v11, 5  ;;  %4153 = vmatprep.subr.msk.bf16.mxu0 %vm755_vm0, %v4305_v8  ;;  %v4459_v8 = vld [vmem:[%s4294_s27 + $0x50] sm:$0x1] }
  0x2c   : > { %v4444_v25 = vcombine.low %v357_v63, %v367_v15  ;;  %v386_v26 = vrot.slane %v385_v0, 4  ;;  %v404_v29 = vrot.slane %v402_v12, 5  ;;  %v412_v31 = vshll.u32 %v4430_v5, 16  ;;  %v4482_v11 = vld [vmem:[%s4294_s27 + $0x5c] sm:$0x1] }
  0x2d   : > { %v381_v7 = vsel %vm4341_vm4, %v376_v17, %v380_v55  ;;  %v408_v30 = vrot.slane %v406_v22, 4  ;;  %v417_v35 = vshrl.u32 %v4435_v13, 16  ;;  %v399_v37 = vor.u32 %v398_v27, %v395_v21  ;;  %v4486_v15 = vld [vmem:[%s4294_s27 + $0x60] sm:$0xf]  ;;  %v4491_v27 = vld [vmem:[%s4294_s27 + $0x64] sm:$0xf] }
  0x2e   : > { %5370 = vst [vmem:[#allocation4_spill] sm:$0xff] %v4444_v25  ;;  %3724 = vmatprep.mubr.msk.bf16.mxu0 %vm706_vm3, %v4444_v25  ;;  %3589 = vmatmul.mubr.msk.bf16.gmra.mrb[4].mxu1 %vm706_vm3, %v4444_v25  ;;  %v391_v36 = vsel %vm4341_vm4, %v386_v26, %v390_v60  ;;  %v420_v40 = vshll.u32 %v4435_v13, 16  ;;  %v426_v41 = vshll.u32 %v4442_v24, 16  ;;  %v414_v47 = vrot.slane %v412_v31, 5  ;;  %v4703_v25 = vld [vmem:[%s4294_s27 + $0xa8] sm:$0xf] }
  0x2f   : > { %v4466_v43 = vcombine.low %v381_v7, %v391_v36  ;;  %v409_v44 = vor.u32 %v408_v30, %v404_v29  ;;  %v419_v49 = vrot.slane %v417_v35, 4  ;;  %v400_v50 = vrot.slane %v399_v37, 4 }
  0x30   : > { %v422_v51 = vrot.slane %v420_v40, 5  ;;  %v428_v54 = vrot.slane %v426_v41, 5  ;;  %v430_v55 = vshrl.u32 %v4442_v24, 16  ;;  %v436_v58 = vshll.u32 %v4459_v8, 16 }
  0x31   : > { %5372 = vst [vmem:[#allocation6_spill] sm:$0xff] %v4466_v43  ;;  %3592 = vmatprep.mubr.msk.bf16.mxu1 %vm706_vm3, %v4466_v43  ;;  %v410_v56 = vrot.slane %v409_v44, 4  ;;  %v441_v59 = vshrl.u32 %v4464_v42, 16  ;;  %v444_v60 = vshll.u32 %v4464_v42, 16  ;;  %3725 = vmatmul.mubr.msk.bf16.gmra.mrb[4].mxu0 %vm706_vm3, %v4466_v43  ;;  %v405_v61 = vsel %vm4341_vm4, %v400_v50, %v404_v29 }
  0x32   : > { %v423_v63 = vor.u32 %v422_v51, %v419_v49  ;;  %v432_v0 = vrot.slane %v430_v55, 4  ;;  %v450_v12 = vshll.u32 %v4469_v6, 16  ;;  %v438_v21 = vrot.slane %v436_v58, 5 }
  0x33   : > { %v415_v17 = vsel %vm4341_vm4, %v410_v56, %v414_v47  ;;  %v443_v22 = vrot.slane %v441_v59, 4  ;;  %v446_v26 = vrot.slane %v444_v60, 5  ;;  %v454_v36 = vshrl.u32 %v4469_v6, 16  ;;  %v4505_v47 = vld [vmem:[%s4294_s27 + $0x68] sm:$0x1] }
  0x34   : > { %v4493_v7 = vcombine.low %v405_v61, %v415_v17  ;;  %v424_v29 = vrot.slane %v423_v63, 4  ;;  %v433_v30 = vor.u32 %v432_v0, %v428_v54  ;;  %v452_v31 = vrot.slane %v450_v12, 5 }
  0x35   : > { %v447_v35 = vor.u32 %v446_v26, %v443_v22  ;;  %v460_v37 = vshll.u32 %v4482_v11, 16  ;;  %v465_v40 = vshrl.u32 %v4486_v15, 16  ;;  %v468_v49 = vshll.u32 %v4486_v15, 16 }
  0x36   : > { %5373 = vst [vmem:[#allocation7_spill] sm:$0xff] %v4493_v7  ;;  %3728 = vmatprep.mubr.msk.bf16.mxu0 %vm706_vm3, %v4493_v7  ;;  %3593 = vmatmul.mubr.msk.bf16.gmra.mrb[8].mxu1 %vm706_vm3, %v4493_v7  ;;  %v429_v41 = vsel %vm4341_vm4, %v424_v29, %v428_v54  ;;  %v434_v44 = vrot.slane %v433_v30, 4  ;;  %v474_v50 = vshll.u32 %v4491_v27, 16  ;;  %v456_v55 = vrot.slane %v454_v36, 4  ;;  %v4513_v54 = vld [vmem:[%s4294_s27 + $0x6c] sm:$0xf] }
  0x37   : > { %v448_v51 = vrot.slane %v447_v35, 4  ;;  %v462_v56 = vrot.slane %v460_v37, 5  ;;  %v467_v58 = vrot.slane %v465_v40, 4  ;;  %v470_v60 = vrot.slane %v468_v49, 5  ;;  %v4529_v36 = vld [vmem:[%s4294_s27 + $0x70] sm:$0xf] }
  0x38   : > { %v439_v59 = vsel %vm4341_vm4, %v434_v44, %v438_v21  ;;  %v476_v61 = vrot.slane %v474_v50, 5  ;;  %v478_v63 = vshrl.u32 %v4491_v27, 16  ;;  %v457_v17 = vor.u32 %v456_v55, %v452_v31  ;;  %v4680_v7 = vld [vmem:[%s4294_s27 + $0xa0] sm:$0xf] }
  0x39   : > { %v4515_v0 = vcombine.low %v429_v41, %v439_v59  ;;  %v453_v12 = vsel %vm4341_vm4, %v448_v51, %v452_v31  ;;  %v484_v22 = vshll.u32 %v4505_v47, 16  ;;  %v471_v21 = vor.u32 %v470_v60, %v467_v58  ;;  %v4542_v51 = vld [vmem:[%s4294_s27 + $0x74] sm:$0x1] }
  0x3a   : > { %v480_v29 = vrot.slane %v478_v63, 4  ;;  %v3269_v30 = vrot.slane %v4319_v16, 9  ;;  %v1240_v35 = vrot.slane %v4322_v18, 5  ;;  %v458_v31 = vrot.slane %v457_v17, 4 }
  0x3b   : > { %5374 = vst [vmem:[#allocation8_spill] sm:$0xff] %v4515_v0  ;;  %3729 = vmatmul.mubr.msk.bf16.gmra.mrb[8].mxu0 %vm706_vm3, %v4515_v0  ;;  %3596 = vmatprep.mubr.msk.bf16.mxu1 %vm706_vm3, %v4515_v0  ;;  %v486_v37 = vrot.slane %v484_v22, 5  ;;  %v489_v40 = vshrl.u32 %v4513_v54, 16  ;;  %v492_v41 = vshll.u32 %v4513_v54, 16  ;;  %v472_v44 = vrot.slane %v471_v21, 4 }
  0x3c   : > { %v481_v49 = vor.u32 %v480_v29, %v476_v61  ;;  %v1241_v16 = vsel %vm4522_vm7, %v3269_v30, %v1240_v35  ;;  %v1242_v18 = vrot.slane %v1240_v35, 4  ;;  %v463_v50 = vsel %vm4341_vm4, %v458_v31, %v462_v56  ;;  %v4554_v56 = vld [vmem:[%s4294_s27 + $0x78] sm:$0xf]  ;;  %v4570_v31 = vld [vmem:[%s4294_s27 + $0x7c] sm:$0xf] }
  0x3d   : > { %v491_v55 = vrot.slane %v489_v40, 4  ;;  %v494_v58 = vrot.slane %v492_v41, 5  ;;  %v498_v59 = vshll.u32 %v4529_v36, 16  ;;  %v4545_v60 = vcombine.low %v453_v12, %v463_v50 }
  0x3e   : > { %v477_v63 = vsel %vm4341_vm4, %v472_v44, %v476_v61  ;;  %v482_v17 = vrot.slane %v481_v49, 4  ;;  %v1244_v22 = vsel %vm4522_vm7, %v1242_v18, %v1243_v45  ;;  %v502_v35 = vshrl.u32 %v4529_v36, 16  ;;  %v4575_v49 = vld [vmem:[%s4294_s27 + $0x80] sm:$0x1] }
  0x3f   : > { %5377 = vst [vmem:[#allocation9_spill] sm:$0xff] %v4545_v60  ;;  %v4556_v21 = vcombine.low %v1241_v16, %v1244_v22  ;;  %v495_v29 = vor.u32 %v494_v58, %v491_v55  ;;  %v500_v30 = vrot.slane %v498_v59, 5  ;;  %3732 = vmatprep.mubr.msk.bf16.mxu0 %vm706_vm3, %v4545_v60  ;;  %3597 = vmatmul.mubr.msk.bf16.gmra.mrb[12].mxu1 %vm706_vm3, %v4545_v60  ;;  %v508_v45 = vshll.u32 %v4542_v51, 16  ;;  %v4673_v60 = vld [vmem:[%s4294_s27 + $0x9c] sm:$0xf] }
  0x40   : > { %v487_v19 = vsel %vm4341_vm4, %v482_v17, %v486_v37  ;;  %v3270_v61 = vrot.slane %v4337_v33, 9  ;;  %v1249_v12 = vrot.slane %v1247_v1, 4  ;;  %v504_v44 = vrot.slane %v502_v35, 4 }
  0x41   : > { %5378 = vst [vmem:[#allocation10_spill] sm:$0xff] %v4556_v21  ;;  %v4572_v40 = vcombine.low %v477_v63, %v487_v19  ;;  %v496_v41 = vrot.slane %v495_v29, 4  ;;  %v513_v16 = vshrl.u32 %v4554_v56, 16  ;;  %v510_v18 = vrot.slane %v508_v45, 5  ;;  %v4601_v29 = vld [vmem:[%s4294_s27 + $0x84] sm:$0xf] }
  0x42   : > { %v1248_v37 = vsel %vm4522_vm7, %v3270_v61, %v1247_v1  ;;  %v1251_v50 = vsel %vm4522_vm7, %v1249_v12, %v1250_v2  ;;  %v516_v55 = vshll.u32 %v4554_v56, 16  ;;  %v505_v59 = vor.u32 %v504_v44, %v500_v30 }
  0x43   : > { %5379 = vst [vmem:[#allocation11_spill] sm:$0xff] %v4572_v40  ;;  %3733 = vmatmul.mubr.msk.bf16.gmra.mrb[12].mxu0 %vm706_vm3, %v4572_v40  ;;  %3600 = vmatprep.mubr.msk.bf16.mxu1 %vm706_vm3, %v4572_v40  ;;  %v501_v58 = vsel %vm4341_vm4, %v496_v41, %v500_v30  ;;  %v4593_v63 = vcombine.low %v1248_v37, %v1251_v50  ;;  %v515_v1 = vrot.slane %v513_v16, 4  ;;  %v522_v2 = vshll.u32 %v4570_v31, 16  ;;  %v4607_v16 = vld [vmem:[%s4294_s27 + $0x88] sm:$0xf] }
  0x44   : > { %3754 = vmatprep.mubr.msk.bf16.mxu0 %vm706_vm3, %v4556_v21  ;;  %v518_v46 = vrot.slane %v516_v55, 5  ;;  %v526_v17 = vshrl.u32 %v4570_v31, 16  ;;  %v532_v22 = vshll.u32 %v4575_v49, 16  ;;  %v506_v35 = vrot.slane %v505_v59, 4 }
  0x45   : > { %5380 = vst [vmem:[#allocation12_spill] sm:$0xff] %v4593_v63  ;;  %v3271_v30 = vrot.slane %v4364_v57, 9  ;;  %v1254_v19 = vrot.slane %v4369_v62, 5  ;;  %v1257_v45 = vrot.slane %v4377_v4, 5  ;;  %v524_v12 = vrot.slane %v522_v2, 5 }
  0x46   : > { %v519_v61 = vor.u32 %v518_v46, %v515_v1  ;;  %v528_v41 = vrot.slane %v526_v17, 4  ;;  %v534_v44 = vrot.slane %v532_v22, 5  ;;  %v511_v37 = vsel %vm4341_vm4, %v506_v35, %v510_v18  ;;  %v4617_v1 = vld [vmem:[%s4294_s27 + $0x8c] sm:$0x1] }
  0x47   : > { %v1255_v50 = vsel %vm4522_vm7, %v3271_v30, %v1254_v19  ;;  %v1256_v55 = vrot.slane %v1254_v19, 4  ;;  %v537_v59 = vshrl.u32 %v4601_v29, 16  ;;  %v4614_v3 = vcombine.low %v501_v58, %v511_v37 }
  0x48   : > { %v520_v40 = vrot.slane %v519_v61, 4  ;;  %v529_v4 = vor.u32 %v528_v41, %v524_v12  ;;  %v540_v46 = vshll.u32 %v4601_v29, 16  ;;  %v546_v18 = vshll.u32 %v4607_v16, 16  ;;  %v4631_v61 = vld [vmem:[%s4294_s27 + $0x90] sm:$0xf] }
  0x49   : > { %5381 = vst [vmem:[#allocation13_spill] sm:$0xff] %v4614_v3  ;;  %v1258_v2 = vsel %vm4522_vm7, %v1256_v55, %v1257_v45  ;;  %v539_v17 = vrot.slane %v537_v59, 4  ;;  %v550_v22 = vshrl.u32 %v4607_v16, 16  ;;  %3601 = vmatmul.mubr.msk.bf16.gmra.mrb[16].mxu1 %vm706_vm3, %v4614_v3  ;;  %v4636_v45 = vld [vmem:[%s5332_s1 + $0xe] sm:$0x3]  ;;  %v1261_v59 = vrot.slane %v4395_v28, 5 }
  0x4a   : > { %v525_v58 = vsel %vm4341_vm4, %v520_v40, %v524_v12  ;;  %v530_v35 = vrot.slane %v529_v4, 4  ;;  %v4628_v30 = vcombine.low %v1255_v50, %v1258_v2  ;;  %v542_v19 = vrot.slane %v540_v46, 5  ;;  %5383 = vst [vmem:[#allocation15_spill] sm:$0xff] %v4636_v45  ;;  %v4650_v46 = vld [vmem:[%s4294_s27 + $0x94] sm:$0xf] }
  0x4b   : > { %3755 = vmatmul.mubr.msk.bf16.vlgmr.msra.gmra.mrb[0].mxu0 %vm706_vm3, %v4593_v63  ;;  %v548_v41 = vrot.slane %v546_v18, 5  ;;  %v552_v37 = vrot.slane %v550_v22, 4  ;;  %v556_v40 = vshll.u32 %v4617_v1, 16  ;;  %v3272_v12 = vrot.slane %v4383_v14, 9  ;;  %v4655_v3 = vld [vmem:[%s4294_s27 + $0x98] sm:$0x1] }
  0x4c   : > { %5382 = vst [vmem:[#allocation14_spill] sm:$0xff] %v4628_v30  ;;  %3787 = vmatpush3.bf16.msra.mxu0 %v4329_v20  ;;  %v535_v50 = vsel %vm4341_vm4, %v530_v35, %v534_v44  ;;  %3758 = vmatprep.mubr.msk.bf16.mxu0 %vm706_vm3, %v4628_v30  ;;  %v543_v55 = vor.u32 %v542_v19, %v539_v17  ;;  %v1264_v4 = vrot.slane %v4402_v32, 5  ;;  %v561_v20 = vshrl.u32 %v4631_v61, 16 }
  0x4d   : > { %v4652_v2 = vcombine.low %v525_v58, %v535_v50  ;;  %v553_v18 = vor.u32 %v552_v37, %v548_v41  ;;  %v558_v22 = vrot.slane %v556_v40, 5  ;;  %4154 = vmatprep.subr.msk.bf16.mxu0 %vm755_vm0, %v4636_v45  ;;  %v1262_v17 = vsel %vm4522_vm7, %v3272_v12, %v1261_v59 }
  0x4e   : > { %v544_v44 = vrot.slane %v543_v55, 4  ;;  %v1263_v35 = vrot.slane %v1261_v59, 4  ;;  %v564_v32 = vshll.u32 %v4631_v61, 16  ;;  %v563_v19 = vrot.slane %v561_v20, 4 }
  0x4f   : > { %5384 = vst [vmem:[#allocation16_spill] sm:$0xff] %v4652_v2  ;;  %3604 = vmatprep.mubr.msk.bf16.mxu1 %vm706_vm3, %v4652_v2  ;;  %v554_v58 = vrot.slane %v553_v18, 4  ;;  %v570_v37 = vshll.u32 %v4650_v46, 16  ;;  %v574_v40 = vshrl.u32 %v4650_v46, 16  ;;  %v580_v59 = vshll.u32 %v4655_v3, 16 }
  0x50   : > { %v549_v50 = vsel %vm4341_vm4, %v544_v44, %v548_v41  ;;  %v1265_v55 = vsel %vm4522_vm7, %v1263_v35, %v1264_v4  ;;  %v566_v12 = vrot.slane %v564_v32, 5  ;;  %v3273_v4 = vrot.slane %v4410_v48, 9 }
  0x51   : > { %v559_v2 = vsel %vm4341_vm4, %v554_v58, %v558_v22  ;;  %v4677_v18 = vcombine.low %v1262_v17, %v1265_v55  ;;  %v572_v20 = vrot.slane %v570_v37, 5  ;;  %v576_v0 = vrot.slane %v574_v40, 4  ;;  %v4693_v58 = vld [vmem:[%s4294_s27 + $0xa4] sm:$0x1] }
  0x52   : > { %v4682_v43 = vcombine.low %v549_v50, %v559_v2  ;;  %v567_v41 = vor.u32 %v566_v12, %v563_v19  ;;  %v582_v44 = vrot.slane %v580_v59, 5  ;;  %v1268_v32 = vrot.slane %v4418_v52, 5 }
  0x53   : > { %5385 = vst [vmem:[#allocation17_spill] sm:$0xff] %v4677_v18  ;;  %3759 = vmatmul.mubr.msk.bf16.gmra.mrb[4].mxu0 %vm706_vm3, %v4677_v18  ;;  %v577_v35 = vor.u32 %v576_v0, %v572_v20  ;;  %v1271_v22 = vrot.slane %v4430_v5, 5  ;;  %v585_v17 = vshrl.u32 %v4673_v60, 16  ;;  %v588_v19 = vshll.u32 %v4673_v60, 16 }
  0x54   : > { %5386 = vst [vmem:[#allocation18_spill] sm:$0xff] %v4682_v43  ;;  %3605 = vmatmul.mubr.msk.bf16.gmra.mrb[20].mxu1 %vm706_vm3, %v4682_v43  ;;  %v568_v2 = vrot.slane %v567_v41, 4  ;;  %v594_v37 = vshll.u32 %v4680_v7, 16  ;;  %v598_v0 = vshrl.u32 %v4680_v7, 16  ;;  %v1269_v5 = vsel %vm4522_vm7, %v3273_v4, %v1268_v32 }
  0x55   : > { %v578_v40 = vrot.slane %v577_v35, 4  ;;  %v1270_v50 = vrot.slane %v1268_v32, 4  ;;  %v587_v55 = vrot.slane %v585_v17, 4  ;;  %v590_v59 = vrot.slane %v588_v19, 5  ;;  %v4712_v32 = vld [vmem:[%s4294_s27 + $0xac] sm:$0xf] }
  0x56   : > { %v573_v12 = vsel %vm4341_vm4, %v568_v2, %v572_v20  ;;  %v596_v41 = vrot.slane %v594_v37, 5  ;;  %v600_v43 = vrot.slane %v598_v0, 4  ;;  %v604_v35 = vshll.u32 %v4693_v58, 16 }
  0x57   : > { %v583_v53 = vsel %vm4341_vm4, %v578_v40, %v582_v44  ;;  %v1272_v18 = vsel %vm4522_vm7, %v1270_v50, %v1271_v22  ;;  %v3274_v4 = vrot.slane %v4435_v13, 9  ;;  %v591_v2 = vor.u32 %v590_v59, %v587_v55 }
  0x58   : > { %v4714_v17 = vcombine.low %v573_v12, %v583_v53  ;;  %v4716_v20 = vcombine.low %v1269_v5, %v1272_v18  ;;  %v601_v19 = vor.u32 %v600_v43, %v596_v41  ;;  %v606_v37 = vrot.slane %v604_v35, 5  ;;  %v4726_v18 = vld [vmem:[%s4294_s27 + $0xb0] sm:$0x1] }
  0x59   : > { %v1275_v0 = vrot.slane %v4442_v24, 5  ;;  %v1278_v44 = vrot.slane %v4459_v8, 5  ;;  %v609_v22 = vshrl.u32 %v4703_v25, 16  ;;  %v592_v53 = vrot.slane %v591_v2, 4 }
  0x5a   : > { %5387 = vst [vmem:[#allocation19_spill] sm:$0xff] %v4714_v17  ;;  %5388 = vst [vmem:[#allocation20_spill] sm:$0xff] %v4716_v20  ;;  %3608 = vmatprep.mubr.msk.bf16.mxu1 %vm706_vm3, %v4714_v17  ;;  %3762 = vmatprep.mubr.msk.bf16.mxu0 %vm706_vm3, %v4716_v20  ;;  %v602_v40 = vrot.slane %v601_v19, 4  ;;  %v612_v43 = vshll.u32 %v4703_v25, 16  ;;  %v618_v5 = vshll.u32 %v4712_v32, 16  ;;  %v622_v12 = vshrl.u32 %v4712_v32, 16 }
  0x5b   : > { %v1276_v8 = vsel %vm4522_vm7, %v3274_v4, %v1275_v0  ;;  %v1277_v50 = vrot.slane %v1275_v0, 4  ;;  %v611_v55 = vrot.slane %v609_v22, 4  ;;  %v597_v59 = vsel %vm4341_vm4, %v592_v53, %v596_v41  ;;  %v4738_v17 = vld [vmem:[%s4294_s27 + $0xb4] sm:$0xf]  ;;  %v4750_v53 = vld [vmem:[%s4294_s27 + $0xb8] sm:$0xf] }
  0x5c   : > { %v607_v35 = vsel %vm4341_vm4, %v602_v40, %v606_v37  ;;  %v614_v2 = vrot.slane %v612_v43, 5  ;;  %v620_v19 = vrot.slane %v618_v5, 5  ;;  %v624_v0 = vrot.slane %v622_v12, 4 }
  0x5d   : > { %v4740_v20 = vcombine.low %v597_v59, %v607_v35  ;;  %v1279_v4 = vsel %vm4522_vm7, %v1277_v50, %v1278_v44  ;;  %v628_v22 = vshll.u32 %v4726_v18, 16  ;;  %v3275_v41 = vrot.slane %v4464_v42, 9  ;;  %v4756_v44 = vld [vmem:[%s4294_s27 + $0xbc] sm:$0x1] }
  0x5e   : > { %v4745_v30 = vcombine.low %v1276_v8, %v1279_v4  ;;  %v615_v63 = vor.u32 %v614_v2, %v611_v55  ;;  %v1282_v37 = vrot.slane %v4469_v6, 5  ;;  %v625_v40 = vor.u32 %v624_v0, %v620_v19 }
  0x5f   : > { %5389 = vst [vmem:[#allocation21_spill] sm:$0xff] %v4740_v20  ;;  %3609 = vmatmul.mubr.msk.bf16.gmra.mrb[24].mxu1 %vm706_vm3, %v4740_v20  ;;  %v630_v43 = vrot.slane %v628_v22, 5  ;;  %v1285_v5 = vrot.slane %v4482_v11, 5  ;;  %v633_v50 = vshrl.u32 %v4738_v17, 16  ;;  %v636_v59 = vshll.u32 %v4738_v17, 16 }
  0x60   : > { %5390 = vst [vmem:[#allocation22_spill] sm:$0xff] %v4745_v30  ;;  %3763 = vmatmul.mubr.msk.bf16.gmra.mrb[8].mxu0 %vm706_vm3, %v4745_v30  ;;  %v616_v8 = vrot.slane %v615_v63, 4  ;;  %v1283_v55 = vsel %vm4522_vm7, %v3275_v41, %v1282_v37  ;;  %v1284_v12 = vrot.slane %v1282_v37, 4  ;;  %v626_v35 = vrot.slane %v625_v40, 4 }
  0x61   : > { %v635_v2 = vrot.slane %v633_v50, 4  ;;  %v642_v4 = vshll.u32 %v4750_v53, 16  ;;  %v646_v11 = vshrl.u32 %v4750_v53, 16  ;;  %v638_v20 = vrot.slane %v636_v59, 5 }
  0x62   : > { %v621_v0 = vsel %vm4341_vm4, %v616_v8, %v620_v19  ;;  %v1286_v22 = vsel %vm4522_vm7, %v1284_v12, %v1285_v5  ;;  %v652_v63 = vshll.u32 %v4756_v44, 16  ;;  %v631_v41 = vsel %vm4341_vm4, %v626_v35, %v630_v43 }
  0x63   : > { %v4773_v37 = vcombine.low %v1283_v55, %v1286_v22  ;;  %v644_v40 = vrot.slane %v642_v4, 5  ;;  %v648_v50 = vrot.slane %v646_v11, 4  ;;  %v4775_v30 = vcombine.low %v621_v0, %v631_v41 }
  0x64   : > { %v639_v21 = vor.u32 %v638_v20, %v635_v2  ;;  %v654_v45 = vrot.slane %v652_v63, 5  ;;  %v3276_v42 = vrot.slane %v4486_v15, 9  ;;  %v1289_v5 = vrot.slane %v4491_v27, 5 }
  0x65   : > { %3766 = vmatprep.mubr.msk.bf16.mxu0 %vm706_vm3, %v4773_v37  ;;  %v649_v19 = vor.u32 %v648_v50, %v644_v40  ;;  %v1292_v8 = vrot.slane %v4505_v47, 5  ;;  %v3277_v43 = vrot.slane %v4513_v54, 9  ;;  %3612 = vmatprep.mubr.msk.bf16.mxu1 %vm706_vm3, %v4775_v30  ;;  %v3236_v20 = vcombine.low %v4308_v9, %v4311_v10 }
  0x66   : > { %v640_v55 = vrot.slane %v639_v21, 4  ;;  %v1296_v12 = vrot.slane %v4529_v36, 5  ;;  %v1299_v59 = vrot.slane %v4542_v51, 5  ;;  %v1290_v2 = vsel %vm4522_vm7, %v3276_v42, %v1289_v5 }
  0x67   : > { %v650_v35 = vrot.slane %v649_v19, 4  ;;  %v1291_v4 = vrot.slane %v1289_v5, 4  ;;  %v1303_v47 = vrot.slane %v4570_v31, 5  ;;  %v3278_v9 = vrot.slane %v4554_v56, 9 }
  0x68   : > { %v645_v11 = vsel %vm4341_vm4, %v640_v55, %v644_v40  ;;  %v1297_v21 = vsel %vm4522_vm7, %v3277_v43, %v1296_v12  ;;  %v1298_v0 = vrot.slane %v1296_v12, 4  ;;  %v1306_v42 = vrot.slane %v4575_v49, 5 }
  0x69   : > { %v655_v10 = vsel %vm4341_vm4, %v650_v35, %v654_v45  ;;  %v1293_v51 = vsel %vm4522_vm7, %v1291_v4, %v1292_v8  ;;  %v1305_v22 = vrot.slane %v1303_v47, 4  ;;  %v3279_v19 = vrot.slane %v4601_v29, 9 }
  0x6a   : > { %v4802_v63 = vcombine.low %v645_v11, %v655_v10  ;;  %v4804_v41 = vcombine.low %v1290_v2, %v1293_v51  ;;  %v1300_v40 = vsel %vm4522_vm7, %v1298_v0, %v1299_v59  ;;  %v1310_v5 = vrot.slane %v4607_v16, 5 }
  0x6b   : > { %v4808_v50 = vcombine.low %v1297_v21, %v1300_v40  ;;  %v1313_v49 = vrot.slane %v4617_v1, 5  ;;  %v1304_v45 = vsel %vm4522_vm7, %v3278_v9, %v1303_v47  ;;  %v1307_v8 = vsel %vm4522_vm7, %v1305_v22, %v1306_v42 }
  0x6c   : > { %3613 = vmatmul.mubr.msk.bf16.gmra.mrb[28].mxu1 %vm706_vm3, %v4802_v63  ;;  %3767 = vmatmul.mubr.msk.bf16.gmra.mrb[12].mxu0 %vm706_vm3, %v4804_v41  ;;  %v1312_v43 = vrot.slane %v1310_v5, 4  ;;  %v1317_v55 = vrot.slane %v4650_v46, 5  ;;  %v1324_v12 = vrot.slane %v4680_v7, 5  ;;  %v1311_v59 = vsel %vm4522_vm7, %v3279_v19, %v1310_v5 }
  0x6d   : > { %3618 = vmatprep.mubr.msk.bf16.mxu1 %vm706_vm3, %v3236_v20  ;;  %3770 = vmatprep.mubr.msk.bf16.mxu0 %vm706_vm3, %v4808_v50  ;;  %v4830_v20 = vcombine.low %v1304_v45, %v1307_v8  ;;  %v3280_v35 = vrot.slane %v4631_v61, 9  ;;  %v1320_v4 = vrot.slane %v4655_v3, 5  ;;  %v4836_v47 = vcombine.low %v4337_v33, %v4350_v39  ;;  %v4848_v3 = vld [vmem:[%s5332_s1 + $0x6] sm:$0x3] }
  0x6e   : > { %v1314_v1 = vsel %vm4522_vm7, %v1312_v43, %v1313_v49  ;;  %v1319_v2 = vrot.slane %v1317_v55, 4  ;;  %v3281_v11 = vrot.slane %v4673_v60, 9  ;;  %v1442_v21 = vsel %vm755_vm0, %v4390_v23, 0 }
  0x6f   : > { %v4841_v0 = vcombine.low %v1311_v59, %v1314_v1  ;;  %v1326_v9 = vrot.slane %v1324_v12, 4  ;;  %v1327_v10 = vrot.slane %v4693_v58, 5  ;;  %v1331_v51 = vrot.slane %v4712_v32, 5 }
  0x70   : > { %v1318_v33 = vsel %vm4522_vm7, %v3280_v35, %v1317_v55  ;;  %v1321_v39 = vsel %vm4522_vm7, %v1319_v2, %v1320_v4  ;;  %v4862_v23 = vcombine.low %v4364_v57, %v4369_v62  ;;  %v1325_v58 = vsel %vm4522_vm7, %v3281_v11, %v1324_v12 }
  0x71   : > { %v4868_v22 = vcombine.low %v4486_v15, %v4491_v27  ;;  %v1328_v42 = vsel %vm4522_vm7, %v1326_v9, %v1327_v10  ;;  %v3282_v40 = vrot.slane %v4703_v25, 9  ;;  %v1338_v19 = vrot.slane %v4750_v53, 5 }
  0x72   : > { %v4878_v57 = vcombine.low %v4513_v54, %v4529_v36  ;;  %v4882_v62 = vcombine.low %v1318_v33, %v1321_v39  ;;  %v1333_v15 = vrot.slane %v1331_v51, 4  ;;  %v1334_v27 = vrot.slane %v4726_v18, 5  ;;  %v264_v18 = vld [vmem:[%s4294_s27 + $0xc8] sm:$0x1] }
  0x73   : > { %v4887_v5 = vcombine.low %v4554_v56, %v4570_v31  ;;  %v4891_v49 = vcombine.low %v4601_v29, %v4607_v16  ;;  %v4895_v54 = vcombine.low %v4631_v61, %v4650_v46  ;;  %v4899_v36 = vcombine.low %v4673_v60, %v4680_v7  ;;  %v4918_v61 = vld [vmem:[%s4294_s27 + $0xc4] sm:$0xf] }
  0x74   : > { %3619 = vmatmul.mubr.msk.bf16.vlgmr.msra.gmra.mrb[0].mxu1 %vm706_vm3, %v4347_v38  ;;  %3771 = vmatmul.mubr.msk.bf16.gmra.mrb[16].mxu0 %vm706_vm3, %v4830_v20  ;;  %v4903_v45 = vcombine.low %v4703_v25, %v4712_v32  ;;  %v4907_v56 = vcombine.low %v4383_v14, %v4395_v28  ;;  %v4909_v31 = vcombine.low %v1325_v58, %v1328_v42  ;;  %v3283_v16 = vrot.slane %v4738_v17, 9  ;;  %v5391_v42 = vld [vmem:[#allocation5_spill] sm:$0xff] }
  0x75   : > { %3651 = vmatpush3.bf16.msra.mxu1 %v1442_v21  ;;  %3622 = vmatprep.mubr.msk.bf16.mxu1 %vm706_vm3, %v4836_v47  ;;  %v4913_v29 = vcombine.low %v4738_v17, %v4750_v53  ;;  %v1340_v7 = vrot.slane %v1338_v19, 4  ;;  %v1341_v60 = vrot.slane %v4756_v44, 5  ;;  %v1332_v14 = vsel %vm4522_vm7, %v3282_v40, %v1331_v51  ;;  %v4938_v17 = vld [vmem:[%s4294_s27 + $0xc0] sm:$0xf] }
  0x76   : > { %3774 = vmatprep.mubr.msk.bf16.mxu0 %vm706_vm3, %v4841_v0  ;;  %4149 = vmatprep.subr.msk.bf16.mxu1 %vm755_vm0, %v4848_v3  ;;  %v1335_v28 = vsel %vm4522_vm7, %v1333_v15, %v1334_v27  ;;  %v2074_v25 = vrot.slane %v4918_v61, 5  ;;  %v1339_v46 = vsel %vm4522_vm7, %v3283_v16, %v1338_v19  ;;  %v4943_v53 = vcombine.low %v4410_v48, %v4418_v52 }
  0x77   : > { %v1342_v32 = vsel %vm4522_vm7, %v1340_v7, %v1341_v60  ;;  %v4945_v44 = vcombine.low %v1332_v14, %v1335_v28  ;;  %v4949_v8 = vcombine.low %v4435_v13, %v4442_v24  ;;  %v1844_v43 = vshrl.u32 %v4938_v17, 16  ;;  %v3409_v60 = vld [vmem:[%s5332_s1 + $0x10] sm:$0x3]  ;;  %v4200_v14 = vld [vmem:[%s4294_s27 + $0x4] sm:$0xf] }
  0x78   : > { %v1847_v55 = vshll.u32 %v4938_v17, 16  ;;  %v1853_v12 = vshll.u32 %v4918_v61, 16  ;;  %v1857_v59 = vshrl.u32 %v4918_v61, 16  ;;  %v4955_v1 = vcombine.low %v1339_v46, %v1342_v32  ;;  %v4202_v32 = vld [vmem:[%s4294_s27] sm:$0xf] }
  0x79   : > { %v3353_v35 = vrot.slane %v4938_v17, 9  ;;  %v2076_v48 = vrot.slane %v2074_v25, 4  ;;  %v2077_v52 = vrot.slane %v264_v18, 5  ;;  %v1846_v2 = vrot.slane %v1844_v43, 4 }
  0x7a   : > { %v1849_v4 = vrot.slane %v1847_v55, 5  ;;  %v1855_v11 = vrot.slane %v1853_v12, 5  ;;  %v1859_v21 = vrot.slane %v1857_v59, 4  ;;  %v1863_v9 = vshll.u32 %v264_v18, 16 }
  0x7b   : > { %v2075_v10 = vsel %vm4522_vm7, %v3353_v35, %v2074_v25  ;;  %v2078_v51 = vsel %vm4522_vm7, %v2076_v48, %v2077_v52  ;;  %v4972_v40 = vcombine.low %v5391_v42, %v4469_v6  ;;  %v5392_v6 = vld [vmem:[#allocation15_spill] sm:$0xff]  ;;  %v1233_v28 = vrot.slane %v4200_v14, 5  ;;  %v5393_v48 = vld [vmem:[#allocation10_spill] sm:$0xff]  ;;  %v5394_v52 = vld [vmem:[#allocation12_spill] sm:$0xff] }
  0x7c   : > { %3623 = vmatmul.mubr.msk.bf16.gmra.mrb[4].mxu1 %vm706_vm3, %v4862_v23  ;;  %3775 = vmatmul.mubr.msk.bf16.gmra.mrb[20].mxu0 %vm706_vm3, %v4882_v62  ;;  %v1850_v13 = vor.u32 %v1849_v4, %v1846_v2  ;;  %v1860_v24 = vor.u32 %v1859_v21, %v1855_v11  ;;  %v1865_v58 = vrot.slane %v1863_v9, 5  ;;  %v4974_v19 = vcombine.low %v2075_v10, %v2078_v51  ;;  %v4201_v25 = vld [vmem:[%s4294_s27 + $0x8] sm:$0x1]  ;;  %v5396_v4 = vld [vmem:[#allocation17_spill] sm:$0xff]  ;;  %v5397_v21 = vld [vmem:[#allocation20_spill] sm:$0xff] }
  0x7d   : > { %3626 = vmatprep.mubr.msk.bf16.mxu1 %vm706_vm3, %v4907_v56  ;;  %3778 = vmatprep.mubr.msk.bf16.mxu0 %vm706_vm3, %v4909_v31  ;;  %v2522_v7 = vsel %vm755_vm0, %v5392_v6, 0  ;;  %v1236_v46 = vrot.slane %v4201_v25, 5  ;;  %v3268_v18 = vrot.slane %v4202_v32, 9  ;;  %v1235_v43 = vrot.slane %v1233_v28, 4  ;;  %v4203_v2 = vld [vmem:[%s5332_s1 + $0x8] sm:$0x3] }
  0x7e   : > { %v1851_v33 = vrot.slane %v1850_v13, 4  ;;  %v1861_v39 = vrot.slane %v1860_v24, 4  ;;  %v1648_v35 = vsel %vm755_vm0, %v4848_v3, 0  ;;  %v5395_v3 = vld [vmem:[#allocation14_spill] sm:$0xff]  ;;  %v5069_v24 = vld [vmem:[%s4294_s27 + $0xcc] sm:$0xf] }
  0x7f   : > { %v1234_v55 = vsel %vm4522_vm7, %v3268_v18, %v1233_v28  ;;  %v1237_v12 = vsel %vm4522_vm7, %v1235_v43, %v1236_v46  ;;  %v5398_v13 = vld [vmem:[#allocation22_spill] sm:$0xff]  ;;  %v5072_v9 = vld [vmem:[%s4294_s27 + $0xd0] sm:$0xf]  ;;  %v2734_v10 = vsel %vm755_vm0, %v3409_v60, 0  ;;  %v5404_v42 = vld [vmem:[#allocation9_spill] sm:$0xff]  ;;  %v2493_v14 = vshll.u32 %v5069_v24, 16 }
  0x80   : > { %v1856_v15 = vsel %vm4341_vm4, %v1851_v33, %v1855_v11  ;;  %v1866_v27 = vsel %vm4341_vm4, %v1861_v39, %v1865_v58  ;;  %v3285_v59 = vcombine.low %v1234_v55, %v1237_v12  ;;  %v5058_v11 = vcombine.low %v4938_v17, %v4918_v61  ;;  %v5399_v17 = vld [vmem:[#allocation3_spill] sm:$0xff]  ;;  %v5400_v51 = vld [vmem:[#allocation4_spill] sm:$0xff]  ;;  %v5401_v33 = vld [vmem:[#allocation6_spill] sm:$0xff] }
  0x81   : > { %v4980_v16 = vcombine.low %v1856_v15, %v1866_v27  ;;  %v3373_v61 = vcombine.low %v5069_v24, %v5072_v9  ;;  %v5402_v39 = vld [vmem:[#allocation7_spill] sm:$0xff]  ;;  %v5403_v58 = vld [vmem:[#allocation8_spill] sm:$0xff]  ;;  %v5406_v27 = vld [vmem:[#allocation13_spill] sm:$0xff]  ;;  %v2503_v28 = vshrl.u32 %v5072_v9, 16  ;;  %v2495_v32 = vrot.slane %v2493_v14, 5 }
  0x82   : > { %v5405_v15 = vld [vmem:[#allocation11_spill] sm:$0xff]  ;;  %v5407_v6 = vld [vmem:[#allocation16_spill] sm:$0xff]  ;;  %v5409_v25 = vld [vmem:[#allocation2_spill] sm:$0xff]  ;;  %v2720_v34 = vrot.slane %v5072_v9, 5 }
  0x83   : > { %v5410_v46 = vld [vmem:[#allocation19_spill] sm:$0xff]  ;;  %v2505_v43 = vrot.slane %v2503_v28, 4  ;;  %v267_v55 = vld [vmem:[%s4294_s27 + $0xd4] sm:$0x1]  ;;  %v5411_v12 = vld [vmem:[#allocation21_spill] sm:$0xff] }
  0x84   : > { %3627 = vmatmul.mubr.msk.bf16.gmra.mrb[8].mxu1 %vm706_vm3, %v4943_v53  ;;  %3779 = vmatmul.mubr.msk.bf16.gmra.mrb[24].mxu0 %vm706_vm3, %v4945_v44 }
  0x85   : > { %3630 = vmatprep.mubr.msk.bf16.mxu1 %vm706_vm3, %v4949_v8  ;;  %3782 = vmatprep.mubr.msk.bf16.mxu0 %vm706_vm3, %v4955_v1 }
  0x8c   : > { %3631 = vmatmul.mubr.msk.bf16.gmra.mrb[12].mxu1 %vm706_vm3, %v4972_v40  ;;  %3783 = vmatmul.mubr.msk.bf16.gmra.mrb[28].mxu0 %vm706_vm3, %v4974_v19 }
  0x8d   : > { %3634 = vmatprep.mubr.msk.bf16.mxu1 %vm706_vm3, %v4868_v22  ;;  %3788 = vmatprep.mubr.msk.bf16.mxu0 %vm706_vm3, %v4836_v47 }
  0x94   : > { %3635 = vmatmul.mubr.msk.bf16.gmra.mrb[16].mxu1 %vm706_vm3, %v4878_v57  ;;  %3789 = vmatmul.mubr.msk.bf16.vlgmr.msra.gmra.mrb[0].mxu0 %vm706_vm3, %v4862_v23 }
  0x95   : > { %3821 = vmatpush3.bf16.msra.mxu0 %v2522_v7  ;;  %3638 = vmatprep.mubr.msk.bf16.mxu1 %vm706_vm3, %v4887_v5  ;;  %v5408_v7 = vld [vmem:[#allocation18_spill] sm:$0xff] }
  0x96   : > { %3792 = vmatprep.mubr.msk.bf16.mxu0 %vm706_vm3, %v4907_v56  ;;  %4155 = vmatprep.subr.msk.bf16.mxu0 %vm755_vm0, %v3409_v60  ;;  %v2490_v60 = vshrl.u32 %v5069_v24, 16 }
  0x9c   : > { %3639 = vmatmul.mubr.msk.bf16.gmra.mrb[20].mxu1 %vm706_vm3, %v4891_v49  ;;  %3793 = vmatmul.mubr.msk.bf16.gmra.mrb[4].mxu0 %vm706_vm3, %v4943_v53 }
  0x9d   : > { %3642 = vmatprep.mubr.msk.bf16.mxu1 %vm706_vm3, %v4895_v54  ;;  %3796 = vmatprep.mubr.msk.bf16.mxu0 %vm706_vm3, %v4949_v8 }
  0xa4   : > { %3643 = vmatmul.mubr.msk.bf16.gmra.mrb[24].mxu1 %vm706_vm3, %v4899_v36  ;;  %3797 = vmatmul.mubr.msk.bf16.gmra.mrb[8].mxu0 %vm706_vm3, %v4972_v40 }
  0xa5   : > { %3646 = vmatprep.mubr.msk.bf16.mxu1 %vm706_vm3, %v4903_v45  ;;  %3800 = vmatprep.mubr.msk.bf16.mxu0 %vm706_vm3, %v4868_v22 }
  0xac   : > { %3647 = vmatmul.mubr.msk.bf16.gmra.mrb[28].mxu1 %vm706_vm3, %v4913_v29  ;;  %3801 = vmatmul.mubr.msk.bf16.gmra.mrb[12].mxu0 %vm706_vm3, %v4878_v57 }
  0xad   : > { %3652 = vmatprep.mubr.msk.bf16.mxu1 %vm706_vm3, %v3285_v59  ;;  %3804 = vmatprep.mubr.msk.bf16.mxu0 %vm706_vm3, %v4887_v5 }
  0xb4   : > { %3653 = vmatmul.mubr.msk.bf16.vlgmr.msra.gmra.mrb[0].mxu1 %vm706_vm3, %v5393_v48  ;;  %3805 = vmatmul.mubr.msk.bf16.gmra.mrb[16].mxu0 %vm706_vm3, %v4891_v49 }
  0xb5   : > { %3685 = vmatpush3.bf16.msra.mxu1 %v1648_v35  ;;  %3656 = vmatprep.mubr.msk.bf16.mxu1 %vm706_vm3, %v5394_v52  ;;  %v2509_v35 = vshll.u32 %v267_v55, 16 }
  0xb6   : > { %3808 = vmatprep.mubr.msk.bf16.mxu0 %vm706_vm3, %v4895_v54  ;;  %4151 = vmatprep.subr.msk.bf16.mxu1 %vm755_vm0, %v4203_v2 }
  0xbc   : > { %3657 = vmatmul.mubr.msk.bf16.gmra.mrb[4].mxu1 %vm706_vm3, %v5395_v3  ;;  %3809 = vmatmul.mubr.msk.bf16.gmra.mrb[20].mxu0 %vm706_vm3, %v4899_v36 }
  0xbd   : > { %3660 = vmatprep.mubr.msk.bf16.mxu1 %vm706_vm3, %v5396_v4  ;;  %3812 = vmatprep.mubr.msk.bf16.mxu0 %vm706_vm3, %v4903_v45 }
  0xc4   : > { %3661 = vmatmul.mubr.msk.bf16.gmra.mrb[8].mxu1 %vm706_vm3, %v5397_v21  ;;  %3813 = vmatmul.mubr.msk.bf16.gmra.mrb[24].mxu0 %vm706_vm3, %v4913_v29 }
  0xc5   : > { %3664 = vmatprep.mubr.msk.bf16.mxu1 %vm706_vm3, %v5398_v13  ;;  %3816 = vmatprep.mubr.msk.bf16.mxu0 %vm706_vm3, %v5058_v11 }
  0xcc   : > { %3665 = vmatmul.mubr.msk.bf16.gmra.mrb[12].mxu1 %vm706_vm3, %v4773_v37  ;;  %3817 = vmatmul.mubr.msk.bf16.gmra.mrb[28].mxu0 %vm706_vm3, %v3373_v61  ;;  %v2511_v61 = vrot.slane %v2509_v35, 5 }
  0xcd   : > { %3668 = vmatprep.mubr.msk.bf16.mxu1 %vm706_vm3, %v4804_v41  ;;  %3822 = vmatprep.mubr.msk.bf16.mxu0 %vm706_vm3, %v5399_v17 }
  0xd4   : > { %3669 = vmatmul.mubr.msk.bf16.gmra.mrb[16].mxu1 %vm706_vm3, %v4808_v50  ;;  %3823 = vmatmul.mubr.msk.bf16.vlgmr.msra.gmra.mrb[0].mxu0 %vm706_vm3, %v5400_v51 }
  0xd5   : > { %3855 = vmatpush3.bf16.msra.mxu0 %v2734_v10  ;;  %3672 = vmatprep.mubr.msk.bf16.mxu1 %vm706_vm3, %v4830_v20 }
  0xd6   : > { %3826 = vmatprep.mubr.msk.bf16.mxu0 %vm706_vm3, %v5401_v33 }
  0xdc   : > { %3673 = vmatmul.mubr.msk.bf16.gmra.mrb[20].mxu1 %vm706_vm3, %v4841_v0  ;;  %3827 = vmatmul.mubr.msk.bf16.gmra.mrb[4].mxu0 %vm706_vm3, %v5402_v39 }
  0xdd   : > { %3676 = vmatprep.mubr.msk.bf16.mxu1 %vm706_vm3, %v4882_v62  ;;  %3830 = vmatprep.mubr.msk.bf16.mxu0 %vm706_vm3, %v5403_v58 }
  0xe4   : > { %3677 = vmatmul.mubr.msk.bf16.gmra.mrb[24].mxu1 %vm706_vm3, %v4909_v31  ;;  %3831 = vmatmul.mubr.msk.bf16.gmra.mrb[8].mxu0 %vm706_vm3, %v5404_v42 }
  0xe5   : > { %3680 = vmatprep.mubr.msk.bf16.mxu1 %vm706_vm3, %v4945_v44  ;;  %3834 = vmatprep.mubr.msk.bf16.mxu0 %vm706_vm3, %v5405_v15 }
  0xec   : > { %3681 = vmatmul.mubr.msk.bf16.gmra.mrb[28].mxu1 %vm706_vm3, %v4955_v1  ;;  %3835 = vmatmul.mubr.msk.bf16.gmra.mrb[12].mxu0 %vm706_vm3, %v5406_v27 }
  0xed   : > { %3686 = vmatprep.mubr.msk.bf16.mxu1 %vm706_vm3, %v4347_v38  ;;  %3838 = vmatprep.mubr.msk.bf16.mxu0 %vm706_vm3, %v5407_v6  ;;  %v2499_v38 = vshll.u32 %v5072_v9, 16 }
  0xef   : > { %v2501_v18 = vrot.slane %v2499_v38, 5 }
  0xf1   : > { %v2506_v59 = vor.u32 %v2505_v43, %v2501_v18 }
  0xf3   : > { %v2507_v2 = vrot.slane %v2506_v59, 4 }
  0xf4   : > { %3687 = vmatmul.mubr.msk.bf16.vlgmr.msra.gmra.mrb[0].mxu1 %vm706_vm3, %v4836_v47  ;;  %3839 = vmatmul.mubr.msk.bf16.gmra.mrb[16].mxu0 %vm706_vm3, %v5408_v7  ;;  %v2492_v47 = vrot.slane %v2490_v60, 4 }
  0xf5   : > { %3889 = vmatpush3.bf16.msra.mxu1 %v5409_v25  ;;  %3690 = vmatprep.mubr.msk.bf16.mxu1 %vm706_vm3, %v4862_v23 }
  0xf6   : > { %3842 = vmatprep.mubr.msk.bf16.mxu0 %vm706_vm3, %v5410_v46  ;;  %v2496_v23 = vor.u32 %v2495_v32, %v2492_v47 }
  0xf8   : > { %v2497_v48 = vrot.slane %v2496_v23, 4 }
  0xfc   : > { %3691 = vmatmul.mubr.msk.bf16.gmra.mrb[4].mxu1 %vm706_vm3, %v4907_v56  ;;  %3843 = vmatmul.mubr.msk.bf16.gmra.mrb[20].mxu0 %vm706_vm3, %v5411_v12  ;;  %v2502_v56 = vsel %vm4341_vm4, %v2497_v48, %v2501_v18 }
  0xfd   : > { %3694 = vmatprep.mubr.msk.bf16.mxu1 %vm706_vm3, %v4943_v53  ;;  %3846 = vmatprep.mubr.msk.bf16.mxu0 %vm706_vm3, %v4775_v30  ;;  %v2512_v53 = vsel %vm4341_vm4, %v2507_v2, %v2511_v61 }
  0xfe   : > { %v3391_v17 = vcombine.low %v2502_v56, %v2512_v53 }
 0x104   : > { %3695 = vmatmul.mubr.msk.bf16.gmra.mrb[8].mxu1 %vm706_vm3, %v4949_v8  ;;  %3847 = vmatmul.mubr.msk.bf16.gmra.mrb[24].mxu0 %vm706_vm3, %v4802_v63 }
 0x105   : > { %3698 = vmatprep.mubr.msk.bf16.mxu1 %vm706_vm3, %v4972_v40  ;;  %3850 = vmatprep.mubr.msk.bf16.mxu0 %vm706_vm3, %v4980_v16 }
 0x10c   : > { %3699 = vmatmul.mubr.msk.bf16.gmra.mrb[12].mxu1 %vm706_vm3, %v4868_v22  ;;  %3851 = vmatmul.mubr.msk.bf16.gmra.mrb[28].mxu0 %vm706_vm3, %v3391_v17 }
 0x10d   : > { %3702 = vmatprep.mubr.msk.bf16.mxu1 %vm706_vm3, %v4878_v57  ;;  %3856 = vmatprep.mubr.msk.bf16.mxu0 %vm706_vm3, %v5394_v52 }
 0x114   : > { %3703 = vmatmul.mubr.msk.bf16.gmra.mrb[16].mxu1 %vm706_vm3, %v4887_v5  ;;  %3857 = vmatmul.mubr.msk.bf16.vlgmr.msra.gmra.mrb[0].mxu0 %vm706_vm3, %v5395_v3 }
 0x115   : > { %3706 = vmatprep.mubr.msk.bf16.mxu1 %vm706_vm3, %v4891_v49  ;;  %3860 = vmatprep.mubr.msk.bf16.mxu0 %vm706_vm3, %v5396_v4 }
 0x11c   : > { %3707 = vmatmul.mubr.msk.bf16.gmra.mrb[20].mxu1 %vm706_vm3, %v4895_v54  ;;  %3861 = vmatmul.mubr.msk.bf16.gmra.mrb[4].mxu0 %vm706_vm3, %v5397_v21 }
 0x11d   : > { %3710 = vmatprep.mubr.msk.bf16.mxu1 %vm706_vm3, %v4899_v36  ;;  %3864 = vmatprep.mubr.msk.bf16.mxu0 %vm706_vm3, %v5398_v13 }
 0x124   : > { %3711 = vmatmul.mubr.msk.bf16.gmra.mrb[24].mxu1 %vm706_vm3, %v4903_v45  ;;  %3865 = vmatmul.mubr.msk.bf16.gmra.mrb[8].mxu0 %vm706_vm3, %v4773_v37  ;;  %v3408_v37 = vrot.slane %v5069_v24, 9 }
 0x125   : > { %3714 = vmatprep.mubr.msk.bf16.mxu1 %vm706_vm3, %v4913_v29  ;;  %3868 = vmatprep.mubr.msk.bf16.mxu0 %vm706_vm3, %v4804_v41  ;;  %v2722_v41 = vrot.slane %v2720_v34, 4 }
 0x12c   : > { %3715 = vmatmul.mubr.msk.bf16.gmra.mrb[28].mxu1 %vm706_vm3, %v5058_v11  ;;  %3869 = vmatmul.mubr.msk.bf16.gmra.mrb[12].mxu0 %vm706_vm3, %v4808_v50  ;;  %v2723_v50 = vrot.slane %v267_v55, 5 }
 0x12d   : > { %3736 = vmatprep.mubr.msk.bf16.mxu1 %vm706_vm3, %v5406_v27  ;;  %3872 = vmatprep.mubr.msk.bf16.mxu0 %vm706_vm3, %v4830_v20  ;;  %v2721_v20 = vsel %vm4522_vm7, %v3408_v37, %v2720_v34 }
 0x134   : > { %3737 = vmatmul.mubr.msk.bf16.vlgmr.msra.gmra.mrb[16].mxu1 %vm706_vm3, %v5407_v6  ;;  %3873 = vmatmul.mubr.msk.bf16.gmra.mrb[16].mxu0 %vm706_vm3, %v4841_v0  ;;  %v2724_v0 = vsel %vm4522_vm7, %v2722_v41, %v2723_v50 }
 0x135   : > { %3740 = vmatprep.mubr.msk.bf16.mxu1 %vm706_vm3, %v5408_v7  ;;  %3876 = vmatprep.mubr.msk.bf16.mxu0 %vm706_vm3, %v4882_v62  ;;  %v3410_v22 = vcombine.low %v2721_v20, %v2724_v0 }
 0x13c   : > { %3741 = vmatmul.mubr.msk.bf16.gmra.mrb[20].mxu1 %vm706_vm3, %v5410_v46  ;;  %3877 = vmatmul.mubr.msk.bf16.gmra.mrb[20].mxu0 %vm706_vm3, %v4909_v31 }
 0x13d   : > { %3744 = vmatprep.mubr.msk.bf16.mxu1 %vm706_vm3, %v5411_v12  ;;  %3880 = vmatprep.mubr.msk.bf16.mxu0 %vm706_vm3, %v4945_v44 }
 0x144   : > { %3745 = vmatmul.mubr.msk.bf16.gmra.mrb[24].mxu1 %vm706_vm3, %v4775_v30  ;;  %3881 = vmatmul.mubr.msk.bf16.gmra.mrb[24].mxu0 %vm706_vm3, %v4955_v1  ;;  %v4228_v30 = vmov 0.0  }
 0x145   : > { %3748 = vmatprep.mubr.msk.bf16.mxu1 %vm706_vm3, %v4802_v63  ;;  %3884 = vmatprep.mubr.msk.bf16.mxu0 %vm706_vm3, %v4974_v19  ;;  %212 = vst.msk [vmem:[%s5226_s20] sm:$0xff] %vm211_vm8, %v4228_v30  ;;  %213 = vst.msk [vmem:[%s5233_s23] sm:$0xff] %vm211_vm8, %v4228_v30 }
 0x14c   : > { %3749 = vmatmul.mubr.msk.bf16.gmra.mrb[28].mxu1 %vm706_vm3, %v4980_v16  ;;  %3885 = vmatmul.mubr.msk.bf16.gmra.mrb[28].mxu0 %vm706_vm3, %v3410_v22 }
 0x1c7   : > { %v3688_v26 = vpop.f32.mrb[0].mxu1 }
 0x1c8   : > { %v1684_v63 = vpop.f32.mrb[1].mxu1 }
 0x1c9   : > { %v3689_v57 = vpop.f32.mrb[2].mxu1 }
 0x1ca   : > { %v1687_v62 = vpop.f32.mrb[3].mxu1 }
 0x1cf   : > { %v3692_v5 = vpop.f32.mrb[4].mxu1 }
 0x1d0   : > { %v1700_v49 = vpop.f32.mrb[5].mxu1 }
 0x1d1   : > { %v3693_v54 = vpop.f32.mrb[6].mxu1 }
 0x1d2   : > { %v1703_v36 = vpop.f32.mrb[7].mxu1 }
 0x1d7   : > { %v3696_v45 = vpop.f32.mrb[8].mxu1 }
 0x1d8   : > { %v1716_v31 = vpop.f32.mrb[9].mxu1 }
 0x1d9   : > { %v3697_v29 = vpop.f32.mrb[10].mxu1 }
 0x1da   : > { %v5237_v44 = vpop.f32.mrb[11].mxu1 }
 0x1df   : > { %v5239_v8 = vpop.f32.mrb[12].mxu1 }
 0x1e0   : > { %v5241_v1 = vpop.f32.mrb[13].mxu1 }
 0x1e1   : > { %v5243_v40 = vpop.f32.mrb[14].mxu1 }
 0x1e2   : > { %v5245_v19 = vpop.f32.mrb[15].mxu1 }
 0x1e7   : > { %v3858_v16 = vpop.f32.mrb[0].mxu0 }
 0x1e8   : > { %v3890_v52 = vadd.f32 %v3858_v16, %v3688_v26  ;;  %v2770_v3 = vpop.f32.mrb[1].mxu0 }
 0x1e9   : > { %v3891_v4 = vadd.f32 %v2770_v3, %v1684_v63  ;;  %v3859_v11 = vpop.f32.mrb[2].mxu0 }
 0x1ea   : > { %v3892_v21 = vadd.f32 %v3859_v11, %v3689_v57  ;;  %v2773_v13 = vpop.f32.mrb[3].mxu0  ;;  %v2999_v10 = vmul.f32 %v3890_v52, %v3890_v52  ;;  %v2934_v15 = vsel %vm211_vm8, %v3890_v52, 0.0 }
 0x1eb   : > { %v2997_v24 = vmul.f32 %v3891_v4, %v3891_v4  ;;  %v3893_v9 = vadd.f32 %v2773_v13, %v1687_v62  ;;  %v2931_v51 = vsel %vm211_vm8, %v3891_v4, 0.0 }
 0x1ec   : > { %v3000_v58 = vmul.f32 %v3892_v21, %v3892_v21  ;;  %v3032_v38 = vsel %vm211_vm8, %v2999_v10, 0.0  ;;  %v2936_v46 = vsel %vm211_vm8, %v3892_v21, 0.0 }
 0x1ed   : > { %v2932_v33 = vsel %vm211_vm8, %v3893_v9, 0.0  ;;  %v2998_v39 = vmul.f32 %v3893_v9, %v3893_v9  ;;  %v3029_v27 = vsel %vm211_vm8, %v2997_v24, 0.0 }
 0x1ee   : > { %v2933_v42 = vadd.f32 %v2932_v33, %v2931_v51  ;;  %v3034_v18 = vsel %vm211_vm8, %v3000_v58, 0.0 }
 0x1ef   : > { %v3030_v6 = vsel %vm211_vm8, %v2998_v39, 0.0  ;;  %v3862_v7 = vpop.f32.mrb[4].mxu0 }
 0x1f0   : > { %v2935_v60 = vadd.f32 %v2934_v15, %v2933_v42  ;;  %v3031_v14 = vadd.f32 %v3030_v6, %v3029_v27  ;;  %v3894_v28 = vadd.f32 %v3862_v7, %v3692_v5  ;;  %v2786_v25 = vpop.f32.mrb[5].mxu0 }
 0x1f1   : > { %v3895_v47 = vadd.f32 %v2786_v25, %v1700_v49  ;;  %v3863_v32 = vpop.f32.mrb[6].mxu0 }
 0x1f2   : > { %v3033_v43 = vadd.f32 %v3032_v38, %v3031_v14  ;;  %v2937_v55 = vadd.f32 %v2936_v46, %v2935_v60  ;;  %v2789_v12 = vpop.f32.mrb[7].mxu0  ;;  %v3896_v35 = vadd.f32 %v3863_v32, %v3693_v54  ;;  %v3003_v17 = vmul.f32 %v3894_v28, %v3894_v28 }
 0x1f3   : > { %v2938_v23 = vsel %vm211_vm8, %v3895_v47, 0.0  ;;  %v3001_v59 = vmul.f32 %v3895_v47, %v3895_v47  ;;  %v3897_v48 = vadd.f32 %v2789_v12, %v1703_v36  ;;  %v2942_v50 = vsel %vm211_vm8, %v3894_v28, 0.0 }
 0x1f4   : > { %v2939_v2 = vadd.f32 %v2938_v23, %v2937_v55  ;;  %v3035_v61 = vadd.f32 %v3034_v18, %v3033_v43  ;;  %v3004_v0 = vmul.f32 %v3896_v35, %v3896_v35  ;;  %v2944_v57 = vsel %vm211_vm8, %v3896_v35, 0.0 }
 0x1f5   : > { %v3036_v56 = vsel %vm211_vm8, %v3001_v59, 0.0  ;;  %v2940_v53 = vsel %vm211_vm8, %v3897_v48, 0.0  ;;  %v3002_v41 = vmul.f32 %v3897_v48, %v3897_v48  ;;  %v3040_v54 = vsel %vm211_vm8, %v3003_v17, 0.0 }
 0x1f6   : > { %v3037_v34 = vadd.f32 %v3036_v56, %v3035_v61  ;;  %v2941_v37 = vadd.f32 %v2940_v53, %v2939_v2  ;;  %v3042_v13 = vsel %vm211_vm8, %v3004_v0, 0.0 }
 0x1f7   : > { %v3866_v20 = vpop.f32.mrb[8].mxu0  ;;  %v3038_v30 = vsel %vm211_vm8, %v3002_v41, 0.0 }
 0x1f8   : > { %v2943_v22 = vadd.f32 %v2942_v50, %v2941_v37  ;;  %v3898_v26 = vadd.f32 %v3866_v20, %v3696_v45  ;;  %v2802_v63 = vpop.f32.mrb[9].mxu0  ;;  %v3039_v62 = vadd.f32 %v3038_v30, %v3037_v34 }
 0x1f9   : > { %v3899_v5 = vadd.f32 %v2802_v63, %v1716_v31  ;;  %v3867_v49 = vpop.f32.mrb[10].mxu0 }
 0x1fa   : > { %v2945_v36 = vadd.f32 %v2944_v57, %v2943_v22  ;;  %v3900_v16 = vadd.f32 %v3867_v49, %v3697_v29  ;;  %v2805_v52 = vpop.f32.mrb[11].mxu0  ;;  %v3041_v3 = vadd.f32 %v3040_v54, %v3039_v62  ;;  %v3007_v51 = vmul.f32 %v3898_v26, %v3898_v26 }
 0x1fb   : > { %v2946_v4 = vsel %vm211_vm8, %v3899_v5, 0.0  ;;  %v3005_v11 = vmul.f32 %v3899_v5, %v3899_v5  ;;  %v3901_v21 = vadd.f32 %v2805_v52, %v5237_v44  ;;  %v2950_v29 = vsel %vm211_vm8, %v3898_v26, 0.0 }
 0x1fc   : > { %v2947_v45 = vadd.f32 %v2946_v4, %v2945_v36  ;;  %v3043_v24 = vadd.f32 %v3042_v13, %v3041_v3  ;;  %v3008_v15 = vmul.f32 %v3900_v16, %v3900_v16  ;;  %v2952_v7 = vsel %vm211_vm8, %v3900_v16, 0.0 }
 0x1fd   : > { %v3044_v9 = vsel %vm211_vm8, %v3005_v11, 0.0  ;;  %v2948_v31 = vsel %vm211_vm8, %v3901_v21, 0.0  ;;  %v3006_v10 = vmul.f32 %v3901_v21, %v3901_v21  ;;  %v3048_v25 = vsel %vm211_vm8, %v3007_v51, 0.0 }
 0x1fe   : > { %v2949_v33 = vadd.f32 %v2948_v31, %v2947_v45  ;;  %v3045_v39 = vadd.f32 %v3044_v9, %v3043_v24 }
 0x1ff   : > { %v3046_v58 = vsel %vm211_vm8, %v3006_v10, 0.0  ;;  %v3870_v42 = vpop.f32.mrb[12].mxu0 }
 0x200   : > { %v2951_v27 = vadd.f32 %v2950_v29, %v2949_v33  ;;  %v3902_v44 = vadd.f32 %v3870_v42, %v5239_v8  ;;  %v2818_v6 = vpop.f32.mrb[13].mxu0  ;;  %v3047_v60 = vadd.f32 %v3046_v58, %v3045_v39  ;;  %v3050_v8 = vsel %vm211_vm8, %v3008_v15, 0.0 }
 0x201   : > { %v3903_v14 = vadd.f32 %v2818_v6, %v5241_v1  ;;  %v3871_v28 = vpop.f32.mrb[14].mxu0 }
 0x202   : > { %v2953_v38 = vadd.f32 %v2952_v7, %v2951_v27  ;;  %v3904_v46 = vadd.f32 %v3871_v28, %v5243_v40  ;;  %v2821_v47 = vpop.f32.mrb[15].mxu0  ;;  %v3049_v32 = vadd.f32 %v3048_v25, %v3047_v60  ;;  %v3011_v48 = vmul.f32 %v3902_v44, %v3902_v44 }
 0x203   : > { %v2954_v18 = vsel %vm211_vm8, %v3903_v14, 0.0  ;;  %v3009_v43 = vmul.f32 %v3903_v14, %v3903_v14  ;;  %v3905_v55 = vadd.f32 %v2821_v47, %v5245_v19  ;;  %v2958_v40 = vsel %vm211_vm8, %v3902_v44, 0.0 }
 0x204   : > { %v2955_v12 = vadd.f32 %v2954_v18, %v2953_v38  ;;  %v3051_v23 = vadd.f32 %v3050_v8, %v3049_v32  ;;  %v3012_v34 = vmul.f32 %v3904_v46, %v3904_v46  ;;  %v2960_v20 = vsel %vm211_vm8, %v3904_v46, 0.0 }
 0x205   : > { %v3052_v59 = vsel %vm211_vm8, %v3009_v43, 0.0  ;;  %v2956_v1 = vsel %vm211_vm8, %v3905_v55, 0.0  ;;  %v3010_v35 = vmul.f32 %v3905_v55, %v3905_v55  ;;  %v3056_v63 = vsel %vm211_vm8, %v3011_v48, 0.0 }
 0x206   : > { %v2957_v2 = vadd.f32 %v2956_v1, %v2955_v12  ;;  %v3053_v61 = vadd.f32 %v3052_v59, %v3051_v23  ;;  %v3058_v3 = vsel %vm211_vm8, %v3012_v34, 0.0 }
 0x207   : > { %v3054_v56 = vsel %vm211_vm8, %v3010_v35, 0.0  ;;  %v3738_v53 = vpop.f32.mrb[16].mxu1  ;;  %v3874_v17 = vpop.f32.mrb[16].mxu0 }
 0x208   : > { %v2959_v19 = vadd.f32 %v2958_v40, %v2957_v2  ;;  %v3906_v37 = vadd.f32 %v3874_v17, %v3738_v53  ;;  %v1976_v41 = vpop.f32.mrb[17].mxu1  ;;  %v2834_v50 = vpop.f32.mrb[17].mxu0  ;;  %v3055_v0 = vadd.f32 %v3054_v56, %v3053_v61 }
 0x209   : > { %v3907_v22 = vadd.f32 %v2834_v50, %v1976_v41  ;;  %v3739_v30 = vpop.f32.mrb[18].mxu1  ;;  %v3875_v26 = vpop.f32.mrb[18].mxu0 }
 0x20a   : > { %v2961_v57 = vadd.f32 %v2960_v20, %v2959_v19  ;;  %v3908_v62 = vadd.f32 %v3875_v26, %v3739_v30  ;;  %v1979_v5 = vpop.f32.mrb[19].mxu1  ;;  %v2837_v49 = vpop.f32.mrb[19].mxu0  ;;  %v3057_v54 = vadd.f32 %v3056_v63, %v3055_v0  ;;  %v3015_v24 = vmul.f32 %v3906_v37, %v3906_v37 }
 0x20b   : > { %v2962_v36 = vsel %vm211_vm8, %v3907_v22, 0.0  ;;  %v3013_v16 = vmul.f32 %v3907_v22, %v3907_v22  ;;  %v3909_v52 = vadd.f32 %v2837_v49, %v1979_v5  ;;  %v2966_v31 = vsel %vm211_vm8, %v3906_v37, 0.0 }
 0x20c   : > { %v2963_v4 = vadd.f32 %v2962_v36, %v2961_v57  ;;  %v3059_v11 = vadd.f32 %v3058_v3, %v3057_v54  ;;  %v3016_v39 = vmul.f32 %v3908_v62, %v3908_v62  ;;  %v2968_v44 = vsel %vm211_vm8, %v3908_v62, 0.0 }
 0x20d   : > { %v3060_v21 = vsel %vm211_vm8, %v3013_v16, 0.0  ;;  %v2964_v13 = vsel %vm211_vm8, %v3909_v52, 0.0  ;;  %v3014_v45 = vmul.f32 %v3909_v52, %v3909_v52  ;;  %v3064_v28 = vsel %vm211_vm8, %v3015_v24, 0.0 }
 0x20e   : > { %v2965_v9 = vadd.f32 %v2964_v13, %v2963_v4  ;;  %v3061_v10 = vadd.f32 %v3060_v21, %v3059_v11  ;;  %v3066_v8 = vsel %vm211_vm8, %v3016_v39, 0.0 }
 0x20f   : > { %v3062_v51 = vsel %vm211_vm8, %v3014_v45, 0.0  ;;  %v3742_v33 = vpop.f32.mrb[20].mxu1  ;;  %v3878_v29 = vpop.f32.mrb[20].mxu0 }
 0x210   : > { %v2967_v58 = vadd.f32 %v2966_v31, %v2965_v9  ;;  %v3910_v42 = vadd.f32 %v3878_v29, %v3742_v33  ;;  %v1992_v15 = vpop.f32.mrb[21].mxu1  ;;  %v2850_v27 = vpop.f32.mrb[21].mxu0  ;;  %v3063_v6 = vadd.f32 %v3062_v51, %v3061_v10 }
 0x211   : > { %v3911_v7 = vadd.f32 %v2850_v27, %v1992_v15  ;;  %v3743_v60 = vpop.f32.mrb[22].mxu1  ;;  %v3879_v14 = vpop.f32.mrb[22].mxu0 }
 0x212   : > { %v2969_v25 = vadd.f32 %v2968_v44, %v2967_v58  ;;  %v3912_v38 = vadd.f32 %v3879_v14, %v3743_v60  ;;  %v1995_v46 = vpop.f32.mrb[23].mxu1  ;;  %v2853_v47 = vpop.f32.mrb[23].mxu0  ;;  %v3065_v32 = vadd.f32 %v3064_v28, %v3063_v6  ;;  %v3019_v48 = vmul.f32 %v3910_v42, %v3910_v42 }
 0x213   : > { %v2970_v18 = vsel %vm211_vm8, %v3911_v7, 0.0  ;;  %v3017_v43 = vmul.f32 %v3911_v7, %v3911_v7  ;;  %v3913_v55 = vadd.f32 %v2853_v47, %v1995_v46  ;;  %v2974_v40 = vsel %vm211_vm8, %v3910_v42, 0.0 }
 0x214   : > { %v2971_v12 = vadd.f32 %v2970_v18, %v2969_v25  ;;  %v3067_v23 = vadd.f32 %v3066_v8, %v3065_v32  ;;  %v3020_v34 = vmul.f32 %v3912_v38, %v3912_v38  ;;  %v2976_v20 = vsel %vm211_vm8, %v3912_v38, 0.0 }
 0x215   : > { %v3068_v59 = vsel %vm211_vm8, %v3017_v43, 0.0  ;;  %v2972_v1 = vsel %vm211_vm8, %v3913_v55, 0.0  ;;  %v3018_v35 = vmul.f32 %v3913_v55, %v3913_v55  ;;  %v3072_v63 = vsel %vm211_vm8, %v3019_v48, 0.0 }
 0x216   : > { %v2973_v2 = vadd.f32 %v2972_v1, %v2971_v12  ;;  %v3069_v61 = vadd.f32 %v3068_v59, %v3067_v23  ;;  %v3074_v3 = vsel %vm211_vm8, %v3020_v34, 0.0 }
 0x217   : > { %v3070_v56 = vsel %vm211_vm8, %v3018_v35, 0.0  ;;  %v3746_v53 = vpop.f32.mrb[24].mxu1  ;;  %v3882_v17 = vpop.f32.mrb[24].mxu0 }
 0x218   : > { %v2975_v19 = vadd.f32 %v2974_v40, %v2973_v2  ;;  %v3914_v37 = vadd.f32 %v3882_v17, %v3746_v53  ;;  %v2008_v41 = vpop.f32.mrb[25].mxu1  ;;  %v2866_v50 = vpop.f32.mrb[25].mxu0  ;;  %v3071_v0 = vadd.f32 %v3070_v56, %v3069_v61 }
 0x219   : > { %v3915_v22 = vadd.f32 %v2866_v50, %v2008_v41  ;;  %v3747_v30 = vpop.f32.mrb[26].mxu1  ;;  %v3883_v26 = vpop.f32.mrb[26].mxu0 }
 0x21a   : > { %v2977_v57 = vadd.f32 %v2976_v20, %v2975_v19  ;;  %v3916_v62 = vadd.f32 %v3883_v26, %v3747_v30  ;;  %v2011_v5 = vpop.f32.mrb[27].mxu1  ;;  %v2869_v49 = vpop.f32.mrb[27].mxu0  ;;  %v3073_v54 = vadd.f32 %v3072_v63, %v3071_v0  ;;  %v3023_v24 = vmul.f32 %v3914_v37, %v3914_v37  ;;  %v2929_v19 = vld [vmem:[%s5226_s20] sm:$0xff] }
 0x21b   : > { %v2978_v36 = vsel %vm211_vm8, %v3915_v22, 0.0  ;;  %v3021_v16 = vmul.f32 %v3915_v22, %v3915_v22  ;;  %v3917_v52 = vadd.f32 %v2869_v49, %v2011_v5  ;;  %v2982_v31 = vsel %vm211_vm8, %v3914_v37, 0.0  ;;  %v2996_v30 = vld [vmem:[%s5233_s23] sm:$0xff] }
 0x21c   : > { %v2979_v4 = vadd.f32 %v2978_v36, %v2977_v57  ;;  %v3075_v11 = vadd.f32 %v3074_v3, %v3073_v54  ;;  %v3024_v39 = vmul.f32 %v3916_v62, %v3916_v62  ;;  %v2984_v44 = vsel %vm211_vm8, %v3916_v62, 0.0 }
 0x21d   : > { %v3076_v21 = vsel %vm211_vm8, %v3021_v16, 0.0  ;;  %v2980_v13 = vsel %vm211_vm8, %v3917_v52, 0.0  ;;  %v3022_v45 = vmul.f32 %v3917_v52, %v3917_v52  ;;  %v3080_v28 = vsel %vm211_vm8, %v3023_v24, 0.0 }
 0x21e   : > { %v2981_v9 = vadd.f32 %v2980_v13, %v2979_v4  ;;  %v3077_v10 = vadd.f32 %v3076_v21, %v3075_v11  ;;  %v3082_v8 = vsel %vm211_vm8, %v3024_v39, 0.0 }
 0x21f   : > { %v3078_v51 = vsel %vm211_vm8, %v3022_v45, 0.0  ;;  %v3750_v33 = vpop.f32.mrb[28].mxu1  ;;  %v3886_v29 = vpop.f32.mrb[28].mxu0 }
 0x220   : > { %v2983_v58 = vadd.f32 %v2982_v31, %v2981_v9  ;;  %v3918_v42 = vadd.f32 %v3886_v29, %v3750_v33  ;;  %v2024_v15 = vpop.f32.mrb[29].mxu1  ;;  %v2882_v27 = vpop.f32.mrb[29].mxu0  ;;  %v3079_v6 = vadd.f32 %v3078_v51, %v3077_v10 }
 0x221   : > { %v3919_v7 = vadd.f32 %v2882_v27, %v2024_v15  ;;  %v3751_v60 = vpop.f32.mrb[30].mxu1  ;;  %v3887_v14 = vpop.f32.mrb[30].mxu0 }
 0x222   : > { %v2985_v25 = vadd.f32 %v2984_v44, %v2983_v58  ;;  %v3920_v38 = vadd.f32 %v3887_v14, %v3751_v60  ;;  %v2027_v46 = vpop.f32.mrb[31].mxu1  ;;  %v2885_v47 = vpop.f32.mrb[31].mxu0  ;;  %v3081_v32 = vadd.f32 %v3080_v28, %v3079_v6  ;;  %v3027_v48 = vmul.f32 %v3918_v42, %v3918_v42 }
 0x223   : > { %v2986_v18 = vsel %vm211_vm8, %v3919_v7, 0.0  ;;  %v3025_v43 = vmul.f32 %v3919_v7, %v3919_v7  ;;  %v3921_v55 = vadd.f32 %v2885_v47, %v2027_v46  ;;  %v2990_v40 = vsel %vm211_vm8, %v3918_v42, 0.0 }
 0x224   : > { %v2987_v12 = vadd.f32 %v2986_v18, %v2985_v25  ;;  %v3083_v23 = vadd.f32 %v3082_v8, %v3081_v32  ;;  %v3028_v53 = vmul.f32 %v3920_v38, %v3920_v38  ;;  %v2992_v34 = vsel %vm211_vm8, %v3920_v38, 0.0 }
 0x225   : > { %v3084_v59 = vsel %vm211_vm8, %v3025_v43, 0.0  ;;  %v2988_v1 = vsel %vm211_vm8, %v3921_v55, 0.0  ;;  %v3026_v35 = vmul.f32 %v3921_v55, %v3921_v55  ;;  %v3088_v41 = vsel %vm211_vm8, %v3027_v48, 0.0 }
 0x226   : > { %v2989_v2 = vadd.f32 %v2988_v1, %v2987_v12  ;;  %v3085_v61 = vadd.f32 %v3084_v59, %v3083_v23  ;;  %v3090_v0 = vsel %vm211_vm8, %v3028_v53, 0.0 }
 0x227   : > { %v3086_v56 = vsel %vm211_vm8, %v3026_v35, 0.0 }
 0x228   : > { %v2991_v17 = vadd.f32 %v2990_v40, %v2989_v2  ;;  %v3087_v37 = vadd.f32 %v3086_v56, %v3085_v61 }
 0x22a   : > { %v2993_v50 = vadd.f32 %v2992_v34, %v2991_v17  ;;  %v3089_v20 = vadd.f32 %v3088_v41, %v3087_v37 }
 0x22c   : > { %v2994_v22 = vadd.f32 %v2993_v50, %v2929_v19  ;;  %v3091_v26 = vadd.f32 %v3090_v0, %v3089_v20 }
 0x22e   : > { %2995 = vst.msk [vmem:[%s5226_s20] sm:$0xff] %vm211_vm8, %v2994_v22  ;;  %v3092_v63 = vadd.f32 %v3091_v26, %v2996_v30 }
 0x230   : > { %3093 = vst.msk [vmem:[%s5233_s23] sm:$0xff] %vm211_vm8, %v3092_v63 }
 0x231 PF: > { %s14_s14 = sadd.s32 1, %s4226_s14   ;;  %s5412_s12 = smov %s4222_s13 }
 0x232   : > { %p11_p5 = scmp.ge.s32.totalorder %s14_s14, 4   ;;  %s5413_s13 = smov %s5415_s15 }
 0x234   :  { %13 = sbr.rel (!%p11_p5) target bundleno = 2 (0x2), region = 82 }

// kernel: basic_conv_forward.3
= control target key start
LH: loop header
LB: loop body
LE: loop exit
PB: predicated region body
PF: predicated region fallthrough
CT: control target
= control target key end

     0   :  { %s4436_s15 = smov 0   ;;  %s4438_s16 = smov 0   ;;  %s5583_s0 = inlined_call_operand.vmem [shape: bf16[2,1,18,18,4], index: 0, kind: input, shape index: {}]   ;;  %s5584_s1 = inlined_call_operand.vmem [shape: bf16[9,4,8], index: 1, kind: input, shape index: {}]   ;;  %s5585_s2 = inlined_call_operand.vmem [shape: f32[1,8], index: 2, kind: input, shape index: {}]   ;;  %s5586_s3 = inlined_call_operand.vmem [shape: f32[1,8], index: 3, kind: input, shape index: {}]   ;;  %s5587_s4 = inlined_call_operand.vmem [shape: bf16[2,256,8], index: 4, kind: output, shape index: {}]  }
   0x1   :  { %s4440_s17 = smov 0  }
   0x2 LB: > { %s26_s18 = sadd.s32 1, %s4405_s16  ;;  %p3316_p0 = scmp.ge.s32.totalorder %s4409_s17, 1  ;;  %s4409_s17 = sphi %s4440_s17, %s14_s17   ;;  %s4405_s16 = sphi %s4438_s16, %s5666_s16   ;;  %s4401_s15 = sphi %s4436_s15, %s5665_s15  }
   0x3   : > { %p28_p1 = scmp.ge.s32.totalorder %s26_s18, 2  ;;  %p182_p2 = scmp.lt.s32.totalorder %s4409_s17, 3 }
   0x5   : > { %s5668_s18 = smov (%p28_p1, %s26_s18), 0  ;;  %p183_p3 = pnand %p3316_p0, %p182_p2 }
   0x7   : > { %186 = sbr.rel (%p183_p3) target bundleno = 558 (0x22e), region = 36 }
   0xe   : > { %v3320_v0 = vld [vmem:[%s5584_s1 + $0x2] sm:$0x3]  ;;  %vm777_vm0 = vcmask 1041408   ;;  %v3452_v1 = vld [vmem:[%s5584_s1 + $0x8] sm:$0x3]  ;;  %p216_p4 = scmp.lt.s32.totalorder %s4401_s15, 1 }
   0xf   : > { %4330 = vmatprep.subr.msk.bf16.mxu1 %vm777_vm0, %v3320_v0  ;;  %4334 = vmatprep.subr.msk.bf16.mxu0 %vm777_vm0, %v3452_v1  ;;  %v779_v2 = vsel %vm777_vm0, %v3320_v0, 0  ;;  %v4464_v3 = vsel %vm777_vm0, %v3452_v1, 0  ;;  %v290_v4 = vld [vmem:[%s5584_s1] sm:$0x3]  ;;  %v3471_v5 = vld [vmem:[%s5584_s1 + $0xa] sm:$0x3] }
  0x10   : > { %5619 = vst [vmem:[#allocation2_spill] sm:$0xff] %v4464_v3  ;;  %3767 = vmatpush3.bf16.msra.mxu1 %v779_v2  ;;  %3903 = vmatpush3.bf16.msra.mxu0 %v4464_v3  ;;  %s5670_s15 = smov (!%p216_p4, %s4401_s15), 1  ;;  %vm291_vm1 = vsmask.f32 3328  ;;  %vm292_vm2 = vsmask.f32 7440 }
  0x11   : > { %4331 = vmatprep.subr.msk.bf16.mxu1 %vm777_vm0, %v290_v4  ;;  %4336 = vmatprep.subr.msk.bf16.mxu0 %vm777_vm0, %v3471_v5  ;;  %s4340_s27 = smul.u32 216, %s5670_s15  ;;  %v4484_v6 = vsel %vm777_vm0, %v290_v4, 0  ;;  %v4487_v7 = vsel %vm777_vm0, %v3471_v5, 0  ;;  %v4492_v8 = vld [vmem:[%s5584_s1 + $0xc] sm:$0x3]  ;;  %vm728_vm3 = vcmask 31744   ;;  %vm4528_vm4 = vmor %vm291_vm1, %vm292_vm2 }
  0x12   : > { %v4516_v20 = vsel %vm777_vm0, %v4492_v8, 0  ;;  %vm1250_vm5 = vcmask 1042432   ;;  %vm1251_vm6 = vcmask 1046532   ;;  %s3580_s25 = sshll.u32 %s5670_s15, 7  ;;  %vm3189_vm8 = vcmask 60416  }
  0x13   : > { %s4481_s30 = scalar_lea.vmem %s5583_s0, %s4340_s27  ;;  %vm4709_vm7 = vmor %vm1250_vm5, %vm1251_vm6  ;;  %s5444_s28 = scalar_lea.vmem %s5587_s4, %s3580_s25 }
  0x14   : > { %v4495_v9 = vld [vmem:[%s4481_s30] sm:$0xf]  ;;  %v4498_v10 = vld [vmem:[%s4481_s30 + $0x4] sm:$0xf]  ;;  %v238_v11 = vld [vmem:[%s4481_s30 + $0x8] sm:$0x1] }
  0x15   : > { %v295_v12 = vshrl.u32 %v4495_v9, 16  ;;  %v298_v13 = vshll.u32 %v4495_v9, 16  ;;  %v304_v14 = vshll.u32 %v4498_v10, 16  ;;  %v308_v15 = vshrl.u32 %v4498_v10, 16  ;;  %v4506_v16 = vld [vmem:[%s4481_s30 + $0xc] sm:$0xf] }
  0x16   : > { %v314_v17 = vshll.u32 %v238_v11, 16  ;;  %v4509_v18 = vld [vmem:[%s4481_s30 + $0x10] sm:$0xf]  ;;  %v4512_v19 = vld [vmem:[%s4481_s30 + $0x14] sm:$0x1]  ;;  %v319_v26 = vshrl.u32 %v4506_v16, 16 }
  0x17   : > { %v297_v21 = vrot.slane %v295_v12, 4  ;;  %v300_v22 = vrot.slane %v298_v13, 5  ;;  %v306_v23 = vrot.slane %v304_v14, 5  ;;  %v310_v24 = vrot.slane %v308_v15, 4  ;;  %v4524_v33 = vld [vmem:[%s4481_s30 + $0x18] sm:$0xf] }
  0x18   : > { %v316_v25 = vrot.slane %v314_v17, 5  ;;  %v322_v27 = vshll.u32 %v4506_v16, 16  ;;  %v328_v28 = vshll.u32 %v4509_v18, 16  ;;  %v332_v31 = vshrl.u32 %v4509_v18, 16  ;;  %v4537_v39 = vld [vmem:[%s4481_s30 + $0x1c] sm:$0xf] }
  0x19   : > { %v301_v29 = vor.u32 %v300_v22, %v297_v21  ;;  %v311_v30 = vor.u32 %v310_v24, %v306_v23  ;;  %v338_v32 = vshll.u32 %v4512_v19, 16  ;;  %v321_v35 = vrot.slane %v319_v26, 4  ;;  %v4541_v46 = vld [vmem:[%s4481_s30 + $0x20] sm:$0x1]  ;;  %v4551_v57 = vld [vmem:[%s4481_s30 + $0x24] sm:$0xf] }
  0x1a   : > { %v324_v36 = vrot.slane %v322_v27, 5  ;;  %v330_v37 = vrot.slane %v328_v28, 5  ;;  %v4534_v38 = vcombine.low %v4506_v16, %v4509_v18  ;;  %v334_v42 = vrot.slane %v332_v31, 4  ;;  %v4556_v62 = vld [vmem:[%s4481_s30 + $0x28] sm:$0xf] }
  0x1b   : > { %v302_v40 = vrot.slane %v301_v29, 4  ;;  %v312_v41 = vrot.slane %v311_v30, 4  ;;  %v340_v43 = vrot.slane %v338_v32, 5  ;;  %v1265_v45 = vrot.slane %v4512_v19, 5  ;;  %v4564_v4 = vld [vmem:[%s4481_s30 + $0x2c] sm:$0x1] }
  0x1c   : > { %v325_v44 = vor.u32 %v324_v36, %v321_v35  ;;  %v343_v47 = vshrl.u32 %v4524_v33, 16  ;;  %v346_v48 = vshll.u32 %v4524_v33, 16  ;;  %v335_v51 = vor.u32 %v334_v42, %v330_v37  ;;  %v4570_v14 = vld [vmem:[%s4481_s30 + $0x30] sm:$0xf]  ;;  %v4582_v28 = vld [vmem:[%s4481_s30 + $0x34] sm:$0xf] }
  0x1d   : > { %v307_v49 = vsel %vm4528_vm4, %v302_v40, %v306_v23  ;;  %v317_v50 = vsel %vm4528_vm4, %v312_v41, %v316_v25  ;;  %v352_v52 = vshll.u32 %v4537_v39, 16  ;;  %v356_v60 = vshrl.u32 %v4537_v39, 16  ;;  %v4577_v23 = vld [vmem:[%s5584_s1 + $0x4] sm:$0x3]  ;;  %v4589_v32 = vld [vmem:[%s4481_s30 + $0x38] sm:$0x1] }
  0x1e   : > { %v3321_v53 = vcombine.low %v307_v49, %v317_v50  ;;  %v326_v54 = vrot.slane %v325_v44, 4  ;;  %v345_v55 = vrot.slane %v343_v47, 4  ;;  %v348_v56 = vrot.slane %v346_v48, 5  ;;  %v4597_v48 = vld [vmem:[%s4481_s30 + $0x3c] sm:$0xf] }
  0x1f   : > { %v336_v58 = vrot.slane %v335_v51, 4  ;;  %v354_v59 = vrot.slane %v352_v52, 5  ;;  %v362_v61 = vshll.u32 %v4541_v46, 16  ;;  %v1269_v1 = vrot.slane %v4537_v39, 5  ;;  %v4605_v52 = vld [vmem:[%s4481_s30 + $0x40] sm:$0xf] }
  0x20   : > { %3768 = vmatprep.mubr.msk.bf16.mxu1 %vm728_vm3, %v3321_v53  ;;  %v331_v63 = vsel %vm4528_vm4, %v326_v54, %v330_v37  ;;  %v349_v0 = vor.u32 %v348_v56, %v345_v55  ;;  %v1272_v2 = vrot.slane %v4541_v46, 5  ;;  %v358_v11 = vrot.slane %v356_v60, 4 }
  0x21   : > { %v341_v5 = vsel %vm4528_vm4, %v336_v58, %v340_v43  ;;  %v364_v12 = vrot.slane %v362_v61, 5  ;;  %v367_v13 = vshrl.u32 %v4551_v57, 16  ;;  %v370_v21 = vshll.u32 %v4551_v57, 16 }
  0x22   : > { %v3322_v15 = vcombine.low %v331_v63, %v341_v5  ;;  %v350_v17 = vrot.slane %v349_v0, 4  ;;  %v376_v22 = vshll.u32 %v4556_v62, 16  ;;  %v359_v24 = vor.u32 %v358_v11, %v354_v59  ;;  %v4617_v5 = vld [vmem:[%s4481_s30 + $0x44] sm:$0x1] }
  0x23   : > { %v369_v25 = vrot.slane %v367_v13, 4  ;;  %v380_v26 = vshrl.u32 %v4556_v62, 16  ;;  %v386_v27 = vshll.u32 %v4564_v4, 16  ;;  %v372_v30 = vrot.slane %v370_v21, 5  ;;  %v4622_v13 = vld [vmem:[%s4481_s30 + $0x48] sm:$0xf] }
  0x24   : > { %3904 = vmatprep.mubr.msk.bf16.mxu0 %vm728_vm3, %v3322_v15  ;;  %3769 = vmatmul.mubr.msk.bf16.vlgmr.msra.gmra.mrb[0].mxu1 %vm728_vm3, %v3322_v15  ;;  %v355_v29 = vsel %vm4528_vm4, %v350_v17, %v354_v59  ;;  %v378_v31 = vrot.slane %v376_v22, 5  ;;  %v391_v35 = vshrl.u32 %v4570_v14, 16  ;;  %v360_v36 = vrot.slane %v359_v24, 4  ;;  %v4629_v24 = vld [vmem:[%s4481_s30 + $0x4c] sm:$0xf] }
  0x25   : > { %3801 = vmatpush3.bf16.msra.mxu1 %v4484_v6  ;;  %v382_v37 = vrot.slane %v380_v26, 4  ;;  %v388_v40 = vrot.slane %v386_v27, 5  ;;  %v394_v41 = vshll.u32 %v4570_v14, 16  ;;  %v373_v42 = vor.u32 %v372_v30, %v369_v25 }
  0x26   : > { %v393_v43 = vrot.slane %v391_v35, 4  ;;  %v400_v44 = vshll.u32 %v4582_v28, 16  ;;  %v404_v47 = vshrl.u32 %v4582_v28, 16  ;;  %4332 = vmatprep.subr.msk.bf16.mxu1 %vm777_vm0, %v4577_v23  ;;  %v365_v49 = vsel %vm4528_vm4, %v360_v36, %v364_v12 }
  0x27   : > { %v383_v6 = vor.u32 %v382_v37, %v378_v31  ;;  %v396_v50 = vrot.slane %v394_v41, 5  ;;  %v410_v51 = vshll.u32 %v4589_v32, 16  ;;  %v4607_v53 = vcombine.low %v355_v29, %v365_v49 }
  0x28   : > { %v374_v54 = vrot.slane %v373_v42, 4  ;;  %v402_v55 = vrot.slane %v400_v44, 5  ;;  %v406_v56 = vrot.slane %v404_v47, 4  ;;  %v415_v61 = vshrl.u32 %v4597_v48, 16  ;;  %v4651_v42 = vld [vmem:[%s4481_s30 + $0x54] sm:$0xf] }
  0x29   : > { %5622 = vst [vmem:[#allocation3_spill] sm:$0xff] %v4607_v53  ;;  %v384_v58 = vrot.slane %v383_v6, 4  ;;  %v397_v59 = vor.u32 %v396_v50, %v393_v43  ;;  %v412_v60 = vrot.slane %v410_v51, 5  ;;  %3905 = vmatmul.mubr.msk.bf16.vlgmr.msra.gmra.mrb[0].mxu0 %vm728_vm3, %v4607_v53  ;;  %3772 = vmatprep.mubr.msk.bf16.mxu1 %vm728_vm3, %v4607_v53  ;;  %v418_v11 = vshll.u32 %v4597_v48, 16  ;;  %5624 = vst [vmem:[#allocation5_spill] sm:$0xff] %v4651_v42 }
  0x2a   : > { %v379_v63 = vsel %vm4528_vm4, %v374_v54, %v378_v31  ;;  %v407_v0 = vor.u32 %v406_v56, %v402_v55  ;;  %v424_v12 = vshll.u32 %v4605_v52, 16  ;;  %3937 = vmatpush3.bf16.msra.mxu0 %v4487_v7  ;;  %v417_v21 = vrot.slane %v415_v61, 4  ;;  %v4656_v6 = vld [vmem:[%s4481_s30 + $0x58] sm:$0xf] }
  0x2b   : > { %v389_v15 = vsel %vm4528_vm4, %v384_v58, %v388_v40  ;;  %v398_v17 = vrot.slane %v397_v59, 4  ;;  %v428_v22 = vshrl.u32 %v4605_v52, 16  ;;  %v420_v27 = vrot.slane %v418_v11, 5  ;;  %4337 = vmatprep.subr.msk.bf16.mxu0 %vm777_vm0, %v4492_v8  ;;  %v4646_v8 = vld [vmem:[%s4481_s30 + $0x50] sm:$0x1] }
  0x2c   : > { %v4631_v25 = vcombine.low %v379_v63, %v389_v15  ;;  %v408_v26 = vrot.slane %v407_v0, 4  ;;  %v426_v29 = vrot.slane %v424_v12, 5  ;;  %v434_v31 = vshll.u32 %v4617_v5, 16  ;;  %v4669_v11 = vld [vmem:[%s4481_s30 + $0x5c] sm:$0x1] }
  0x2d   : > { %v403_v7 = vsel %vm4528_vm4, %v398_v17, %v402_v55  ;;  %v430_v30 = vrot.slane %v428_v22, 4  ;;  %v439_v35 = vshrl.u32 %v4622_v13, 16  ;;  %v421_v37 = vor.u32 %v420_v27, %v417_v21  ;;  %v4673_v15 = vld [vmem:[%s4481_s30 + $0x60] sm:$0xf]  ;;  %v4678_v27 = vld [vmem:[%s4481_s30 + $0x64] sm:$0xf] }
  0x2e   : > { %5623 = vst [vmem:[#allocation4_spill] sm:$0xff] %v4631_v25  ;;  %3908 = vmatprep.mubr.msk.bf16.mxu0 %vm728_vm3, %v4631_v25  ;;  %3773 = vmatmul.mubr.msk.bf16.gmra.mrb[4].mxu1 %vm728_vm3, %v4631_v25  ;;  %v413_v36 = vsel %vm4528_vm4, %v408_v26, %v412_v60  ;;  %v442_v40 = vshll.u32 %v4622_v13, 16  ;;  %v448_v41 = vshll.u32 %v4629_v24, 16  ;;  %v436_v47 = vrot.slane %v434_v31, 5  ;;  %v4890_v25 = vld [vmem:[%s4481_s30 + $0xa8] sm:$0xf] }
  0x2f   : > { %v4653_v43 = vcombine.low %v403_v7, %v413_v36  ;;  %v431_v44 = vor.u32 %v430_v30, %v426_v29  ;;  %v441_v49 = vrot.slane %v439_v35, 4  ;;  %v422_v50 = vrot.slane %v421_v37, 4 }
  0x30   : > { %v444_v51 = vrot.slane %v442_v40, 5  ;;  %v450_v54 = vrot.slane %v448_v41, 5  ;;  %v452_v55 = vshrl.u32 %v4629_v24, 16  ;;  %v458_v58 = vshll.u32 %v4646_v8, 16 }
  0x31   : > { %5625 = vst [vmem:[#allocation6_spill] sm:$0xff] %v4653_v43  ;;  %3776 = vmatprep.mubr.msk.bf16.mxu1 %vm728_vm3, %v4653_v43  ;;  %v432_v56 = vrot.slane %v431_v44, 4  ;;  %v463_v59 = vshrl.u32 %v4651_v42, 16  ;;  %v466_v60 = vshll.u32 %v4651_v42, 16  ;;  %3909 = vmatmul.mubr.msk.bf16.gmra.mrb[4].mxu0 %vm728_vm3, %v4653_v43  ;;  %v427_v61 = vsel %vm4528_vm4, %v422_v50, %v426_v29 }
  0x32   : > { %v445_v63 = vor.u32 %v444_v51, %v441_v49  ;;  %v454_v0 = vrot.slane %v452_v55, 4  ;;  %v472_v12 = vshll.u32 %v4656_v6, 16  ;;  %v460_v21 = vrot.slane %v458_v58, 5 }
  0x33   : > { %v437_v17 = vsel %vm4528_vm4, %v432_v56, %v436_v47  ;;  %v465_v22 = vrot.slane %v463_v59, 4  ;;  %v468_v26 = vrot.slane %v466_v60, 5  ;;  %v476_v36 = vshrl.u32 %v4656_v6, 16  ;;  %v4692_v47 = vld [vmem:[%s4481_s30 + $0x68] sm:$0x1] }
  0x34   : > { %v4680_v7 = vcombine.low %v427_v61, %v437_v17  ;;  %v446_v29 = vrot.slane %v445_v63, 4  ;;  %v455_v30 = vor.u32 %v454_v0, %v450_v54  ;;  %v474_v31 = vrot.slane %v472_v12, 5 }
  0x35   : > { %v469_v35 = vor.u32 %v468_v26, %v465_v22  ;;  %v482_v37 = vshll.u32 %v4669_v11, 16  ;;  %v487_v40 = vshrl.u32 %v4673_v15, 16  ;;  %v490_v49 = vshll.u32 %v4673_v15, 16 }
  0x36   : > { %5626 = vst [vmem:[#allocation7_spill] sm:$0xff] %v4680_v7  ;;  %3912 = vmatprep.mubr.msk.bf16.mxu0 %vm728_vm3, %v4680_v7  ;;  %3777 = vmatmul.mubr.msk.bf16.gmra.mrb[8].mxu1 %vm728_vm3, %v4680_v7  ;;  %v451_v41 = vsel %vm4528_vm4, %v446_v29, %v450_v54  ;;  %v456_v44 = vrot.slane %v455_v30, 4  ;;  %v496_v50 = vshll.u32 %v4678_v27, 16  ;;  %v478_v55 = vrot.slane %v476_v36, 4  ;;  %v4700_v54 = vld [vmem:[%s4481_s30 + $0x6c] sm:$0xf] }
  0x37   : > { %v470_v51 = vrot.slane %v469_v35, 4  ;;  %v484_v56 = vrot.slane %v482_v37, 5  ;;  %v489_v58 = vrot.slane %v487_v40, 4  ;;  %v492_v60 = vrot.slane %v490_v49, 5  ;;  %v4716_v36 = vld [vmem:[%s4481_s30 + $0x70] sm:$0xf] }
  0x38   : > { %v461_v59 = vsel %vm4528_vm4, %v456_v44, %v460_v21  ;;  %v498_v61 = vrot.slane %v496_v50, 5  ;;  %v500_v63 = vshrl.u32 %v4678_v27, 16  ;;  %v479_v17 = vor.u32 %v478_v55, %v474_v31  ;;  %v4867_v7 = vld [vmem:[%s4481_s30 + $0xa0] sm:$0xf] }
  0x39   : > { %v4702_v0 = vcombine.low %v451_v41, %v461_v59  ;;  %v475_v12 = vsel %vm4528_vm4, %v470_v51, %v474_v31  ;;  %v506_v22 = vshll.u32 %v4692_v47, 16  ;;  %v493_v21 = vor.u32 %v492_v60, %v489_v58  ;;  %v4729_v51 = vld [vmem:[%s4481_s30 + $0x74] sm:$0x1] }
  0x3a   : > { %v502_v29 = vrot.slane %v500_v63, 4  ;;  %v3386_v30 = vrot.slane %v4506_v16, 9  ;;  %v1262_v35 = vrot.slane %v4509_v18, 5  ;;  %v480_v31 = vrot.slane %v479_v17, 4 }
  0x3b   : > { %5627 = vst [vmem:[#allocation8_spill] sm:$0xff] %v4702_v0  ;;  %3913 = vmatmul.mubr.msk.bf16.gmra.mrb[8].mxu0 %vm728_vm3, %v4702_v0  ;;  %3780 = vmatprep.mubr.msk.bf16.mxu1 %vm728_vm3, %v4702_v0  ;;  %v508_v37 = vrot.slane %v506_v22, 5  ;;  %v511_v40 = vshrl.u32 %v4700_v54, 16  ;;  %v514_v41 = vshll.u32 %v4700_v54, 16  ;;  %v494_v44 = vrot.slane %v493_v21, 4 }
  0x3c   : > { %v503_v49 = vor.u32 %v502_v29, %v498_v61  ;;  %v1263_v16 = vsel %vm4709_vm7, %v3386_v30, %v1262_v35  ;;  %v1264_v18 = vrot.slane %v1262_v35, 4  ;;  %v485_v50 = vsel %vm4528_vm4, %v480_v31, %v484_v56  ;;  %v4741_v56 = vld [vmem:[%s4481_s30 + $0x78] sm:$0xf]  ;;  %v4757_v31 = vld [vmem:[%s4481_s30 + $0x7c] sm:$0xf] }
  0x3d   : > { %v513_v55 = vrot.slane %v511_v40, 4  ;;  %v516_v58 = vrot.slane %v514_v41, 5  ;;  %v520_v59 = vshll.u32 %v4716_v36, 16  ;;  %v4732_v60 = vcombine.low %v475_v12, %v485_v50 }
  0x3e   : > { %v499_v63 = vsel %vm4528_vm4, %v494_v44, %v498_v61  ;;  %v504_v17 = vrot.slane %v503_v49, 4  ;;  %v1266_v22 = vsel %vm4709_vm7, %v1264_v18, %v1265_v45  ;;  %v524_v35 = vshrl.u32 %v4716_v36, 16  ;;  %v4762_v49 = vld [vmem:[%s4481_s30 + $0x80] sm:$0x1] }
  0x3f   : > { %5630 = vst [vmem:[#allocation9_spill] sm:$0xff] %v4732_v60  ;;  %v4743_v21 = vcombine.low %v1263_v16, %v1266_v22  ;;  %v517_v29 = vor.u32 %v516_v58, %v513_v55  ;;  %v522_v30 = vrot.slane %v520_v59, 5  ;;  %3916 = vmatprep.mubr.msk.bf16.mxu0 %vm728_vm3, %v4732_v60  ;;  %3781 = vmatmul.mubr.msk.bf16.gmra.mrb[12].mxu1 %vm728_vm3, %v4732_v60  ;;  %v530_v45 = vshll.u32 %v4729_v51, 16  ;;  %v4860_v60 = vld [vmem:[%s4481_s30 + $0x9c] sm:$0xf] }
  0x40   : > { %v509_v19 = vsel %vm4528_vm4, %v504_v17, %v508_v37  ;;  %v3387_v61 = vrot.slane %v4524_v33, 9  ;;  %v1271_v12 = vrot.slane %v1269_v1, 4  ;;  %v526_v44 = vrot.slane %v524_v35, 4 }
  0x41   : > { %5631 = vst [vmem:[#allocation10_spill] sm:$0xff] %v4743_v21  ;;  %v4759_v40 = vcombine.low %v499_v63, %v509_v19  ;;  %v518_v41 = vrot.slane %v517_v29, 4  ;;  %v535_v16 = vshrl.u32 %v4741_v56, 16  ;;  %v532_v18 = vrot.slane %v530_v45, 5  ;;  %v4788_v29 = vld [vmem:[%s4481_s30 + $0x84] sm:$0xf] }
  0x42   : > { %v1270_v37 = vsel %vm4709_vm7, %v3387_v61, %v1269_v1  ;;  %v1273_v50 = vsel %vm4709_vm7, %v1271_v12, %v1272_v2  ;;  %v538_v55 = vshll.u32 %v4741_v56, 16  ;;  %v527_v59 = vor.u32 %v526_v44, %v522_v30 }
  0x43   : > { %5632 = vst [vmem:[#allocation11_spill] sm:$0xff] %v4759_v40  ;;  %3917 = vmatmul.mubr.msk.bf16.gmra.mrb[12].mxu0 %vm728_vm3, %v4759_v40  ;;  %3784 = vmatprep.mubr.msk.bf16.mxu1 %vm728_vm3, %v4759_v40  ;;  %v523_v58 = vsel %vm4528_vm4, %v518_v41, %v522_v30  ;;  %v4780_v63 = vcombine.low %v1270_v37, %v1273_v50  ;;  %v537_v1 = vrot.slane %v535_v16, 4  ;;  %v544_v2 = vshll.u32 %v4757_v31, 16  ;;  %v4794_v16 = vld [vmem:[%s4481_s30 + $0x88] sm:$0xf] }
  0x44   : > { %3938 = vmatprep.mubr.msk.bf16.mxu0 %vm728_vm3, %v4743_v21  ;;  %v540_v46 = vrot.slane %v538_v55, 5  ;;  %v548_v17 = vshrl.u32 %v4757_v31, 16  ;;  %v554_v22 = vshll.u32 %v4762_v49, 16  ;;  %v528_v35 = vrot.slane %v527_v59, 4 }
  0x45   : > { %5633 = vst [vmem:[#allocation12_spill] sm:$0xff] %v4780_v63  ;;  %v3388_v30 = vrot.slane %v4551_v57, 9  ;;  %v1276_v19 = vrot.slane %v4556_v62, 5  ;;  %v1279_v45 = vrot.slane %v4564_v4, 5  ;;  %v546_v12 = vrot.slane %v544_v2, 5 }
  0x46   : > { %v541_v61 = vor.u32 %v540_v46, %v537_v1  ;;  %v550_v41 = vrot.slane %v548_v17, 4  ;;  %v556_v44 = vrot.slane %v554_v22, 5  ;;  %v533_v37 = vsel %vm4528_vm4, %v528_v35, %v532_v18  ;;  %v4804_v1 = vld [vmem:[%s4481_s30 + $0x8c] sm:$0x1] }
  0x47   : > { %v1277_v50 = vsel %vm4709_vm7, %v3388_v30, %v1276_v19  ;;  %v1278_v55 = vrot.slane %v1276_v19, 4  ;;  %v559_v59 = vshrl.u32 %v4788_v29, 16  ;;  %v4801_v3 = vcombine.low %v523_v58, %v533_v37 }
  0x48   : > { %v542_v40 = vrot.slane %v541_v61, 4  ;;  %v551_v4 = vor.u32 %v550_v41, %v546_v12  ;;  %v562_v46 = vshll.u32 %v4788_v29, 16  ;;  %v568_v18 = vshll.u32 %v4794_v16, 16  ;;  %v4818_v61 = vld [vmem:[%s4481_s30 + $0x90] sm:$0xf] }
  0x49   : > { %5634 = vst [vmem:[#allocation13_spill] sm:$0xff] %v4801_v3  ;;  %v1280_v2 = vsel %vm4709_vm7, %v1278_v55, %v1279_v45  ;;  %v561_v17 = vrot.slane %v559_v59, 4  ;;  %v572_v22 = vshrl.u32 %v4794_v16, 16  ;;  %3785 = vmatmul.mubr.msk.bf16.gmra.mrb[16].mxu1 %vm728_vm3, %v4801_v3  ;;  %v4823_v45 = vld [vmem:[%s5584_s1 + $0xe] sm:$0x3]  ;;  %v1283_v59 = vrot.slane %v4582_v28, 5 }
  0x4a   : > { %v547_v58 = vsel %vm4528_vm4, %v542_v40, %v546_v12  ;;  %v552_v35 = vrot.slane %v551_v4, 4  ;;  %v4815_v30 = vcombine.low %v1277_v50, %v1280_v2  ;;  %v564_v19 = vrot.slane %v562_v46, 5  ;;  %5636 = vst [vmem:[#allocation15_spill] sm:$0xff] %v4823_v45  ;;  %v4837_v46 = vld [vmem:[%s4481_s30 + $0x94] sm:$0xf] }
  0x4b   : > { %3939 = vmatmul.mubr.msk.bf16.vlgmr.msra.gmra.mrb[0].mxu0 %vm728_vm3, %v4780_v63  ;;  %v570_v41 = vrot.slane %v568_v18, 5  ;;  %v574_v37 = vrot.slane %v572_v22, 4  ;;  %v578_v40 = vshll.u32 %v4804_v1, 16  ;;  %v3389_v12 = vrot.slane %v4570_v14, 9  ;;  %v4842_v3 = vld [vmem:[%s4481_s30 + $0x98] sm:$0x1] }
  0x4c   : > { %5635 = vst [vmem:[#allocation14_spill] sm:$0xff] %v4815_v30  ;;  %3971 = vmatpush3.bf16.msra.mxu0 %v4516_v20  ;;  %v557_v50 = vsel %vm4528_vm4, %v552_v35, %v556_v44  ;;  %3942 = vmatprep.mubr.msk.bf16.mxu0 %vm728_vm3, %v4815_v30  ;;  %v565_v55 = vor.u32 %v564_v19, %v561_v17  ;;  %v1286_v4 = vrot.slane %v4589_v32, 5  ;;  %v583_v20 = vshrl.u32 %v4818_v61, 16 }
  0x4d   : > { %v4839_v2 = vcombine.low %v547_v58, %v557_v50  ;;  %v575_v18 = vor.u32 %v574_v37, %v570_v41  ;;  %v580_v22 = vrot.slane %v578_v40, 5  ;;  %4338 = vmatprep.subr.msk.bf16.mxu0 %vm777_vm0, %v4823_v45  ;;  %v1284_v17 = vsel %vm4709_vm7, %v3389_v12, %v1283_v59 }
  0x4e   : > { %v566_v44 = vrot.slane %v565_v55, 4  ;;  %v1285_v35 = vrot.slane %v1283_v59, 4  ;;  %v586_v32 = vshll.u32 %v4818_v61, 16  ;;  %v585_v19 = vrot.slane %v583_v20, 4 }
  0x4f   : > { %5637 = vst [vmem:[#allocation16_spill] sm:$0xff] %v4839_v2  ;;  %3788 = vmatprep.mubr.msk.bf16.mxu1 %vm728_vm3, %v4839_v2  ;;  %v576_v58 = vrot.slane %v575_v18, 4  ;;  %v592_v37 = vshll.u32 %v4837_v46, 16  ;;  %v596_v40 = vshrl.u32 %v4837_v46, 16  ;;  %v602_v59 = vshll.u32 %v4842_v3, 16 }
  0x50   : > { %v571_v50 = vsel %vm4528_vm4, %v566_v44, %v570_v41  ;;  %v1287_v55 = vsel %vm4709_vm7, %v1285_v35, %v1286_v4  ;;  %v588_v12 = vrot.slane %v586_v32, 5  ;;  %v3390_v4 = vrot.slane %v4597_v48, 9 }
  0x51   : > { %v581_v2 = vsel %vm4528_vm4, %v576_v58, %v580_v22  ;;  %v4864_v18 = vcombine.low %v1284_v17, %v1287_v55  ;;  %v594_v20 = vrot.slane %v592_v37, 5  ;;  %v598_v0 = vrot.slane %v596_v40, 4  ;;  %v4880_v58 = vld [vmem:[%s4481_s30 + $0xa4] sm:$0x1] }
  0x52   : > { %v4869_v43 = vcombine.low %v571_v50, %v581_v2  ;;  %v589_v41 = vor.u32 %v588_v12, %v585_v19  ;;  %v604_v44 = vrot.slane %v602_v59, 5  ;;  %v1290_v32 = vrot.slane %v4605_v52, 5 }
  0x53   : > { %5638 = vst [vmem:[#allocation17_spill] sm:$0xff] %v4864_v18  ;;  %3943 = vmatmul.mubr.msk.bf16.gmra.mrb[4].mxu0 %vm728_vm3, %v4864_v18  ;;  %v599_v35 = vor.u32 %v598_v0, %v594_v20  ;;  %v1293_v22 = vrot.slane %v4617_v5, 5  ;;  %v607_v17 = vshrl.u32 %v4860_v60, 16  ;;  %v610_v19 = vshll.u32 %v4860_v60, 16 }
  0x54   : > { %5639 = vst [vmem:[#allocation18_spill] sm:$0xff] %v4869_v43  ;;  %3789 = vmatmul.mubr.msk.bf16.gmra.mrb[20].mxu1 %vm728_vm3, %v4869_v43  ;;  %v590_v2 = vrot.slane %v589_v41, 4  ;;  %v616_v37 = vshll.u32 %v4867_v7, 16  ;;  %v620_v0 = vshrl.u32 %v4867_v7, 16  ;;  %v1291_v5 = vsel %vm4709_vm7, %v3390_v4, %v1290_v32 }
  0x55   : > { %v600_v40 = vrot.slane %v599_v35, 4  ;;  %v1292_v50 = vrot.slane %v1290_v32, 4  ;;  %v609_v55 = vrot.slane %v607_v17, 4  ;;  %v612_v59 = vrot.slane %v610_v19, 5  ;;  %v4899_v32 = vld [vmem:[%s4481_s30 + $0xac] sm:$0xf] }
  0x56   : > { %v595_v12 = vsel %vm4528_vm4, %v590_v2, %v594_v20  ;;  %v618_v41 = vrot.slane %v616_v37, 5  ;;  %v622_v43 = vrot.slane %v620_v0, 4  ;;  %v626_v35 = vshll.u32 %v4880_v58, 16 }
  0x57   : > { %v605_v53 = vsel %vm4528_vm4, %v600_v40, %v604_v44  ;;  %v1294_v18 = vsel %vm4709_vm7, %v1292_v50, %v1293_v22  ;;  %v3391_v4 = vrot.slane %v4622_v13, 9  ;;  %v613_v2 = vor.u32 %v612_v59, %v609_v55 }
  0x58   : > { %v4901_v17 = vcombine.low %v595_v12, %v605_v53  ;;  %v4903_v20 = vcombine.low %v1291_v5, %v1294_v18  ;;  %v623_v19 = vor.u32 %v622_v43, %v618_v41  ;;  %v628_v37 = vrot.slane %v626_v35, 5  ;;  %v4913_v18 = vld [vmem:[%s4481_s30 + $0xb0] sm:$0x1] }
  0x59   : > { %v1297_v0 = vrot.slane %v4629_v24, 5  ;;  %v1300_v44 = vrot.slane %v4646_v8, 5  ;;  %v631_v22 = vshrl.u32 %v4890_v25, 16  ;;  %v614_v53 = vrot.slane %v613_v2, 4 }
  0x5a   : > { %5640 = vst [vmem:[#allocation19_spill] sm:$0xff] %v4901_v17  ;;  %5641 = vst [vmem:[#allocation20_spill] sm:$0xff] %v4903_v20  ;;  %3792 = vmatprep.mubr.msk.bf16.mxu1 %vm728_vm3, %v4901_v17  ;;  %3946 = vmatprep.mubr.msk.bf16.mxu0 %vm728_vm3, %v4903_v20  ;;  %v624_v40 = vrot.slane %v623_v19, 4  ;;  %v634_v43 = vshll.u32 %v4890_v25, 16  ;;  %v640_v5 = vshll.u32 %v4899_v32, 16  ;;  %v644_v12 = vshrl.u32 %v4899_v32, 16 }
  0x5b   : > { %v1298_v8 = vsel %vm4709_vm7, %v3391_v4, %v1297_v0  ;;  %v1299_v50 = vrot.slane %v1297_v0, 4  ;;  %v633_v55 = vrot.slane %v631_v22, 4  ;;  %v619_v59 = vsel %vm4528_vm4, %v614_v53, %v618_v41  ;;  %v4925_v17 = vld [vmem:[%s4481_s30 + $0xb4] sm:$0xf]  ;;  %v4937_v53 = vld [vmem:[%s4481_s30 + $0xb8] sm:$0xf] }
  0x5c   : > { %v629_v35 = vsel %vm4528_vm4, %v624_v40, %v628_v37  ;;  %v636_v2 = vrot.slane %v634_v43, 5  ;;  %v642_v19 = vrot.slane %v640_v5, 5  ;;  %v646_v0 = vrot.slane %v644_v12, 4 }
  0x5d   : > { %v4927_v20 = vcombine.low %v619_v59, %v629_v35  ;;  %v1301_v4 = vsel %vm4709_vm7, %v1299_v50, %v1300_v44  ;;  %v650_v22 = vshll.u32 %v4913_v18, 16  ;;  %v3392_v41 = vrot.slane %v4651_v42, 9  ;;  %v4943_v44 = vld [vmem:[%s4481_s30 + $0xbc] sm:$0x1] }
  0x5e   : > { %v4932_v30 = vcombine.low %v1298_v8, %v1301_v4  ;;  %v637_v63 = vor.u32 %v636_v2, %v633_v55  ;;  %v1304_v37 = vrot.slane %v4656_v6, 5  ;;  %v647_v40 = vor.u32 %v646_v0, %v642_v19 }
  0x5f   : > { %5642 = vst [vmem:[#allocation21_spill] sm:$0xff] %v4927_v20  ;;  %3793 = vmatmul.mubr.msk.bf16.gmra.mrb[24].mxu1 %vm728_vm3, %v4927_v20  ;;  %v652_v43 = vrot.slane %v650_v22, 5  ;;  %v1307_v5 = vrot.slane %v4669_v11, 5  ;;  %v655_v50 = vshrl.u32 %v4925_v17, 16  ;;  %v658_v59 = vshll.u32 %v4925_v17, 16 }
  0x60   : > { %5643 = vst [vmem:[#allocation22_spill] sm:$0xff] %v4932_v30  ;;  %3947 = vmatmul.mubr.msk.bf16.gmra.mrb[8].mxu0 %vm728_vm3, %v4932_v30  ;;  %v638_v8 = vrot.slane %v637_v63, 4  ;;  %v1305_v55 = vsel %vm4709_vm7, %v3392_v41, %v1304_v37  ;;  %v1306_v12 = vrot.slane %v1304_v37, 4  ;;  %v648_v35 = vrot.slane %v647_v40, 4 }
  0x61   : > { %v657_v2 = vrot.slane %v655_v50, 4  ;;  %v664_v4 = vshll.u32 %v4937_v53, 16  ;;  %v668_v11 = vshrl.u32 %v4937_v53, 16  ;;  %v660_v20 = vrot.slane %v658_v59, 5 }
  0x62   : > { %v643_v0 = vsel %vm4528_vm4, %v638_v8, %v642_v19  ;;  %v1308_v22 = vsel %vm4709_vm7, %v1306_v12, %v1307_v5  ;;  %v674_v63 = vshll.u32 %v4943_v44, 16  ;;  %v653_v41 = vsel %vm4528_vm4, %v648_v35, %v652_v43 }
  0x63   : > { %v4960_v37 = vcombine.low %v1305_v55, %v1308_v22  ;;  %v666_v40 = vrot.slane %v664_v4, 5  ;;  %v670_v50 = vrot.slane %v668_v11, 4  ;;  %v4962_v30 = vcombine.low %v643_v0, %v653_v41 }
  0x64   : > { %v661_v21 = vor.u32 %v660_v20, %v657_v2  ;;  %v676_v45 = vrot.slane %v674_v63, 5  ;;  %v3393_v42 = vrot.slane %v4673_v15, 9  ;;  %v1311_v5 = vrot.slane %v4678_v27, 5 }
  0x65   : > { %3950 = vmatprep.mubr.msk.bf16.mxu0 %vm728_vm3, %v4960_v37  ;;  %v671_v19 = vor.u32 %v670_v50, %v666_v40  ;;  %v1314_v8 = vrot.slane %v4692_v47, 5  ;;  %v3394_v43 = vrot.slane %v4700_v54, 9  ;;  %3796 = vmatprep.mubr.msk.bf16.mxu1 %vm728_vm3, %v4962_v30  ;;  %v3353_v20 = vcombine.low %v4495_v9, %v4498_v10 }
  0x66   : > { %v662_v55 = vrot.slane %v661_v21, 4  ;;  %v1318_v12 = vrot.slane %v4716_v36, 5  ;;  %v1321_v59 = vrot.slane %v4729_v51, 5  ;;  %v1312_v2 = vsel %vm4709_vm7, %v3393_v42, %v1311_v5 }
  0x67   : > { %v672_v35 = vrot.slane %v671_v19, 4  ;;  %v1313_v4 = vrot.slane %v1311_v5, 4  ;;  %v1325_v47 = vrot.slane %v4757_v31, 5  ;;  %v3395_v9 = vrot.slane %v4741_v56, 9 }
  0x68   : > { %v667_v11 = vsel %vm4528_vm4, %v662_v55, %v666_v40  ;;  %v1319_v21 = vsel %vm4709_vm7, %v3394_v43, %v1318_v12  ;;  %v1320_v0 = vrot.slane %v1318_v12, 4  ;;  %v1328_v42 = vrot.slane %v4762_v49, 5 }
  0x69   : > { %v677_v10 = vsel %vm4528_vm4, %v672_v35, %v676_v45  ;;  %v1315_v51 = vsel %vm4709_vm7, %v1313_v4, %v1314_v8  ;;  %v1327_v22 = vrot.slane %v1325_v47, 4  ;;  %v3396_v19 = vrot.slane %v4788_v29, 9 }
  0x6a   : > { %v4989_v63 = vcombine.low %v667_v11, %v677_v10  ;;  %v4991_v41 = vcombine.low %v1312_v2, %v1315_v51  ;;  %v1322_v40 = vsel %vm4709_vm7, %v1320_v0, %v1321_v59  ;;  %v1332_v5 = vrot.slane %v4794_v16, 5 }
  0x6b   : > { %v4995_v50 = vcombine.low %v1319_v21, %v1322_v40  ;;  %v1335_v49 = vrot.slane %v4804_v1, 5  ;;  %v1326_v45 = vsel %vm4709_vm7, %v3395_v9, %v1325_v47  ;;  %v1329_v8 = vsel %vm4709_vm7, %v1327_v22, %v1328_v42 }
  0x6c   : > { %3797 = vmatmul.mubr.msk.bf16.gmra.mrb[28].mxu1 %vm728_vm3, %v4989_v63  ;;  %3951 = vmatmul.mubr.msk.bf16.gmra.mrb[12].mxu0 %vm728_vm3, %v4991_v41  ;;  %v1334_v43 = vrot.slane %v1332_v5, 4  ;;  %v1339_v55 = vrot.slane %v4837_v46, 5  ;;  %v1346_v12 = vrot.slane %v4867_v7, 5  ;;  %v1333_v59 = vsel %vm4709_vm7, %v3396_v19, %v1332_v5 }
  0x6d   : > { %3802 = vmatprep.mubr.msk.bf16.mxu1 %vm728_vm3, %v3353_v20  ;;  %3954 = vmatprep.mubr.msk.bf16.mxu0 %vm728_vm3, %v4995_v50  ;;  %v5017_v20 = vcombine.low %v1326_v45, %v1329_v8  ;;  %v3397_v35 = vrot.slane %v4818_v61, 9  ;;  %v1342_v4 = vrot.slane %v4842_v3, 5  ;;  %v5023_v47 = vcombine.low %v4524_v33, %v4537_v39  ;;  %v5035_v3 = vld [vmem:[%s5584_s1 + $0x6] sm:$0x3] }
  0x6e   : > { %v1336_v1 = vsel %vm4709_vm7, %v1334_v43, %v1335_v49  ;;  %v1341_v2 = vrot.slane %v1339_v55, 4  ;;  %v3398_v11 = vrot.slane %v4860_v60, 9  ;;  %v1464_v21 = vsel %vm777_vm0, %v4577_v23, 0 }
  0x6f   : > { %v5028_v0 = vcombine.low %v1333_v59, %v1336_v1  ;;  %v1348_v9 = vrot.slane %v1346_v12, 4  ;;  %v1349_v10 = vrot.slane %v4880_v58, 5  ;;  %v1353_v51 = vrot.slane %v4899_v32, 5 }
  0x70   : > { %v1340_v33 = vsel %vm4709_vm7, %v3397_v35, %v1339_v55  ;;  %v1343_v39 = vsel %vm4709_vm7, %v1341_v2, %v1342_v4  ;;  %v5049_v23 = vcombine.low %v4551_v57, %v4556_v62  ;;  %v1347_v58 = vsel %vm4709_vm7, %v3398_v11, %v1346_v12 }
  0x71   : > { %v5055_v22 = vcombine.low %v4673_v15, %v4678_v27  ;;  %v1350_v42 = vsel %vm4709_vm7, %v1348_v9, %v1349_v10  ;;  %v3399_v40 = vrot.slane %v4890_v25, 9  ;;  %v1360_v19 = vrot.slane %v4937_v53, 5 }
  0x72   : > { %v5065_v57 = vcombine.low %v4700_v54, %v4716_v36  ;;  %v5069_v62 = vcombine.low %v1340_v33, %v1343_v39  ;;  %v1355_v15 = vrot.slane %v1353_v51, 4  ;;  %v1356_v27 = vrot.slane %v4913_v18, 5  ;;  %v286_v18 = vld [vmem:[%s4481_s30 + $0xc8] sm:$0x1] }
  0x73   : > { %v5074_v5 = vcombine.low %v4741_v56, %v4757_v31  ;;  %v5078_v49 = vcombine.low %v4788_v29, %v4794_v16  ;;  %v5082_v54 = vcombine.low %v4818_v61, %v4837_v46  ;;  %v5086_v36 = vcombine.low %v4860_v60, %v4867_v7  ;;  %v5105_v61 = vld [vmem:[%s4481_s30 + $0xc4] sm:$0xf] }
  0x74   : > { %3803 = vmatmul.mubr.msk.bf16.vlgmr.msra.gmra.mrb[0].mxu1 %vm728_vm3, %v4534_v38  ;;  %3955 = vmatmul.mubr.msk.bf16.gmra.mrb[16].mxu0 %vm728_vm3, %v5017_v20  ;;  %v5090_v45 = vcombine.low %v4890_v25, %v4899_v32  ;;  %v5094_v56 = vcombine.low %v4570_v14, %v4582_v28  ;;  %v5096_v31 = vcombine.low %v1347_v58, %v1350_v42  ;;  %v3400_v16 = vrot.slane %v4925_v17, 9  ;;  %v5644_v42 = vld [vmem:[#allocation5_spill] sm:$0xff] }
  0x75   : > { %3835 = vmatpush3.bf16.msra.mxu1 %v1464_v21  ;;  %3806 = vmatprep.mubr.msk.bf16.mxu1 %vm728_vm3, %v5023_v47  ;;  %v5100_v29 = vcombine.low %v4925_v17, %v4937_v53  ;;  %v1362_v7 = vrot.slane %v1360_v19, 4  ;;  %v1363_v60 = vrot.slane %v4943_v44, 5  ;;  %v1354_v14 = vsel %vm4709_vm7, %v3399_v40, %v1353_v51  ;;  %v5125_v17 = vld [vmem:[%s4481_s30 + $0xc0] sm:$0xf] }
  0x76   : > { %3958 = vmatprep.mubr.msk.bf16.mxu0 %vm728_vm3, %v5028_v0  ;;  %4333 = vmatprep.subr.msk.bf16.mxu1 %vm777_vm0, %v5035_v3  ;;  %v1357_v28 = vsel %vm4709_vm7, %v1355_v15, %v1356_v27  ;;  %v2096_v25 = vrot.slane %v5105_v61, 5  ;;  %v1361_v46 = vsel %vm4709_vm7, %v3400_v16, %v1360_v19  ;;  %v5130_v53 = vcombine.low %v4597_v48, %v4605_v52 }
  0x77   : > { %v1364_v32 = vsel %vm4709_vm7, %v1362_v7, %v1363_v60  ;;  %v5132_v44 = vcombine.low %v1354_v14, %v1357_v28  ;;  %v5136_v8 = vcombine.low %v4622_v13, %v4629_v24  ;;  %v1866_v43 = vshrl.u32 %v5125_v17, 16  ;;  %v3526_v60 = vld [vmem:[%s5584_s1 + $0x10] sm:$0x3]  ;;  %v4383_v14 = vld [vmem:[%s4481_s30 + $0x4] sm:$0xf] }
  0x78   : > { %v1869_v55 = vshll.u32 %v5125_v17, 16  ;;  %v1875_v12 = vshll.u32 %v5105_v61, 16  ;;  %v1879_v59 = vshrl.u32 %v5105_v61, 16  ;;  %v5142_v1 = vcombine.low %v1361_v46, %v1364_v32  ;;  %v4385_v32 = vld [vmem:[%s4481_s30] sm:$0xf] }
  0x79   : > { %v3470_v35 = vrot.slane %v5125_v17, 9  ;;  %v2098_v48 = vrot.slane %v2096_v25, 4  ;;  %v2099_v52 = vrot.slane %v286_v18, 5  ;;  %v1868_v2 = vrot.slane %v1866_v43, 4 }
  0x7a   : > { %v1871_v4 = vrot.slane %v1869_v55, 5  ;;  %v1877_v11 = vrot.slane %v1875_v12, 5  ;;  %v1881_v21 = vrot.slane %v1879_v59, 4  ;;  %v1885_v9 = vshll.u32 %v286_v18, 16 }
  0x7b   : > { %v2097_v10 = vsel %vm4709_vm7, %v3470_v35, %v2096_v25  ;;  %v2100_v51 = vsel %vm4709_vm7, %v2098_v48, %v2099_v52  ;;  %v5159_v40 = vcombine.low %v5644_v42, %v4656_v6  ;;  %v5645_v6 = vld [vmem:[#allocation15_spill] sm:$0xff]  ;;  %v1255_v28 = vrot.slane %v4383_v14, 5  ;;  %v5646_v48 = vld [vmem:[#allocation10_spill] sm:$0xff]  ;;  %v5647_v52 = vld [vmem:[#allocation12_spill] sm:$0xff] }
  0x7c   : > { %3807 = vmatmul.mubr.msk.bf16.gmra.mrb[4].mxu1 %vm728_vm3, %v5049_v23  ;;  %3959 = vmatmul.mubr.msk.bf16.gmra.mrb[20].mxu0 %vm728_vm3, %v5069_v62  ;;  %v1872_v13 = vor.u32 %v1871_v4, %v1868_v2  ;;  %v1882_v24 = vor.u32 %v1881_v21, %v1877_v11  ;;  %v1887_v58 = vrot.slane %v1885_v9, 5  ;;  %v5161_v19 = vcombine.low %v2097_v10, %v2100_v51  ;;  %v4384_v25 = vld [vmem:[%s4481_s30 + $0x8] sm:$0x1]  ;;  %v5649_v4 = vld [vmem:[#allocation17_spill] sm:$0xff]  ;;  %v5650_v21 = vld [vmem:[#allocation20_spill] sm:$0xff] }
  0x7d   : > { %3810 = vmatprep.mubr.msk.bf16.mxu1 %vm728_vm3, %v5094_v56  ;;  %3962 = vmatprep.mubr.msk.bf16.mxu0 %vm728_vm3, %v5096_v31  ;;  %v2544_v7 = vsel %vm777_vm0, %v5645_v6, 0  ;;  %v1258_v46 = vrot.slane %v4384_v25, 5  ;;  %v3385_v18 = vrot.slane %v4385_v32, 9  ;;  %v1257_v43 = vrot.slane %v1255_v28, 4  ;;  %v4386_v2 = vld [vmem:[%s5584_s1 + $0x8] sm:$0x3] }
  0x7e   : > { %v1873_v33 = vrot.slane %v1872_v13, 4  ;;  %v1883_v39 = vrot.slane %v1882_v24, 4  ;;  %v1670_v35 = vsel %vm777_vm0, %v5035_v3, 0  ;;  %v5648_v3 = vld [vmem:[#allocation14_spill] sm:$0xff]  ;;  %v5256_v24 = vld [vmem:[%s4481_s30 + $0xcc] sm:$0xf] }
  0x7f   : > { %v1256_v55 = vsel %vm4709_vm7, %v3385_v18, %v1255_v28  ;;  %v1259_v12 = vsel %vm4709_vm7, %v1257_v43, %v1258_v46  ;;  %v5651_v13 = vld [vmem:[#allocation22_spill] sm:$0xff]  ;;  %v5259_v9 = vld [vmem:[%s4481_s30 + $0xd0] sm:$0xf]  ;;  %v2756_v10 = vsel %vm777_vm0, %v3526_v60, 0  ;;  %v5657_v42 = vld [vmem:[#allocation9_spill] sm:$0xff]  ;;  %v2515_v14 = vshll.u32 %v5256_v24, 16 }
  0x80   : > { %v1878_v15 = vsel %vm4528_vm4, %v1873_v33, %v1877_v11  ;;  %v1888_v27 = vsel %vm4528_vm4, %v1883_v39, %v1887_v58  ;;  %v3402_v59 = vcombine.low %v1256_v55, %v1259_v12  ;;  %v5245_v11 = vcombine.low %v5125_v17, %v5105_v61  ;;  %v5652_v17 = vld [vmem:[#allocation3_spill] sm:$0xff]  ;;  %v5653_v51 = vld [vmem:[#allocation4_spill] sm:$0xff]  ;;  %v5654_v33 = vld [vmem:[#allocation6_spill] sm:$0xff] }
  0x81   : > { %v5167_v16 = vcombine.low %v1878_v15, %v1888_v27  ;;  %v3490_v61 = vcombine.low %v5256_v24, %v5259_v9  ;;  %v5655_v39 = vld [vmem:[#allocation7_spill] sm:$0xff]  ;;  %v5656_v58 = vld [vmem:[#allocation8_spill] sm:$0xff]  ;;  %v5659_v27 = vld [vmem:[#allocation13_spill] sm:$0xff]  ;;  %v2525_v28 = vshrl.u32 %v5259_v9, 16  ;;  %v2517_v32 = vrot.slane %v2515_v14, 5 }
  0x82   : > { %v5658_v15 = vld [vmem:[#allocation11_spill] sm:$0xff]  ;;  %v5660_v6 = vld [vmem:[#allocation16_spill] sm:$0xff]  ;;  %v5662_v25 = vld [vmem:[#allocation2_spill] sm:$0xff]  ;;  %v2742_v34 = vrot.slane %v5259_v9, 5 }
  0x83   : > { %v5663_v46 = vld [vmem:[#allocation19_spill] sm:$0xff]  ;;  %v2527_v43 = vrot.slane %v2525_v28, 4  ;;  %v289_v55 = vld [vmem:[%s4481_s30 + $0xd4] sm:$0x1]  ;;  %v5664_v12 = vld [vmem:[#allocation21_spill] sm:$0xff] }
  0x84   : > { %3811 = vmatmul.mubr.msk.bf16.gmra.mrb[8].mxu1 %vm728_vm3, %v5130_v53  ;;  %3963 = vmatmul.mubr.msk.bf16.gmra.mrb[24].mxu0 %vm728_vm3, %v5132_v44 }
  0x85   : > { %3814 = vmatprep.mubr.msk.bf16.mxu1 %vm728_vm3, %v5136_v8  ;;  %3966 = vmatprep.mubr.msk.bf16.mxu0 %vm728_vm3, %v5142_v1 }
  0x8c   : > { %3815 = vmatmul.mubr.msk.bf16.gmra.mrb[12].mxu1 %vm728_vm3, %v5159_v40  ;;  %3967 = vmatmul.mubr.msk.bf16.gmra.mrb[28].mxu0 %vm728_vm3, %v5161_v19 }
  0x8d   : > { %3818 = vmatprep.mubr.msk.bf16.mxu1 %vm728_vm3, %v5055_v22  ;;  %3972 = vmatprep.mubr.msk.bf16.mxu0 %vm728_vm3, %v5023_v47 }
  0x94   : > { %3819 = vmatmul.mubr.msk.bf16.gmra.mrb[16].mxu1 %vm728_vm3, %v5065_v57  ;;  %3973 = vmatmul.mubr.msk.bf16.vlgmr.msra.gmra.mrb[0].mxu0 %vm728_vm3, %v5049_v23 }
  0x95   : > { %4005 = vmatpush3.bf16.msra.mxu0 %v2544_v7  ;;  %3822 = vmatprep.mubr.msk.bf16.mxu1 %vm728_vm3, %v5074_v5  ;;  %v5661_v7 = vld [vmem:[#allocation18_spill] sm:$0xff] }
  0x96   : > { %3976 = vmatprep.mubr.msk.bf16.mxu0 %vm728_vm3, %v5094_v56  ;;  %4339 = vmatprep.subr.msk.bf16.mxu0 %vm777_vm0, %v3526_v60  ;;  %v2512_v60 = vshrl.u32 %v5256_v24, 16 }
  0x9c   : > { %3823 = vmatmul.mubr.msk.bf16.gmra.mrb[20].mxu1 %vm728_vm3, %v5078_v49  ;;  %3977 = vmatmul.mubr.msk.bf16.gmra.mrb[4].mxu0 %vm728_vm3, %v5130_v53 }
  0x9d   : > { %3826 = vmatprep.mubr.msk.bf16.mxu1 %vm728_vm3, %v5082_v54  ;;  %3980 = vmatprep.mubr.msk.bf16.mxu0 %vm728_vm3, %v5136_v8 }
  0xa4   : > { %3827 = vmatmul.mubr.msk.bf16.gmra.mrb[24].mxu1 %vm728_vm3, %v5086_v36  ;;  %3981 = vmatmul.mubr.msk.bf16.gmra.mrb[8].mxu0 %vm728_vm3, %v5159_v40 }
  0xa5   : > { %3830 = vmatprep.mubr.msk.bf16.mxu1 %vm728_vm3, %v5090_v45  ;;  %3984 = vmatprep.mubr.msk.bf16.mxu0 %vm728_vm3, %v5055_v22 }
  0xac   : > { %3831 = vmatmul.mubr.msk.bf16.gmra.mrb[28].mxu1 %vm728_vm3, %v5100_v29  ;;  %3985 = vmatmul.mubr.msk.bf16.gmra.mrb[12].mxu0 %vm728_vm3, %v5065_v57 }
  0xad   : > { %3836 = vmatprep.mubr.msk.bf16.mxu1 %vm728_vm3, %v3402_v59  ;;  %3988 = vmatprep.mubr.msk.bf16.mxu0 %vm728_vm3, %v5074_v5 }
  0xb4   : > { %3837 = vmatmul.mubr.msk.bf16.vlgmr.msra.gmra.mrb[0].mxu1 %vm728_vm3, %v5646_v48  ;;  %3989 = vmatmul.mubr.msk.bf16.gmra.mrb[16].mxu0 %vm728_vm3, %v5078_v49 }
  0xb5   : > { %3869 = vmatpush3.bf16.msra.mxu1 %v1670_v35  ;;  %3840 = vmatprep.mubr.msk.bf16.mxu1 %vm728_vm3, %v5647_v52  ;;  %v2531_v35 = vshll.u32 %v289_v55, 16 }
  0xb6   : > { %3992 = vmatprep.mubr.msk.bf16.mxu0 %vm728_vm3, %v5082_v54  ;;  %4335 = vmatprep.subr.msk.bf16.mxu1 %vm777_vm0, %v4386_v2 }
  0xbc   : > { %3841 = vmatmul.mubr.msk.bf16.gmra.mrb[4].mxu1 %vm728_vm3, %v5648_v3  ;;  %3993 = vmatmul.mubr.msk.bf16.gmra.mrb[20].mxu0 %vm728_vm3, %v5086_v36 }
  0xbd   : > { %3844 = vmatprep.mubr.msk.bf16.mxu1 %vm728_vm3, %v5649_v4  ;;  %3996 = vmatprep.mubr.msk.bf16.mxu0 %vm728_vm3, %v5090_v45 }
  0xc4   : > { %3845 = vmatmul.mubr.msk.bf16.gmra.mrb[8].mxu1 %vm728_vm3, %v5650_v21  ;;  %3997 = vmatmul.mubr.msk.bf16.gmra.mrb[24].mxu0 %vm728_vm3, %v5100_v29 }
  0xc5   : > { %3848 = vmatprep.mubr.msk.bf16.mxu1 %vm728_vm3, %v5651_v13  ;;  %4000 = vmatprep.mubr.msk.bf16.mxu0 %vm728_vm3, %v5245_v11 }
  0xcc   : > { %3849 = vmatmul.mubr.msk.bf16.gmra.mrb[12].mxu1 %vm728_vm3, %v4960_v37  ;;  %4001 = vmatmul.mubr.msk.bf16.gmra.mrb[28].mxu0 %vm728_vm3, %v3490_v61  ;;  %v2533_v61 = vrot.slane %v2531_v35, 5 }
  0xcd   : > { %3852 = vmatprep.mubr.msk.bf16.mxu1 %vm728_vm3, %v4991_v41  ;;  %4006 = vmatprep.mubr.msk.bf16.mxu0 %vm728_vm3, %v5652_v17 }
  0xd4   : > { %3853 = vmatmul.mubr.msk.bf16.gmra.mrb[16].mxu1 %vm728_vm3, %v4995_v50  ;;  %4007 = vmatmul.mubr.msk.bf16.vlgmr.msra.gmra.mrb[0].mxu0 %vm728_vm3, %v5653_v51 }
  0xd5   : > { %4039 = vmatpush3.bf16.msra.mxu0 %v2756_v10  ;;  %3856 = vmatprep.mubr.msk.bf16.mxu1 %vm728_vm3, %v5017_v20 }
  0xd6   : > { %4010 = vmatprep.mubr.msk.bf16.mxu0 %vm728_vm3, %v5654_v33 }
  0xdc   : > { %3857 = vmatmul.mubr.msk.bf16.gmra.mrb[20].mxu1 %vm728_vm3, %v5028_v0  ;;  %4011 = vmatmul.mubr.msk.bf16.gmra.mrb[4].mxu0 %vm728_vm3, %v5655_v39 }
  0xdd   : > { %3860 = vmatprep.mubr.msk.bf16.mxu1 %vm728_vm3, %v5069_v62  ;;  %4014 = vmatprep.mubr.msk.bf16.mxu0 %vm728_vm3, %v5656_v58 }
  0xe4   : > { %3861 = vmatmul.mubr.msk.bf16.gmra.mrb[24].mxu1 %vm728_vm3, %v5096_v31  ;;  %4015 = vmatmul.mubr.msk.bf16.gmra.mrb[8].mxu0 %vm728_vm3, %v5657_v42 }
  0xe5   : > { %3864 = vmatprep.mubr.msk.bf16.mxu1 %vm728_vm3, %v5132_v44  ;;  %4018 = vmatprep.mubr.msk.bf16.mxu0 %vm728_vm3, %v5658_v15 }
  0xec   : > { %3865 = vmatmul.mubr.msk.bf16.gmra.mrb[28].mxu1 %vm728_vm3, %v5142_v1  ;;  %4019 = vmatmul.mubr.msk.bf16.gmra.mrb[12].mxu0 %vm728_vm3, %v5659_v27 }
  0xed   : > { %3870 = vmatprep.mubr.msk.bf16.mxu1 %vm728_vm3, %v4534_v38  ;;  %4022 = vmatprep.mubr.msk.bf16.mxu0 %vm728_vm3, %v5660_v6  ;;  %v2521_v38 = vshll.u32 %v5259_v9, 16 }
  0xef   : > { %v2523_v18 = vrot.slane %v2521_v38, 5 }
  0xf1   : > { %v2528_v59 = vor.u32 %v2527_v43, %v2523_v18 }
  0xf3   : > { %v2529_v2 = vrot.slane %v2528_v59, 4 }
  0xf4   : > { %3871 = vmatmul.mubr.msk.bf16.vlgmr.msra.gmra.mrb[0].mxu1 %vm728_vm3, %v5023_v47  ;;  %4023 = vmatmul.mubr.msk.bf16.gmra.mrb[16].mxu0 %vm728_vm3, %v5661_v7  ;;  %v2514_v47 = vrot.slane %v2512_v60, 4 }
  0xf5   : > { %4073 = vmatpush3.bf16.msra.mxu1 %v5662_v25  ;;  %3874 = vmatprep.mubr.msk.bf16.mxu1 %vm728_vm3, %v5049_v23 }
  0xf6   : > { %4026 = vmatprep.mubr.msk.bf16.mxu0 %vm728_vm3, %v5663_v46  ;;  %v2518_v23 = vor.u32 %v2517_v32, %v2514_v47 }
  0xf8   : > { %v2519_v48 = vrot.slane %v2518_v23, 4 }
  0xfc   : > { %3875 = vmatmul.mubr.msk.bf16.gmra.mrb[4].mxu1 %vm728_vm3, %v5094_v56  ;;  %4027 = vmatmul.mubr.msk.bf16.gmra.mrb[20].mxu0 %vm728_vm3, %v5664_v12  ;;  %v2524_v56 = vsel %vm4528_vm4, %v2519_v48, %v2523_v18 }
  0xfd   : > { %3878 = vmatprep.mubr.msk.bf16.mxu1 %vm728_vm3, %v5130_v53  ;;  %4030 = vmatprep.mubr.msk.bf16.mxu0 %vm728_vm3, %v4962_v30  ;;  %v2534_v53 = vsel %vm4528_vm4, %v2529_v2, %v2533_v61 }
  0xfe   : > { %v3508_v17 = vcombine.low %v2524_v56, %v2534_v53 }
 0x104   : > { %3879 = vmatmul.mubr.msk.bf16.gmra.mrb[8].mxu1 %vm728_vm3, %v5136_v8  ;;  %4031 = vmatmul.mubr.msk.bf16.gmra.mrb[24].mxu0 %vm728_vm3, %v4989_v63 }
 0x105   : > { %3882 = vmatprep.mubr.msk.bf16.mxu1 %vm728_vm3, %v5159_v40  ;;  %4034 = vmatprep.mubr.msk.bf16.mxu0 %vm728_vm3, %v5167_v16 }
 0x10c   : > { %3883 = vmatmul.mubr.msk.bf16.gmra.mrb[12].mxu1 %vm728_vm3, %v5055_v22  ;;  %4035 = vmatmul.mubr.msk.bf16.gmra.mrb[28].mxu0 %vm728_vm3, %v3508_v17 }
 0x10d   : > { %3886 = vmatprep.mubr.msk.bf16.mxu1 %vm728_vm3, %v5065_v57  ;;  %4040 = vmatprep.mubr.msk.bf16.mxu0 %vm728_vm3, %v5647_v52 }
 0x114   : > { %3887 = vmatmul.mubr.msk.bf16.gmra.mrb[16].mxu1 %vm728_vm3, %v5074_v5  ;;  %4041 = vmatmul.mubr.msk.bf16.vlgmr.msra.gmra.mrb[0].mxu0 %vm728_vm3, %v5648_v3 }
 0x115   : > { %3890 = vmatprep.mubr.msk.bf16.mxu1 %vm728_vm3, %v5078_v49  ;;  %4044 = vmatprep.mubr.msk.bf16.mxu0 %vm728_vm3, %v5649_v4  ;;  %v5431_v4 = vld [vmem:[%s5586_s3] ss:$0 sm:$0xff] }
 0x11c   : > { %3891 = vmatmul.mubr.msk.bf16.gmra.mrb[20].mxu1 %vm728_vm3, %v5082_v54  ;;  %4045 = vmatmul.mubr.msk.bf16.gmra.mrb[4].mxu0 %vm728_vm3, %v5650_v21 }
 0x11d   : > { %3894 = vmatprep.mubr.msk.bf16.mxu1 %vm728_vm3, %v5086_v36  ;;  %4048 = vmatprep.mubr.msk.bf16.mxu0 %vm728_vm3, %v5651_v13 }
 0x124   : > { %3895 = vmatmul.mubr.msk.bf16.gmra.mrb[24].mxu1 %vm728_vm3, %v5090_v45  ;;  %4049 = vmatmul.mubr.msk.bf16.gmra.mrb[8].mxu0 %vm728_vm3, %v4960_v37  ;;  %v3525_v37 = vrot.slane %v5256_v24, 9 }
 0x125   : > { %3898 = vmatprep.mubr.msk.bf16.mxu1 %vm728_vm3, %v5100_v29  ;;  %4052 = vmatprep.mubr.msk.bf16.mxu0 %vm728_vm3, %v4991_v41  ;;  %v2744_v41 = vrot.slane %v2742_v34, 4 }
 0x12c   : > { %3899 = vmatmul.mubr.msk.bf16.gmra.mrb[28].mxu1 %vm728_vm3, %v5245_v11  ;;  %4053 = vmatmul.mubr.msk.bf16.gmra.mrb[12].mxu0 %vm728_vm3, %v4995_v50  ;;  %v2745_v50 = vrot.slane %v289_v55, 5 }
 0x12d   : > { %3920 = vmatprep.mubr.msk.bf16.mxu1 %vm728_vm3, %v5659_v27  ;;  %4056 = vmatprep.mubr.msk.bf16.mxu0 %vm728_vm3, %v5017_v20  ;;  %v2743_v20 = vsel %vm4709_vm7, %v3525_v37, %v2742_v34 }
 0x134   : > { %3921 = vmatmul.mubr.msk.bf16.vlgmr.msra.gmra.mrb[16].mxu1 %vm728_vm3, %v5660_v6  ;;  %4057 = vmatmul.mubr.msk.bf16.gmra.mrb[16].mxu0 %vm728_vm3, %v5028_v0  ;;  %v2746_v0 = vsel %vm4709_vm7, %v2744_v41, %v2745_v50 }
 0x135   : > { %3924 = vmatprep.mubr.msk.bf16.mxu1 %vm728_vm3, %v5661_v7  ;;  %4060 = vmatprep.mubr.msk.bf16.mxu0 %vm728_vm3, %v5069_v62  ;;  %v3527_v22 = vcombine.low %v2743_v20, %v2746_v0 }
 0x13c   : > { %3925 = vmatmul.mubr.msk.bf16.gmra.mrb[20].mxu1 %vm728_vm3, %v5663_v46  ;;  %4061 = vmatmul.mubr.msk.bf16.gmra.mrb[20].mxu0 %vm728_vm3, %v5096_v31 }
 0x13d   : > { %3928 = vmatprep.mubr.msk.bf16.mxu1 %vm728_vm3, %v5664_v12  ;;  %4064 = vmatprep.mubr.msk.bf16.mxu0 %vm728_vm3, %v5132_v44 }
 0x144   : > { %3929 = vmatmul.mubr.msk.bf16.gmra.mrb[24].mxu1 %vm728_vm3, %v4962_v30  ;;  %4065 = vmatmul.mubr.msk.bf16.gmra.mrb[24].mxu0 %vm728_vm3, %v5142_v1 }
 0x145   : > { %3932 = vmatprep.mubr.msk.bf16.mxu1 %vm728_vm3, %v4989_v63  ;;  %4068 = vmatprep.mubr.msk.bf16.mxu0 %vm728_vm3, %v5161_v19 }
 0x14c   : > { %3933 = vmatmul.mubr.msk.bf16.gmra.mrb[28].mxu1 %vm728_vm3, %v5167_v16  ;;  %4069 = vmatmul.mubr.msk.bf16.gmra.mrb[28].mxu0 %vm728_vm3, %v3527_v22  ;;  %v5426_v16 = vld [vmem:[%s5585_s2] ss:$0 sm:$0xff] }
 0x1c7   : > { %v3872_v30 = vpop.f32.mrb[0].mxu1 }
 0x1c8   : > { %v1706_v57 = vpop.f32.mrb[1].mxu1 }
 0x1c9   : > { %v3873_v62 = vpop.f32.mrb[2].mxu1 }
 0x1ca   : > { %v1709_v5 = vpop.f32.mrb[3].mxu1 }
 0x1cf   : > { %v3876_v63 = vpop.f32.mrb[4].mxu1 }
 0x1d0   : > { %v1722_v49 = vpop.f32.mrb[5].mxu1 }
 0x1d1   : > { %v3877_v54 = vpop.f32.mrb[6].mxu1 }
 0x1d2   : > { %v1725_v36 = vpop.f32.mrb[7].mxu1 }
 0x1d7   : > { %v3880_v45 = vpop.f32.mrb[8].mxu1 }
 0x1d8   : > { %v5409_v31 = vpop.f32.mrb[9].mxu1 }
 0x1d9   : > { %v5411_v29 = vpop.f32.mrb[10].mxu1 }
 0x1da   : > { %v5413_v26 = vpop.f32.mrb[11].mxu1 }
 0x1df   : > { %v5415_v44 = vpop.f32.mrb[12].mxu1 }
 0x1e0   : > { %v5417_v8 = vpop.f32.mrb[13].mxu1 }
 0x1e1   : > { %v5419_v1 = vpop.f32.mrb[14].mxu1 }
 0x1e2   : > { %v5421_v40 = vpop.f32.mrb[15].mxu1 }
 0x1e7   : > { %v4042_v19 = vpop.f32.mrb[0].mxu0 }
 0x1e8   : > { %v4074_v52 = vadd.f32 %v4042_v19, %v3872_v30  ;;  %v2792_v3 = vpop.f32.mrb[1].mxu0 }
 0x1e9   : > { %v4075_v11 = vadd.f32 %v2792_v3, %v1706_v57  ;;  %v4043_v21 = vpop.f32.mrb[2].mxu0 }
 0x1ea   : > { %v2960_v13 = vmul.f32 %v4074_v52, %v5426_v16  ;;  %v4076_v24 = vadd.f32 %v4043_v21, %v3873_v62  ;;  %v2795_v9 = vpop.f32.mrb[3].mxu0 }
 0x1eb   : > { %v2958_v10 = vmul.f32 %v4075_v11, %v5426_v16  ;;  %v4077_v51 = vadd.f32 %v2795_v9, %v1709_v5 }
 0x1ec   : > { %v2999_v33 = vadd.f32 %v5431_v4, %v2960_v13  ;;  %v2961_v39 = vmul.f32 %v4076_v24, %v5426_v16 }
 0x1ed   : > { %v2997_v58 = vadd.f32 %v5431_v4, %v2958_v10  ;;  %v2959_v42 = vmul.f32 %v4077_v51, %v5426_v16 }
 0x1ee   : > { %v3031_v15 = vmax.f32 %v2999_v33, 0.0  ;;  %v3000_v27 = vadd.f32 %v5431_v4, %v2961_v39 }
 0x1ef   : > { %v3029_v6 = vmax.f32 %v2997_v58, 0.0  ;;  %v2998_v7 = vadd.f32 %v5431_v4, %v2959_v42  ;;  %v4046_v60 = vpop.f32.mrb[4].mxu0 }
 0x1f0   : > { %v3583_v14 = vpack.c.bf16 %v3031_v15, %v3031_v15  ;;  %v3032_v28 = vmax.f32 %v3000_v27, 0.0  ;;  %v4078_v25 = vadd.f32 %v4046_v60, %v3876_v63  ;;  %v2808_v38 = vpop.f32.mrb[5].mxu0 }
 0x1f1   : > { %v3581_v46 = vpack.c.bf16 %v3029_v6, %v3029_v6  ;;  %v3030_v47 = vmax.f32 %v2998_v7, 0.0  ;;  %v4079_v32 = vadd.f32 %v2808_v38, %v1722_v49  ;;  %v4047_v18 = vpop.f32.mrb[6].mxu0 }
 0x1f2   : > { %3192 = vst.msk [vmem:[%s5444_s28 + $0x8] sm:$0xf] %vm3189_vm8, %v3583_v14  ;;  %v3584_v43 = vpack.c.bf16 %v3032_v28, %v3032_v28  ;;  %v2964_v55 = vmul.f32 %v4078_v25, %v5426_v16  ;;  %v4080_v12 = vadd.f32 %v4047_v18, %v3877_v54  ;;  %v2811_v23 = vpop.f32.mrb[7].mxu0 }
 0x1f3   : > { %3190 = vst.msk [vmem:[%s5444_s28] sm:$0xf] %vm3189_vm8, %v3581_v46  ;;  %v3582_v59 = vpack.c.bf16 %v3030_v47, %v3030_v47  ;;  %v2962_v35 = vmul.f32 %v4079_v32, %v5426_v16  ;;  %v4081_v48 = vadd.f32 %v2811_v23, %v1725_v36 }
 0x1f4   : > { %3193 = vst.msk [vmem:[%s5444_s28 + $0xc] sm:$0xf] %vm3189_vm8, %v3584_v43  ;;  %v3003_v2 = vadd.f32 %v5431_v4, %v2964_v55  ;;  %v2965_v61 = vmul.f32 %v4080_v12, %v5426_v16 }
 0x1f5   : > { %3191 = vst.msk [vmem:[%s5444_s28 + $0x4] sm:$0xf] %vm3189_vm8, %v3582_v59  ;;  %v3001_v56 = vadd.f32 %v5431_v4, %v2962_v35  ;;  %v2963_v53 = vmul.f32 %v4081_v48, %v5426_v16 }
 0x1f6   : > { %v3035_v17 = vmax.f32 %v3003_v2, 0.0  ;;  %v3004_v34 = vadd.f32 %v5431_v4, %v2965_v61 }
 0x1f7   : > { %v3033_v37 = vmax.f32 %v3001_v56, 0.0  ;;  %v3002_v41 = vadd.f32 %v5431_v4, %v2963_v53  ;;  %v4050_v50 = vpop.f32.mrb[8].mxu0 }
 0x1f8   : > { %v3587_v20 = vpack.c.bf16 %v3035_v17, %v3035_v17  ;;  %v3036_v0 = vmax.f32 %v3004_v34, 0.0  ;;  %v4082_v22 = vadd.f32 %v4050_v50, %v3880_v45  ;;  %v2824_v30 = vpop.f32.mrb[9].mxu0 }
 0x1f9   : > { %v3585_v57 = vpack.c.bf16 %v3033_v37, %v3033_v37  ;;  %v3034_v62 = vmax.f32 %v3002_v41, 0.0  ;;  %v4083_v5 = vadd.f32 %v2824_v30, %v5409_v31  ;;  %v4051_v63 = vpop.f32.mrb[10].mxu0 }
 0x1fa   : > { %3196 = vst.msk [vmem:[%s5444_s28 + $0x18] sm:$0xf] %vm3189_vm8, %v3587_v20  ;;  %v3588_v49 = vpack.c.bf16 %v3036_v0, %v3036_v0  ;;  %v2968_v54 = vmul.f32 %v4082_v22, %v5426_v16  ;;  %v4084_v36 = vadd.f32 %v4051_v63, %v5411_v29  ;;  %v2827_v19 = vpop.f32.mrb[11].mxu0 }
 0x1fb   : > { %3194 = vst.msk [vmem:[%s5444_s28 + $0x10] sm:$0xf] %vm3189_vm8, %v3585_v57  ;;  %v3586_v52 = vpack.c.bf16 %v3034_v62, %v3034_v62  ;;  %v2966_v45 = vmul.f32 %v4083_v5, %v5426_v16  ;;  %v4085_v3 = vadd.f32 %v2827_v19, %v5413_v26 }
 0x1fc   : > { %3197 = vst.msk [vmem:[%s5444_s28 + $0x1c] sm:$0xf] %vm3189_vm8, %v3588_v49  ;;  %v3007_v31 = vadd.f32 %v5431_v4, %v2968_v54  ;;  %v2969_v11 = vmul.f32 %v4084_v36, %v5426_v16 }
 0x1fd   : > { %3195 = vst.msk [vmem:[%s5444_s28 + $0x14] sm:$0xf] %vm3189_vm8, %v3586_v52  ;;  %v3005_v21 = vadd.f32 %v5431_v4, %v2966_v45  ;;  %v2967_v29 = vmul.f32 %v4085_v3, %v5426_v16 }
 0x1fe   : > { %v3039_v13 = vmax.f32 %v3007_v31, 0.0  ;;  %v3008_v24 = vadd.f32 %v5431_v4, %v2969_v11 }
 0x1ff   : > { %v3037_v9 = vmax.f32 %v3005_v21, 0.0  ;;  %v3006_v26 = vadd.f32 %v5431_v4, %v2967_v29  ;;  %v4054_v10 = vpop.f32.mrb[12].mxu0 }
 0x200   : > { %v3591_v51 = vpack.c.bf16 %v3039_v13, %v3039_v13  ;;  %v3040_v33 = vmax.f32 %v3008_v24, 0.0  ;;  %v4086_v39 = vadd.f32 %v4054_v10, %v5415_v44  ;;  %v2840_v58 = vpop.f32.mrb[13].mxu0 }
 0x201   : > { %v3589_v42 = vpack.c.bf16 %v3037_v9, %v3037_v9  ;;  %v3038_v15 = vmax.f32 %v3006_v26, 0.0  ;;  %v4087_v27 = vadd.f32 %v2840_v58, %v5417_v8  ;;  %v4055_v6 = vpop.f32.mrb[14].mxu0 }
 0x202   : > { %3200 = vst.msk [vmem:[%s5444_s28 + $0x28] sm:$0xf] %vm3189_vm8, %v3591_v51  ;;  %v3592_v7 = vpack.c.bf16 %v3040_v33, %v3040_v33  ;;  %v2972_v60 = vmul.f32 %v4086_v39, %v5426_v16  ;;  %v4088_v14 = vadd.f32 %v4055_v6, %v5419_v1  ;;  %v2843_v28 = vpop.f32.mrb[15].mxu0 }
 0x203   : > { %3198 = vst.msk [vmem:[%s5444_s28 + $0x20] sm:$0xf] %vm3189_vm8, %v3589_v42  ;;  %v3590_v25 = vpack.c.bf16 %v3038_v15, %v3038_v15  ;;  %v2970_v44 = vmul.f32 %v4087_v27, %v5426_v16  ;;  %v4089_v38 = vadd.f32 %v2843_v28, %v5421_v40 }
 0x204   : > { %3201 = vst.msk [vmem:[%s5444_s28 + $0x2c] sm:$0xf] %vm3189_vm8, %v3592_v7  ;;  %v3011_v8 = vadd.f32 %v5431_v4, %v2972_v60  ;;  %v2973_v46 = vmul.f32 %v4088_v14, %v5426_v16 }
 0x205   : > { %3199 = vst.msk [vmem:[%s5444_s28 + $0x24] sm:$0xf] %vm3189_vm8, %v3590_v25  ;;  %v3009_v47 = vadd.f32 %v5431_v4, %v2970_v44  ;;  %v2971_v1 = vmul.f32 %v4089_v38, %v5426_v16 }
 0x206   : > { %v3043_v32 = vmax.f32 %v3011_v8, 0.0  ;;  %v3012_v18 = vadd.f32 %v5431_v4, %v2973_v46 }
 0x207   : > { %v3041_v43 = vmax.f32 %v3009_v47, 0.0  ;;  %v3010_v55 = vadd.f32 %v5431_v4, %v2971_v1  ;;  %v3922_v40 = vpop.f32.mrb[16].mxu1  ;;  %v4058_v12 = vpop.f32.mrb[16].mxu0 }
 0x208   : > { %v3595_v23 = vpack.c.bf16 %v3043_v32, %v3043_v32  ;;  %v3044_v59 = vmax.f32 %v3012_v18, 0.0  ;;  %v4090_v35 = vadd.f32 %v4058_v12, %v3922_v40  ;;  %v1998_v48 = vpop.f32.mrb[17].mxu1  ;;  %v2856_v2 = vpop.f32.mrb[17].mxu0 }
 0x209   : > { %v3593_v61 = vpack.c.bf16 %v3041_v43, %v3041_v43  ;;  %v3042_v56 = vmax.f32 %v3010_v55, 0.0  ;;  %v4091_v53 = vadd.f32 %v2856_v2, %v1998_v48  ;;  %v3923_v17 = vpop.f32.mrb[18].mxu1  ;;  %v4059_v34 = vpop.f32.mrb[18].mxu0 }
 0x20a   : > { %3204 = vst.msk [vmem:[%s5444_s28 + $0x38] sm:$0xf] %vm3189_vm8, %v3595_v23  ;;  %v3596_v37 = vpack.c.bf16 %v3044_v59, %v3044_v59  ;;  %v2976_v41 = vmul.f32 %v4090_v35, %v5426_v16  ;;  %v4092_v50 = vadd.f32 %v4059_v34, %v3923_v17  ;;  %v2001_v20 = vpop.f32.mrb[19].mxu1  ;;  %v2859_v0 = vpop.f32.mrb[19].mxu0 }
 0x20b   : > { %3202 = vst.msk [vmem:[%s5444_s28 + $0x30] sm:$0xf] %vm3189_vm8, %v3593_v61  ;;  %v3594_v22 = vpack.c.bf16 %v3042_v56, %v3042_v56  ;;  %v2974_v30 = vmul.f32 %v4091_v53, %v5426_v16  ;;  %v4093_v57 = vadd.f32 %v2859_v0, %v2001_v20 }
 0x20c   : > { %3205 = vst.msk [vmem:[%s5444_s28 + $0x3c] sm:$0xf] %vm3189_vm8, %v3596_v37  ;;  %v3015_v62 = vadd.f32 %v5431_v4, %v2976_v41  ;;  %v2977_v5 = vmul.f32 %v4092_v50, %v5426_v16 }
 0x20d   : > { %3203 = vst.msk [vmem:[%s5444_s28 + $0x34] sm:$0xf] %vm3189_vm8, %v3594_v22  ;;  %v3013_v63 = vadd.f32 %v5431_v4, %v2974_v30  ;;  %v2975_v49 = vmul.f32 %v4093_v57, %v5426_v16 }
 0x20e   : > { %v3047_v54 = vmax.f32 %v3015_v62, 0.0  ;;  %v3016_v36 = vadd.f32 %v5431_v4, %v2977_v5 }
 0x20f   : > { %v3045_v19 = vmax.f32 %v3013_v63, 0.0  ;;  %v3014_v52 = vadd.f32 %v5431_v4, %v2975_v49  ;;  %v3926_v45 = vpop.f32.mrb[20].mxu1  ;;  %v4062_v3 = vpop.f32.mrb[20].mxu0 }
 0x210   : > { %v3599_v31 = vpack.c.bf16 %v3047_v54, %v3047_v54  ;;  %v3048_v11 = vmax.f32 %v3016_v36, 0.0  ;;  %v4094_v21 = vadd.f32 %v4062_v3, %v3926_v45  ;;  %v2014_v29 = vpop.f32.mrb[21].mxu1  ;;  %v2872_v13 = vpop.f32.mrb[21].mxu0 }
 0x211   : > { %v3597_v24 = vpack.c.bf16 %v3045_v19, %v3045_v19  ;;  %v3046_v9 = vmax.f32 %v3014_v52, 0.0  ;;  %v4095_v26 = vadd.f32 %v2872_v13, %v2014_v29  ;;  %v3927_v10 = vpop.f32.mrb[22].mxu1  ;;  %v4063_v51 = vpop.f32.mrb[22].mxu0 }
 0x212   : > { %3208 = vst.msk [vmem:[%s5444_s28 + $0x48] sm:$0xf] %vm3189_vm8, %v3599_v31  ;;  %v3600_v33 = vpack.c.bf16 %v3048_v11, %v3048_v11  ;;  %v2980_v39 = vmul.f32 %v4094_v21, %v5426_v16  ;;  %v4096_v58 = vadd.f32 %v4063_v51, %v3927_v10  ;;  %v2017_v42 = vpop.f32.mrb[23].mxu1  ;;  %v2875_v15 = vpop.f32.mrb[23].mxu0 }
 0x213   : > { %3206 = vst.msk [vmem:[%s5444_s28 + $0x40] sm:$0xf] %vm3189_vm8, %v3597_v24  ;;  %v3598_v27 = vpack.c.bf16 %v3046_v9, %v3046_v9  ;;  %v2978_v6 = vmul.f32 %v4095_v26, %v5426_v16  ;;  %v4097_v7 = vadd.f32 %v2875_v15, %v2017_v42 }
 0x214   : > { %3209 = vst.msk [vmem:[%s5444_s28 + $0x4c] sm:$0xf] %vm3189_vm8, %v3600_v33  ;;  %v3019_v60 = vadd.f32 %v5431_v4, %v2980_v39  ;;  %v2981_v14 = vmul.f32 %v4096_v58, %v5426_v16 }
 0x215   : > { %3207 = vst.msk [vmem:[%s5444_s28 + $0x44] sm:$0xf] %vm3189_vm8, %v3598_v27  ;;  %v3017_v28 = vadd.f32 %v5431_v4, %v2978_v6  ;;  %v2979_v25 = vmul.f32 %v4097_v7, %v5426_v16 }
 0x216   : > { %v3051_v44 = vmax.f32 %v3019_v60, 0.0  ;;  %v3020_v38 = vadd.f32 %v5431_v4, %v2981_v14 }
 0x217   : > { %v3049_v8 = vmax.f32 %v3017_v28, 0.0  ;;  %v3018_v46 = vadd.f32 %v5431_v4, %v2979_v25  ;;  %v3930_v47 = vpop.f32.mrb[24].mxu1  ;;  %v4066_v1 = vpop.f32.mrb[24].mxu0 }
 0x218   : > { %v3603_v32 = vpack.c.bf16 %v3051_v44, %v3051_v44  ;;  %v3052_v18 = vmax.f32 %v3020_v38, 0.0  ;;  %v4098_v43 = vadd.f32 %v4066_v1, %v3930_v47  ;;  %v2030_v55 = vpop.f32.mrb[25].mxu1  ;;  %v2888_v40 = vpop.f32.mrb[25].mxu0 }
 0x219   : > { %v3601_v12 = vpack.c.bf16 %v3049_v8, %v3049_v8  ;;  %v3050_v23 = vmax.f32 %v3018_v46, 0.0  ;;  %v4099_v59 = vadd.f32 %v2888_v40, %v2030_v55  ;;  %v3931_v35 = vpop.f32.mrb[26].mxu1  ;;  %v4067_v48 = vpop.f32.mrb[26].mxu0 }
 0x21a   : > { %3212 = vst.msk [vmem:[%s5444_s28 + $0x58] sm:$0xf] %vm3189_vm8, %v3603_v32  ;;  %v3604_v2 = vpack.c.bf16 %v3052_v18, %v3052_v18  ;;  %v2984_v61 = vmul.f32 %v4098_v43, %v5426_v16  ;;  %v4100_v56 = vadd.f32 %v4067_v48, %v3931_v35  ;;  %v2033_v53 = vpop.f32.mrb[27].mxu1  ;;  %v2891_v17 = vpop.f32.mrb[27].mxu0 }
 0x21b   : > { %3210 = vst.msk [vmem:[%s5444_s28 + $0x50] sm:$0xf] %vm3189_vm8, %v3601_v12  ;;  %v3602_v34 = vpack.c.bf16 %v3050_v23, %v3050_v23  ;;  %v2982_v37 = vmul.f32 %v4099_v59, %v5426_v16  ;;  %v4101_v41 = vadd.f32 %v2891_v17, %v2033_v53 }
 0x21c   : > { %3213 = vst.msk [vmem:[%s5444_s28 + $0x5c] sm:$0xf] %vm3189_vm8, %v3604_v2  ;;  %v3023_v50 = vadd.f32 %v5431_v4, %v2984_v61  ;;  %v2985_v20 = vmul.f32 %v4100_v56, %v5426_v16 }
 0x21d   : > { %3211 = vst.msk [vmem:[%s5444_s28 + $0x54] sm:$0xf] %vm3189_vm8, %v3602_v34  ;;  %v3021_v0 = vadd.f32 %v5431_v4, %v2982_v37  ;;  %v2983_v22 = vmul.f32 %v4101_v41, %v5426_v16 }
 0x21e   : > { %v3055_v30 = vmax.f32 %v3023_v50, 0.0  ;;  %v3024_v57 = vadd.f32 %v5431_v4, %v2985_v20 }
 0x21f   : > { %v3053_v62 = vmax.f32 %v3021_v0, 0.0  ;;  %v3022_v5 = vadd.f32 %v5431_v4, %v2983_v22  ;;  %v3934_v63 = vpop.f32.mrb[28].mxu1  ;;  %v4070_v49 = vpop.f32.mrb[28].mxu0 }
 0x220   : > { %v3607_v54 = vpack.c.bf16 %v3055_v30, %v3055_v30  ;;  %v3056_v36 = vmax.f32 %v3024_v57, 0.0  ;;  %v4102_v19 = vadd.f32 %v4070_v49, %v3934_v63  ;;  %v2046_v52 = vpop.f32.mrb[29].mxu1  ;;  %v2904_v45 = vpop.f32.mrb[29].mxu0 }
 0x221   : > { %v3605_v3 = vpack.c.bf16 %v3053_v62, %v3053_v62  ;;  %v3054_v31 = vmax.f32 %v3022_v5, 0.0  ;;  %v4103_v11 = vadd.f32 %v2904_v45, %v2046_v52  ;;  %v3935_v21 = vpop.f32.mrb[30].mxu1  ;;  %v4071_v29 = vpop.f32.mrb[30].mxu0 }
 0x222   : > { %3216 = vst.msk [vmem:[%s5444_s28 + $0x68] sm:$0xf] %vm3189_vm8, %v3607_v54  ;;  %v3608_v13 = vpack.c.bf16 %v3056_v36, %v3056_v36  ;;  %v2988_v24 = vmul.f32 %v4102_v19, %v5426_v16  ;;  %v4104_v9 = vadd.f32 %v4071_v29, %v3935_v21  ;;  %v2049_v26 = vpop.f32.mrb[31].mxu1  ;;  %v2907_v10 = vpop.f32.mrb[31].mxu0 }
 0x223   : > { %3214 = vst.msk [vmem:[%s5444_s28 + $0x60] sm:$0xf] %vm3189_vm8, %v3605_v3  ;;  %v3606_v51 = vpack.c.bf16 %v3054_v31, %v3054_v31  ;;  %v2986_v33 = vmul.f32 %v4103_v11, %v5426_v16  ;;  %v4105_v39 = vadd.f32 %v2907_v10, %v2049_v26 }
 0x224   : > { %3217 = vst.msk [vmem:[%s5444_s28 + $0x6c] sm:$0xf] %vm3189_vm8, %v3608_v13  ;;  %v3027_v58 = vadd.f32 %v5431_v4, %v2988_v24  ;;  %v2989_v42 = vmul.f32 %v4104_v9, %v5426_v16 }
 0x225   : > { %3215 = vst.msk [vmem:[%s5444_s28 + $0x64] sm:$0xf] %vm3189_vm8, %v3606_v51  ;;  %v3025_v15 = vadd.f32 %v5431_v4, %v2986_v33  ;;  %v2987_v27 = vmul.f32 %v4105_v39, %v5426_v16 }
 0x226   : > { %v3059_v6 = vmax.f32 %v3027_v58, 0.0  ;;  %v3028_v7 = vadd.f32 %v5431_v4, %v2989_v42 }
 0x227   : > { %v3057_v60 = vmax.f32 %v3025_v15, 0.0  ;;  %v3026_v14 = vadd.f32 %v5431_v4, %v2987_v27 }
 0x228   : > { %v3611_v28 = vpack.c.bf16 %v3059_v6, %v3059_v6  ;;  %v3060_v25 = vmax.f32 %v3028_v7, 0.0 }
 0x229   : > { %v3609_v44 = vpack.c.bf16 %v3057_v60, %v3057_v60  ;;  %v3058_v38 = vmax.f32 %v3026_v14, 0.0 }
 0x22a   : > { %3220 = vst.msk [vmem:[%s5444_s28 + $0x78] sm:$0xf] %vm3189_vm8, %v3611_v28  ;;  %v3612_v8 = vpack.c.bf16 %v3060_v25, %v3060_v25 }
 0x22b   : > { %3218 = vst.msk [vmem:[%s5444_s28 + $0x70] sm:$0xf] %vm3189_vm8, %v3609_v44  ;;  %v3610_v46 = vpack.c.bf16 %v3058_v38, %v3058_v38 }
 0x22c   : > { %3221 = vst.msk [vmem:[%s5444_s28 + $0x7c] sm:$0xf] %vm3189_vm8, %v3612_v8 }
 0x22d   : > { %3219 = vst.msk [vmem:[%s5444_s28 + $0x74] sm:$0xf] %vm3189_vm8, %v3610_v46 }
 0x22e PF: > { %s14_s17 = sadd.s32 1, %s4409_s17   ;;  %s5665_s15 = smov %s4405_s16 }
 0x22f   : > { %p11_p5 = scmp.ge.s32.totalorder %s14_s17, 4   ;;  %s5666_s16 = smov %s5668_s18 }
 0x231   :  { %13 = sbr.rel (!%p11_p5) target bundleno = 2 (0x2), region = 74 }

</bundles_post_ra>
